<compile_context>
chip_gen: v7x
topology: tpu7x:2x2x1
jax: 0.10.0
libtpu: 0.0.40
codegen_flags: <defaults>
</compile_context>

<pallas_src>
import functools

import numpy as np
import jax
import jax.numpy as jnp
from jax import lax
from jax.experimental import pallas as pl
from jax.experimental.pallas import tpu as pltpu


# ---------------------------------------------------------------------------
# PyTorch-side helpers reproduced in Python
# ---------------------------------------------------------------------------
def parse_parameter(p, n):
    if isinstance(p, (tuple, list)):
        assert len(p) == n
        return tuple(p)
    return (p,) * n


def get_padding(kernel_size, dilation):
    # TODO(synk): galnet's get_padding helper is not shown; we assume 'same'
    # padding, total = dilation*(k-1), split low/high like ZeroPad2d.
    total = dilation * (kernel_size - 1)
    lo = total // 2
    return lo, total - lo


# ---------------------------------------------------------------------------
# Fused Conv + BatchNorm (+ReLU) Pallas kernel
# ---------------------------------------------------------------------------
def _conv_bn_kernel(x_ref, w_ref, g_ref, b_ref, mask_ref, o_ref, *,
                    offs, tm, count, eps, apply_relu):
    """Each grid step computes a lane-dense (Cout, tm) tile of the convolution
    directly into the VMEM-resident output; the last step runs the BatchNorm
    (+ReLU) epilogue over the whole output using the valid-position mask."""
    t = pl.program_id(0)
    base = pl.multiple_of(t * tm, 128)

    cout = o_ref.shape[1]
    acc = jnp.zeros((cout, tm), jnp.float32)
    # KH*KW conv taps == shifted row-windows of the flattened padded activation.
    # bf16 operands on the MXU, f32 accumulation.
    for ti, off in enumerate(offs):
        xs = x_ref[pl.ds(base + off, tm), :].astype(jnp.bfloat16)   # (tm, Cin)
        w_t = w_ref[ti]                                             # (Cout, Cin)
        acc += lax.dot_general(w_t, xs, (((1,), (1,)), ((), ())),
                               preferred_element_type=jnp.float32)
    o_ref[t] = acc                 # (Cout, tm): lane-dense, 128-aligned store

    @pl.when(t == pl.num_programs(0) - 1)
    def _epilogue():
        y = o_ref[...]             # (n_tiles, Cout, tm) f32, VMEM resident
        m = mask_ref[...]          # (n_tiles, 1, tm) 1.0 on real conv outputs

        def masked_moment(v):      # sum over (tile, column) axes / N*OH*OW
            s = jnp.sum(v, axis=2, keepdims=True)
            return jnp.sum(s, axis=0, keepdims=True) / count

        mean = masked_moment(y * m)                       # (1, Cout, 1)
        dev = (y - mean) * m
        var = masked_moment(dev * dev)
        out = (y - mean) * lax.rsqrt(var + eps) * g_ref[...] + b_ref[...]
        if apply_relu:
            out = jnp.maximum(out, 0.0)
        o_ref[...] = out


def _fused_conv_bn(x_pad_nhwc, w, gamma, beta, *, k, s, d, eps, apply_relu):
    """Pad-already-applied NHWC input -> fused conv+BN(+ReLU) -> NHWC output."""
    N, Hp, Wp, Cin = x_pad_nhwc.shape
    Cout = w.shape[0]
    eff = d * (k - 1) + 1
    OH = (Hp - eff) // s + 1
    OW = (Wp - eff) // s + 1

    # Conv taps as flat-row offsets into the flattened (N*Hp*Wp, Cin) activation.
    offs = tuple(kh * d * Wp + kw * d for kh in range(k) for kw in range(k))
    off_max = offs[-1]
    M_in = N * Hp * Wp
    m_needed = M_in - off_max          # rows for which every tap is in range
    # 128-aligned output tiles (unmasked lane-dense stores); capped at 512 so
    # the per-step working set stays small even for big shapes (v7x 64MiB VMEM).
    tm = max(128, min(512, pl.cdiv(m_needed, 128) * 128))
    n_tiles = pl.cdiv(m_needed, tm)
    m_pad = n_tiles * tm
    m_x = m_pad + off_max              # rows of x the kernel may touch

    x_flat = x_pad_nhwc.astype(jnp.float32).reshape(M_in, Cin)
    x_flat = jnp.pad(x_flat, ((0, m_x - M_in), (0, 0)))       # zero tail rows
    # PyTorch weight (Cout, Cin, KH, KW) -> per-tap (Cout, Cin), bf16 for MXU.
    w_taps = jnp.transpose(w, (2, 3, 0, 1)).reshape(k * k, Cout, Cin)
    w_taps = w_taps.astype(jnp.bfloat16)
    g = gamma.astype(jnp.float32).reshape(1, Cout, 1)
    b = beta.astype(jnp.float32).reshape(1, Cout, 1)

    # Static (numpy, compile-time) mask of flat positions that are real,
    # stride-selected conv outputs; BN statistics run over exactly these.
    f = np.arange(m_pad)
    n_i, r = f // (Hp * Wp), f % (Hp * Wp)
    h, w_ = r // Wp, r % Wp
    valid = ((n_i < N) & (h <= Hp - eff) & (w_ <= Wp - eff)
             & (h % s == 0) & (w_ % s == 0))
    count = float(valid.sum())
    assert count == float(N * OH * OW)
    mask = jnp.asarray(valid.astype(np.float32).reshape(n_tiles, tm)[:, None, :])

    kern = functools.partial(_conv_bn_kernel, offs=offs, tm=tm, count=count,
                             eps=eps, apply_relu=apply_relu)
    y = pl.pallas_call(
        kern,
        out_shape=jax.ShapeDtypeStruct((n_tiles, Cout, tm), jnp.float32),
        grid=(n_tiles,),
        in_specs=[pl.BlockSpec((m_x, Cin), lambda t: (0, 0)),
                  pl.BlockSpec((k * k, Cout, Cin), lambda t: (0, 0, 0)),
                  pl.BlockSpec((1, Cout, 1), lambda t: (0, 0, 0)),
                  pl.BlockSpec((1, Cout, 1), lambda t: (0, 0, 0)),
                  pl.BlockSpec((n_tiles, 1, tm), lambda t: (0, 0, 0))],
        out_specs=pl.BlockSpec((n_tiles, Cout, tm), lambda t: (0, 0, 0)),
        compiler_params=pltpu.CompilerParams(
            dimension_semantics=("arbitrary",)),   # BN epilogue => sequential
    )(x_flat, w_taps, g, b, mask)

    # Un-flatten: (n_tiles, Cout, tm) -> (Cout, M) -> keep valid strided outputs.
    y = jnp.transpose(y, (1, 0, 2)).reshape(Cout, m_pad)
    if m_pad >= M_in:
        y = y[:, :M_in]
    else:
        y = jnp.pad(y, ((0, 0), (0, M_in - m_pad)))
    y = y.reshape(Cout, N, Hp, Wp)[:, :, 0:Hp - eff + 1:s, 0:Wp - eff + 1:s]
    return jnp.transpose(y, (1, 2, 3, 0))          # (N, OH, OW, Cout)


# ---------------------------------------------------------------------------
# ConvBlock forward:  N x (Pad -> Conv -> BN) -> ReLU
# ---------------------------------------------------------------------------
def conv_block_forward(x_nchw, params, *, kernel_size, stride, dilation,
                       wrap_padding=False, nonlinear=True, eps=1e-5):
    """params = [(w_OIHW, gamma, beta), ...] ; external layout NCHW."""
    num_repeats = len(params)
    x = jnp.transpose(x_nchw, (0, 2, 3, 1)).astype(jnp.float32)   # NCHW -> NHWC
    for i, (w, gamma, beta) in enumerate(params):
        k, s, d = kernel_size[i], stride[i], dilation[i]
        lo, hi = get_padding(k, d)
        # NOTE: 'wrap' matches torch circular padding only while pad < spatial dim
        mode = "wrap" if wrap_padding else "constant"
        x = jnp.pad(x, ((0, 0), (lo, hi), (lo, hi), (0, 0)), mode=mode)
        x = _fused_conv_bn(
            x, w, gamma, beta, k=k, s=s, d=d, eps=eps,
            apply_relu=nonlinear and (i == num_repeats - 1))
    return jnp.transpose(x, (0, 3, 1, 2))                         # back to NCHW


# ---------------------------------------------------------------------------
# Pure-JAX reference (f32, HIGHEST precision) for validation
# ---------------------------------------------------------------------------
def reference_forward(x_nchw, params, *, kernel_size, stride, dilation, eps=1e-5):
    x = x_nchw.astype(jnp.float32)
    n = len(params)
    for i, (w, gamma, beta) in enumerate(params):
        k, s, d = kernel_size[i], stride[i], dilation[i]
        lo, hi = get_padding(k, d)
        x = lax.conv_general_dilated(
            x, w, window_strides=(s, s), padding=((lo, hi), (lo, hi)),
            rhs_dilation=(d, d), dimension_numbers=("NCHW", "OIHW", "NCHW"),
            precision=lax.Precision.HIGHEST)
        mean = jnp.mean(x, axis=(0, 2, 3), keepdims=True)
        var = jnp.mean(jnp.square(x - mean), axis=(0, 2, 3), keepdims=True)
        x = (x - mean) * lax.rsqrt(var + eps) * gamma.reshape(1, -1, 1, 1) \
            + beta.reshape(1, -1, 1, 1)
        if i == n - 1:
            x = jnp.maximum(x, 0.0)
    return x


if __name__ == "__main__":
    key = jax.random.PRNGKey(0)
    num_repeats = 2
    in_channels = 4
    out_channels = parse_parameter((8, 8), num_repeats)
    kernel_size = parse_parameter(3, num_repeats)
    stride = parse_parameter((1, 2), num_repeats)       # like the docstring example
    dilation = parse_parameter(1, num_repeats)

    keys = jax.random.split(key, 1 + 3 * num_repeats)
    x = jax.random.normal(keys[0], (2, in_channels, 16, 16), jnp.float32)

    # deterministic synthetic parameters (Conv2d bias=False; BN affine)
    params = []
    cin = in_channels
    for i in range(num_repeats):
        kw_, kg, kb = keys[1 + 3 * i], keys[2 + 3 * i], keys[3 + 3 * i]
        w = 0.1 * jax.random.normal(
            kw_, (out_channels[i], cin, kernel_size[i], kernel_size[i]), jnp.float32)
        gamma = 1.0 + 0.1 * jax.random.normal(kg, (out_channels[i],), jnp.float32)
        beta = 0.1 * jax.random.normal(kb, (out_channels[i],), jnp.float32)
        params.append((w, gamma, beta))
        cin = out_channels[i]

    fwd = jax.jit(functools.partial(conv_block_forward, kernel_size=kernel_size,
                                    stride=stride, dilation=dilation))
    out = jax.block_until_ready(fwd(x, params))

    ref = reference_forward(x, params, kernel_size=kernel_size,
                            stride=stride, dilation=dilation)
    assert out.shape == (2, out_channels[-1], 8, 8), out.shape
    # kernel uses bf16 MXU operands (f32 accumulation); compare against the
    # fp32-HIGHEST reference with a correspondingly relaxed tolerance.
    err = float(jnp.max(jnp.abs(out - ref)))
    assert jnp.allclose(out, ref, atol=2e-2, rtol=2e-2), err
    print("KERNEL_OK")
</pallas_src>

<mosaic_0001>
module attributes {stable_mosaic.version = 11 : i64} {
  func.func @_conv_bn_kernel(%arg0: i32, %arg1: memref<1062x4xf32, #tpu.memory_space<vmem>>, %arg2: memref<9x8x4xbf16, #tpu.memory_space<vmem>>, %arg3: memref<1x8x1xf32, #tpu.memory_space<vmem>>, %arg4: memref<1x8x1xf32, #tpu.memory_space<vmem>>, %arg5: memref<2x1x512xf32, #tpu.memory_space<vmem>>, %arg6: memref<2x8x512xf32, #tpu.memory_space<vmem>>) attributes {dimension_semantics = [#tpu.dimension_semantics<arbitrary>], iteration_bounds = array<i64: 2>, scalar_prefetch = 0 : i64, scratch_operands = 0 : i64, tpu.core_type = #tpu.core_type<tc>, window_params = [{pipeline_mode = #tpu.pipeline_mode<synchronous>, transform_indices = @transform_0, window_bounds = array<i64: 1062, 4>}, {pipeline_mode = #tpu.pipeline_mode<synchronous>, transform_indices = @transform_1, window_bounds = array<i64: 9, 8, 4>}, {pipeline_mode = #tpu.pipeline_mode<synchronous>, transform_indices = @transform_2, window_bounds = array<i64: 1, 8, 1>}, {pipeline_mode = #tpu.pipeline_mode<synchronous>, transform_indices = @transform_3, window_bounds = array<i64: 1, 8, 1>}, {pipeline_mode = #tpu.pipeline_mode<synchronous>, transform_indices = @transform_4, window_bounds = array<i64: 2, 1, 512>}, {pipeline_mode = #tpu.pipeline_mode<synchronous>, transform_indices = @transform_5, window_bounds = array<i64: 2, 8, 512>}]} {
    %c512_i32 = arith.constant 512 : i32
    %0 = arith.muli %arg0, %c512_i32 : i32
    %1 = tpu.assume_multiple %0, 128 : i32
    %cst = arith.constant 0.000000e+00 : f32
    %2 = vector.broadcast %cst : f32 to vector<8x512xf32>
    %c0_i32 = arith.constant 0 : i32
    %3 = arith.addi %1, %c0_i32 : i32
    %4 = arith.index_cast %3 : i32 to index
    %c0 = arith.constant 0 : index
    %5 = vector.load %arg1[%4, %c0] : memref<1062x4xf32, #tpu.memory_space<vmem>>, vector<512x4xf32>
    %6 = arith.truncf %5 : vector<512x4xf32> to vector<512x4xbf16>
    %c0_0 = arith.constant 0 : index
    %c0_1 = arith.constant 0 : index
    %c0_2 = arith.constant 0 : index
    %7 = vector.load %arg2[%c0_0, %c0_1, %c0_2] : memref<9x8x4xbf16, #tpu.memory_space<vmem>>, vector<1x8x4xbf16>
    %8 = vector.shape_cast %7 : vector<1x8x4xbf16> to vector<8x4xbf16>
    %cst_3 = arith.constant dense<0.000000e+00> : vector<8x512xf32>
    %9 = tpu.matmul %8, %6, %cst_3 {dimension_numbers = #tpu.dot_dimension_numbers<[1], [1], [0], [0], [0, 0, 1, 0], [], []>} : vector<8x4xbf16>, vector<512x4xbf16>, vector<8x512xf32> -> vector<8x512xf32>
    %10 = arith.addf %2, %9 : vector<8x512xf32>
    %c1_i32 = arith.constant 1 : i32
    %11 = arith.addi %1, %c1_i32 : i32
    %12 = arith.index_cast %11 : i32 to index
    %c0_4 = arith.constant 0 : index
    %13 = vector.load %arg1[%12, %c0_4] : memref<1062x4xf32, #tpu.memory_space<vmem>>, vector<512x4xf32>
    %14 = arith.truncf %13 : vector<512x4xf32> to vector<512x4xbf16>
    %c1 = arith.constant 1 : index
    %c0_5 = arith.constant 0 : index
    %c0_6 = arith.constant 0 : index
    %15 = vector.load %arg2[%c1, %c0_5, %c0_6] : memref<9x8x4xbf16, #tpu.memory_space<vmem>>, vector<1x8x4xbf16>
    %16 = vector.shape_cast %15 : vector<1x8x4xbf16> to vector<8x4xbf16>
    %cst_7 = arith.constant dense<0.000000e+00> : vector<8x512xf32>
    %17 = tpu.matmul %16, %14, %cst_7 {dimension_numbers = #tpu.dot_dimension_numbers<[1], [1], [0], [0], [0, 0, 1, 0], [], []>} : vector<8x4xbf16>, vector<512x4xbf16>, vector<8x512xf32> -> vector<8x512xf32>
    %18 = arith.addf %10, %17 : vector<8x512xf32>
    %c2_i32 = arith.constant 2 : i32
    %19 = arith.addi %1, %c2_i32 : i32
    %20 = arith.index_cast %19 : i32 to index
    %c0_8 = arith.constant 0 : index
    %21 = vector.load %arg1[%20, %c0_8] : memref<1062x4xf32, #tpu.memory_space<vmem>>, vector<512x4xf32>
    %22 = arith.truncf %21 : vector<512x4xf32> to vector<512x4xbf16>
    %c2 = arith.constant 2 : index
    %c0_9 = arith.constant 0 : index
    %c0_10 = arith.constant 0 : index
    %23 = vector.load %arg2[%c2, %c0_9, %c0_10] : memref<9x8x4xbf16, #tpu.memory_space<vmem>>, vector<1x8x4xbf16>
    %24 = vector.shape_cast %23 : vector<1x8x4xbf16> to vector<8x4xbf16>
    %cst_11 = arith.constant dense<0.000000e+00> : vector<8x512xf32>
    %25 = tpu.matmul %24, %22, %cst_11 {dimension_numbers = #tpu.dot_dimension_numbers<[1], [1], [0], [0], [0, 0, 1, 0], [], []>} : vector<8x4xbf16>, vector<512x4xbf16>, vector<8x512xf32> -> vector<8x512xf32>
    %26 = arith.addf %18, %25 : vector<8x512xf32>
    %c18_i32 = arith.constant 18 : i32
    %27 = arith.addi %1, %c18_i32 : i32
    %28 = arith.index_cast %27 : i32 to index
    %c0_12 = arith.constant 0 : index
    %29 = vector.load %arg1[%28, %c0_12] : memref<1062x4xf32, #tpu.memory_space<vmem>>, vector<512x4xf32>
    %30 = arith.truncf %29 : vector<512x4xf32> to vector<512x4xbf16>
    %c3 = arith.constant 3 : index
    %c0_13 = arith.constant 0 : index
    %c0_14 = arith.constant 0 : index
    %31 = vector.load %arg2[%c3, %c0_13, %c0_14] : memref<9x8x4xbf16, #tpu.memory_space<vmem>>, vector<1x8x4xbf16>
    %32 = vector.shape_cast %31 : vector<1x8x4xbf16> to vector<8x4xbf16>
    %cst_15 = arith.constant dense<0.000000e+00> : vector<8x512xf32>
    %33 = tpu.matmul %32, %30, %cst_15 {dimension_numbers = #tpu.dot_dimension_numbers<[1], [1], [0], [0], [0, 0, 1, 0], [], []>} : vector<8x4xbf16>, vector<512x4xbf16>, vector<8x512xf32> -> vector<8x512xf32>
    %34 = arith.addf %26, %33 : vector<8x512xf32>
    %c19_i32 = arith.constant 19 : i32
    %35 = arith.addi %1, %c19_i32 : i32
    %36 = arith.index_cast %35 : i32 to index
    %c0_16 = arith.constant 0 : index
    %37 = vector.load %arg1[%36, %c0_16] : memref<1062x4xf32, #tpu.memory_space<vmem>>, vector<512x4xf32>
    %38 = arith.truncf %37 : vector<512x4xf32> to vector<512x4xbf16>
    %c4 = arith.constant 4 : index
    %c0_17 = arith.constant 0 : index
    %c0_18 = arith.constant 0 : index
    %39 = vector.load %arg2[%c4, %c0_17, %c0_18] : memref<9x8x4xbf16, #tpu.memory_space<vmem>>, vector<1x8x4xbf16>
    %40 = vector.shape_cast %39 : vector<1x8x4xbf16> to vector<8x4xbf16>
    %cst_19 = arith.constant dense<0.000000e+00> : vector<8x512xf32>
    %41 = tpu.matmul %40, %38, %cst_19 {dimension_numbers = #tpu.dot_dimension_numbers<[1], [1], [0], [0], [0, 0, 1, 0], [], []>} : vector<8x4xbf16>, vector<512x4xbf16>, vector<8x512xf32> -> vector<8x512xf32>
    %42 = arith.addf %34, %41 : vector<8x512xf32>
    %c20_i32 = arith.constant 20 : i32
    %43 = arith.addi %1, %c20_i32 : i32
    %44 = arith.index_cast %43 : i32 to index
    %c0_20 = arith.constant 0 : index
    %45 = vector.load %arg1[%44, %c0_20] : memref<1062x4xf32, #tpu.memory_space<vmem>>, vector<512x4xf32>
    %46 = arith.truncf %45 : vector<512x4xf32> to vector<512x4xbf16>
    %c5 = arith.constant 5 : index
    %c0_21 = arith.constant 0 : index
    %c0_22 = arith.constant 0 : index
    %47 = vector.load %arg2[%c5, %c0_21, %c0_22] : memref<9x8x4xbf16, #tpu.memory_space<vmem>>, vector<1x8x4xbf16>
    %48 = vector.shape_cast %47 : vector<1x8x4xbf16> to vector<8x4xbf16>
    %cst_23 = arith.constant dense<0.000000e+00> : vector<8x512xf32>
    %49 = tpu.matmul %48, %46, %cst_23 {dimension_numbers = #tpu.dot_dimension_numbers<[1], [1], [0], [0], [0, 0, 1, 0], [], []>} : vector<8x4xbf16>, vector<512x4xbf16>, vector<8x512xf32> -> vector<8x512xf32>
    %50 = arith.addf %42, %49 : vector<8x512xf32>
    %c36_i32 = arith.constant 36 : i32
    %51 = arith.addi %1, %c36_i32 : i32
    %52 = arith.index_cast %51 : i32 to index
    %c0_24 = arith.constant 0 : index
    %53 = vector.load %arg1[%52, %c0_24] : memref<1062x4xf32, #tpu.memory_space<vmem>>, vector<512x4xf32>
    %54 = arith.truncf %53 : vector<512x4xf32> to vector<512x4xbf16>
    %c6 = arith.constant 6 : index
    %c0_25 = arith.constant 0 : index
    %c0_26 = arith.constant 0 : index
    %55 = vector.load %arg2[%c6, %c0_25, %c0_26] : memref<9x8x4xbf16, #tpu.memory_space<vmem>>, vector<1x8x4xbf16>
    %56 = vector.shape_cast %55 : vector<1x8x4xbf16> to vector<8x4xbf16>
    %cst_27 = arith.constant dense<0.000000e+00> : vector<8x512xf32>
    %57 = tpu.matmul %56, %54, %cst_27 {dimension_numbers = #tpu.dot_dimension_numbers<[1], [1], [0], [0], [0, 0, 1, 0], [], []>} : vector<8x4xbf16>, vector<512x4xbf16>, vector<8x512xf32> -> vector<8x512xf32>
    %58 = arith.addf %50, %57 : vector<8x512xf32>
    %c37_i32 = arith.constant 37 : i32
    %59 = arith.addi %1, %c37_i32 : i32
    %60 = arith.index_cast %59 : i32 to index
    %c0_28 = arith.constant 0 : index
    %61 = vector.load %arg1[%60, %c0_28] : memref<1062x4xf32, #tpu.memory_space<vmem>>, vector<512x4xf32>
    %62 = arith.truncf %61 : vector<512x4xf32> to vector<512x4xbf16>
    %c7 = arith.constant 7 : index
    %c0_29 = arith.constant 0 : index
    %c0_30 = arith.constant 0 : index
    %63 = vector.load %arg2[%c7, %c0_29, %c0_30] : memref<9x8x4xbf16, #tpu.memory_space<vmem>>, vector<1x8x4xbf16>
    %64 = vector.shape_cast %63 : vector<1x8x4xbf16> to vector<8x4xbf16>
    %cst_31 = arith.constant dense<0.000000e+00> : vector<8x512xf32>
    %65 = tpu.matmul %64, %62, %cst_31 {dimension_numbers = #tpu.dot_dimension_numbers<[1], [1], [0], [0], [0, 0, 1, 0], [], []>} : vector<8x4xbf16>, vector<512x4xbf16>, vector<8x512xf32> -> vector<8x512xf32>
    %66 = arith.addf %58, %65 : vector<8x512xf32>
    %c38_i32 = arith.constant 38 : i32
    %67 = arith.addi %1, %c38_i32 : i32
    %68 = arith.index_cast %67 : i32 to index
    %c0_32 = arith.constant 0 : index
    %69 = vector.load %arg1[%68, %c0_32] : memref<1062x4xf32, #tpu.memory_space<vmem>>, vector<512x4xf32>
    %70 = arith.truncf %69 : vector<512x4xf32> to vector<512x4xbf16>
    %c8 = arith.constant 8 : index
    %c0_33 = arith.constant 0 : index
    %c0_34 = arith.constant 0 : index
    %71 = vector.load %arg2[%c8, %c0_33, %c0_34] : memref<9x8x4xbf16, #tpu.memory_space<vmem>>, vector<1x8x4xbf16>
    %72 = vector.shape_cast %71 : vector<1x8x4xbf16> to vector<8x4xbf16>
    %cst_35 = arith.constant dense<0.000000e+00> : vector<8x512xf32>
    %73 = tpu.matmul %72, %70, %cst_35 {dimension_numbers = #tpu.dot_dimension_numbers<[1], [1], [0], [0], [0, 0, 1, 0], [], []>} : vector<8x4xbf16>, vector<512x4xbf16>, vector<8x512xf32> -> vector<8x512xf32>
    %74 = arith.addf %66, %73 : vector<8x512xf32>
    %75 = arith.index_cast %arg0 : i32 to index
    %c0_36 = arith.constant 0 : index
    %c0_37 = arith.constant 0 : index
    %76 = vector.load %arg6[%75, %c0_36, %c0_37] : memref<2x8x512xf32, #tpu.memory_space<vmem>>, vector<1x8x512xf32>
    %77 = vector.shape_cast %76 : vector<1x8x512xf32> to vector<8x512xf32>
    %78 = vector.shape_cast %74 : vector<8x512xf32> to vector<1x8x512xf32>
    tpu.vector_store %arg6[%75, %c0_36, %c0_37], %78 {strides = array<i32>} : memref<2x8x512xf32, #tpu.memory_space<vmem>>, vector<1x8x512xf32>,
    %c1_i32_38 = arith.constant 1 : i32
    %79 = arith.cmpi eq, %arg0, %c1_i32_38 : i32
    %80 = arith.extui %79 : i1 to i32
    %c0_i32_39 = arith.constant 0 : i32
    %81 = arith.cmpi ne, %80, %c0_i32_39 : i32
    scf.if %81 {
      %c0_40 = arith.constant 0 : index
      %c0_41 = arith.constant 0 : index
      %c0_42 = arith.constant 0 : index
      %82 = vector.load %arg6[%c0_40, %c0_41, %c0_42] : memref<2x8x512xf32, #tpu.memory_space<vmem>>, vector<2x8x512xf32>
      %c0_43 = arith.constant 0 : index
      %c0_44 = arith.constant 0 : index
      %c0_45 = arith.constant 0 : index
      %83 = vector.load %arg5[%c0_43, %c0_44, %c0_45] : memref<2x1x512xf32, #tpu.memory_space<vmem>>, vector<2x1x512xf32>
      %84 = vector.broadcast %83 : vector<2x1x512xf32> to vector<2x8x512xf32>
      %85 = arith.mulf %82, %84 : vector<2x8x512xf32>
      %cst_46 = arith.constant dense<0.000000e+00> : vector<2x8xf32>
      %86 = vector.multi_reduction <add>, %85, %cst_46 [2] : vector<2x8x512xf32> to vector<2x8xf32>
      %87 = vector.shape_cast %86 : vector<2x8xf32> to vector<2x8x1xf32>
      %cst_47 = arith.constant dense<0.000000e+00> : vector<8x1xf32>
      %88 = vector.multi_reduction <add>, %87, %cst_47 [0] : vector<2x8x1xf32> to vector<8x1xf32>
      %89 = vector.shape_cast %88 : vector<8x1xf32> to vector<1x8x1xf32>
      %cst_48 = arith.constant 5.120000e+02 : f32
      %90 = vector.broadcast %cst_48 : f32 to vector<1x8x1xf32>
      %91 = arith.divf %89, %90 : vector<1x8x1xf32>
      %92 = vector.broadcast %91 : vector<1x8x1xf32> to vector<2x8x512xf32>
      %93 = arith.subf %82, %92 : vector<2x8x512xf32>
      %94 = vector.broadcast %83 : vector<2x1x512xf32> to vector<2x8x512xf32>
      %95 = arith.mulf %93, %94 : vector<2x8x512xf32>
      %96 = arith.mulf %95, %95 : vector<2x8x512xf32>
      %cst_49 = arith.constant dense<0.000000e+00> : vector<2x8xf32>
      %97 = vector.multi_reduction <add>, %96, %cst_49 [2] : vector<2x8x512xf32> to vector<2x8xf32>
      %98 = vector.shape_cast %97 : vector<2x8xf32> to vector<2x8x1xf32>
      %cst_50 = arith.constant dense<0.000000e+00> : vector<8x1xf32>
      %99 = vector.multi_reduction <add>, %98, %cst_50 [0] : vector<2x8x1xf32> to vector<8x1xf32>
      %100 = vector.shape_cast %99 : vector<8x1xf32> to vector<1x8x1xf32>
      %cst_51 = arith.constant 5.120000e+02 : f32
      %101 = vector.broadcast %cst_51 : f32 to vector<1x8x1xf32>
      %102 = arith.divf %100, %101 : vector<1x8x1xf32>
      %103 = vector.broadcast %91 : vector<1x8x1xf32> to vector<2x8x512xf32>
      %104 = arith.subf %82, %103 : vector<2x8x512xf32>
      %cst_52 = arith.constant 9.99999974E-6 : f32
      %105 = vector.broadcast %cst_52 : f32 to vector<1x8x1xf32>
      %106 = arith.addf %102, %105 : vector<1x8x1xf32>
      %107 = math.rsqrt %106 : vector<1x8x1xf32>
      %108 = vector.broadcast %107 : vector<1x8x1xf32> to vector<2x8x512xf32>
      %109 = arith.mulf %104, %108 : vector<2x8x512xf32>
      %c0_53 = arith.constant 0 : index
      %c0_54 = arith.constant 0 : index
      %c0_55 = arith.constant 0 : index
      %110 = vector.load %arg3[%c0_53, %c0_54, %c0_55] : memref<1x8x1xf32, #tpu.memory_space<vmem>>, vector<1x8x1xf32>
      %111 = vector.broadcast %110 : vector<1x8x1xf32> to vector<2x8x512xf32>
      %112 = arith.mulf %109, %111 : vector<2x8x512xf32>
      %c0_56 = arith.constant 0 : index
      %c0_57 = arith.constant 0 : index
      %c0_58 = arith.constant 0 : index
      %113 = vector.load %arg4[%c0_56, %c0_57, %c0_58] : memref<1x8x1xf32, #tpu.memory_space<vmem>>, vector<1x8x1xf32>
      %114 = vector.broadcast %113 : vector<1x8x1xf32> to vector<2x8x512xf32>
      %115 = arith.addf %112, %114 : vector<2x8x512xf32>
      %c0_59 = arith.constant 0 : index
      %c0_60 = arith.constant 0 : index
      %c0_61 = arith.constant 0 : index
      %116 = vector.load %arg6[%c0_59, %c0_60, %c0_61] : memref<2x8x512xf32, #tpu.memory_space<vmem>>, vector<2x8x512xf32>
      tpu.vector_store %arg6[%c0_59, %c0_60, %c0_61], %115 {strides = array<i32>} : memref<2x8x512xf32, #tpu.memory_space<vmem>>, vector<2x8x512xf32>,
    } else {
    }
    return
  }
  func.func @transform_0(%arg0: i32) -> (i32, i32) {
    %c0_i32 = arith.constant 0 : i32
    %c0_i32_0 = arith.constant 0 : i32
    %c0_i32_1 = arith.constant 0 : i32
    return %c0_i32, %c0_i32_0 : i32, i32
  }
  func.func @transform_1(%arg0: i32) -> (i32, i32, i32) {
    %c0_i32 = arith.constant 0 : i32
    %c0_i32_0 = arith.constant 0 : i32
    %c0_i32_1 = arith.constant 0 : i32
    %c0_i32_2 = arith.constant 0 : i32
    return %c0_i32, %c0_i32_0, %c0_i32_1 : i32, i32, i32
  }
  func.func @transform_2(%arg0: i32) -> (i32, i32, i32) {
    %c0_i32 = arith.constant 0 : i32
    %c0_i32_0 = arith.constant 0 : i32
    %c0_i32_1 = arith.constant 0 : i32
    %c0_i32_2 = arith.constant 0 : i32
    return %c0_i32, %c0_i32_0, %c0_i32_1 : i32, i32, i32
  }
  func.func @transform_3(%arg0: i32) -> (i32, i32, i32) {
    %c0_i32 = arith.constant 0 : i32
    %c0_i32_0 = arith.constant 0 : i32
    %c0_i32_1 = arith.constant 0 : i32
    %c0_i32_2 = arith.constant 0 : i32
    return %c0_i32, %c0_i32_0, %c0_i32_1 : i32, i32, i32
  }
  func.func @transform_4(%arg0: i32) -> (i32, i32, i32) {
    %c0_i32 = arith.constant 0 : i32
    %c0_i32_0 = arith.constant 0 : i32
    %c0_i32_1 = arith.constant 0 : i32
    %c0_i32_2 = arith.constant 0 : i32
    return %c0_i32, %c0_i32_0, %c0_i32_1 : i32, i32, i32
  }
  func.func @transform_5(%arg0: i32) -> (i32, i32, i32) {
    %c0_i32 = arith.constant 0 : i32
    %c0_i32_0 = arith.constant 0 : i32
    %c0_i32_1 = arith.constant 0 : i32
    %c0_i32_2 = arith.constant 0 : i32
    return %c0_i32, %c0_i32_0, %c0_i32_1 : i32, i32, i32
  }
}

module attributes {stable_mosaic.version = 11 : i64} {
  func.func @_conv_bn_kernel(%arg0: i32, %arg1: memref<1062x8xf32, #tpu.memory_space<vmem>>, %arg2: memref<9x8x8xbf16, #tpu.memory_space<vmem>>, %arg3: memref<1x8x1xf32, #tpu.memory_space<vmem>>, %arg4: memref<1x8x1xf32, #tpu.memory_space<vmem>>, %arg5: memref<2x1x512xf32, #tpu.memory_space<vmem>>, %arg6: memref<2x8x512xf32, #tpu.memory_space<vmem>>) attributes {dimension_semantics = [#tpu.dimension_semantics<arbitrary>], iteration_bounds = array<i64: 2>, scalar_prefetch = 0 : i64, scratch_operands = 0 : i64, tpu.core_type = #tpu.core_type<tc>, window_params = [{pipeline_mode = #tpu.pipeline_mode<synchronous>, transform_indices = @transform_0, window_bounds = array<i64: 1062, 8>}, {pipeline_mode = #tpu.pipeline_mode<synchronous>, transform_indices = @transform_1, window_bounds = array<i64: 9, 8, 8>}, {pipeline_mode = #tpu.pipeline_mode<synchronous>, transform_indices = @transform_2, window_bounds = array<i64: 1, 8, 1>}, {pipeline_mode = #tpu.pipeline_mode<synchronous>, transform_indices = @transform_3, window_bounds = array<i64: 1, 8, 1>}, {pipeline_mode = #tpu.pipeline_mode<synchronous>, transform_indices = @transform_4, window_bounds = array<i64: 2, 1, 512>}, {pipeline_mode = #tpu.pipeline_mode<synchronous>, transform_indices = @transform_5, window_bounds = array<i64: 2, 8, 512>}]} {
    %c512_i32 = arith.constant 512 : i32
    %0 = arith.muli %arg0, %c512_i32 : i32
    %1 = tpu.assume_multiple %0, 128 : i32
    %cst = arith.constant 0.000000e+00 : f32
    %2 = vector.broadcast %cst : f32 to vector<8x512xf32>
    %c0_i32 = arith.constant 0 : i32
    %3 = arith.addi %1, %c0_i32 : i32
    %4 = arith.index_cast %3 : i32 to index
    %c0 = arith.constant 0 : index
    %5 = vector.load %arg1[%4, %c0] : memref<1062x8xf32, #tpu.memory_space<vmem>>, vector<512x8xf32>
    %6 = arith.truncf %5 : vector<512x8xf32> to vector<512x8xbf16>
    %c0_0 = arith.constant 0 : index
    %c0_1 = arith.constant 0 : index
    %c0_2 = arith.constant 0 : index
    %7 = vector.load %arg2[%c0_0, %c0_1, %c0_2] : memref<9x8x8xbf16, #tpu.memory_space<vmem>>, vector<1x8x8xbf16>
    %8 = vector.shape_cast %7 : vector<1x8x8xbf16> to vector<8x8xbf16>
    %cst_3 = arith.constant dense<0.000000e+00> : vector<8x512xf32>
    %9 = tpu.matmul %8, %6, %cst_3 {dimension_numbers = #tpu.dot_dimension_numbers<[1], [1], [0], [0], [0, 0, 1, 0], [], []>} : vector<8x8xbf16>, vector<512x8xbf16>, vector<8x512xf32> -> vector<8x512xf32>
    %10 = arith.addf %2, %9 : vector<8x512xf32>
    %c1_i32 = arith.constant 1 : i32
    %11 = arith.addi %1, %c1_i32 : i32
    %12 = arith.index_cast %11 : i32 to index
    %c0_4 = arith.constant 0 : index
    %13 = vector.load %arg1[%12, %c0_4] : memref<1062x8xf32, #tpu.memory_space<vmem>>, vector<512x8xf32>
    %14 = arith.truncf %13 : vector<512x8xf32> to vector<512x8xbf16>
    %c1 = arith.constant 1 : index
    %c0_5 = arith.constant 0 : index
    %c0_6 = arith.constant 0 : index
    %15 = vector.load %arg2[%c1, %c0_5, %c0_6] : memref<9x8x8xbf16, #tpu.memory_space<vmem>>, vector<1x8x8xbf16>
    %16 = vector.shape_cast %15 : vector<1x8x8xbf16> to vector<8x8xbf16>
    %cst_7 = arith.constant dense<0.000000e+00> : vector<8x512xf32>
    %17 = tpu.matmul %16, %14, %cst_7 {dimension_numbers = #tpu.dot_dimension_numbers<[1], [1], [0], [0], [0, 0, 1, 0], [], []>} : vector<8x8xbf16>, vector<512x8xbf16>, vector<8x512xf32> -> vector<8x512xf32>
    %18 = arith.addf %10, %17 : vector<8x512xf32>
    %c2_i32 = arith.constant 2 : i32
    %19 = arith.addi %1, %c2_i32 : i32
    %20 = arith.index_cast %19 : i32 to index
    %c0_8 = arith.constant 0 : index
    %21 = vector.load %arg1[%20, %c0_8] : memref<1062x8xf32, #tpu.memory_space<vmem>>, vector<512x8xf32>
    %22 = arith.truncf %21 : vector<512x8xf32> to vector<512x8xbf16>
    %c2 = arith.constant 2 : index
    %c0_9 = arith.constant 0 : index
    %c0_10 = arith.constant 0 : index
    %23 = vector.load %arg2[%c2, %c0_9, %c0_10] : memref<9x8x8xbf16, #tpu.memory_space<vmem>>, vector<1x8x8xbf16>
    %24 = vector.shape_cast %23 : vector<1x8x8xbf16> to vector<8x8xbf16>
    %cst_11 = arith.constant dense<0.000000e+00> : vector<8x512xf32>
    %25 = tpu.matmul %24, %22, %cst_11 {dimension_numbers = #tpu.dot_dimension_numbers<[1], [1], [0], [0], [0, 0, 1, 0], [], []>} : vector<8x8xbf16>, vector<512x8xbf16>, vector<8x512xf32> -> vector<8x512xf32>
    %26 = arith.addf %18, %25 : vector<8x512xf32>
    %c18_i32 = arith.constant 18 : i32
    %27 = arith.addi %1, %c18_i32 : i32
    %28 = arith.index_cast %27 : i32 to index
    %c0_12 = arith.constant 0 : index
    %29 = vector.load %arg1[%28, %c0_12] : memref<1062x8xf32, #tpu.memory_space<vmem>>, vector<512x8xf32>
    %30 = arith.truncf %29 : vector<512x8xf32> to vector<512x8xbf16>
    %c3 = arith.constant 3 : index
    %c0_13 = arith.constant 0 : index
    %c0_14 = arith.constant 0 : index
    %31 = vector.load %arg2[%c3, %c0_13, %c0_14] : memref<9x8x8xbf16, #tpu.memory_space<vmem>>, vector<1x8x8xbf16>
    %32 = vector.shape_cast %31 : vector<1x8x8xbf16> to vector<8x8xbf16>
    %cst_15 = arith.constant dense<0.000000e+00> : vector<8x512xf32>
    %33 = tpu.matmul %32, %30, %cst_15 {dimension_numbers = #tpu.dot_dimension_numbers<[1], [1], [0], [0], [0, 0, 1, 0], [], []>} : vector<8x8xbf16>, vector<512x8xbf16>, vector<8x512xf32> -> vector<8x512xf32>
    %34 = arith.addf %26, %33 : vector<8x512xf32>
    %c19_i32 = arith.constant 19 : i32
    %35 = arith.addi %1, %c19_i32 : i32
    %36 = arith.index_cast %35 : i32 to index
    %c0_16 = arith.constant 0 : index
    %37 = vector.load %arg1[%36, %c0_16] : memref<1062x8xf32, #tpu.memory_space<vmem>>, vector<512x8xf32>
    %38 = arith.truncf %37 : vector<512x8xf32> to vector<512x8xbf16>
    %c4 = arith.constant 4 : index
    %c0_17 = arith.constant 0 : index
    %c0_18 = arith.constant 0 : index
    %39 = vector.load %arg2[%c4, %c0_17, %c0_18] : memref<9x8x8xbf16, #tpu.memory_space<vmem>>, vector<1x8x8xbf16>
    %40 = vector.shape_cast %39 : vector<1x8x8xbf16> to vector<8x8xbf16>
    %cst_19 = arith.constant dense<0.000000e+00> : vector<8x512xf32>
    %41 = tpu.matmul %40, %38, %cst_19 {dimension_numbers = #tpu.dot_dimension_numbers<[1], [1], [0], [0], [0, 0, 1, 0], [], []>} : vector<8x8xbf16>, vector<512x8xbf16>, vector<8x512xf32> -> vector<8x512xf32>
    %42 = arith.addf %34, %41 : vector<8x512xf32>
    %c20_i32 = arith.constant 20 : i32
    %43 = arith.addi %1, %c20_i32 : i32
    %44 = arith.index_cast %43 : i32 to index
    %c0_20 = arith.constant 0 : index
    %45 = vector.load %arg1[%44, %c0_20] : memref<1062x8xf32, #tpu.memory_space<vmem>>, vector<512x8xf32>
    %46 = arith.truncf %45 : vector<512x8xf32> to vector<512x8xbf16>
    %c5 = arith.constant 5 : index
    %c0_21 = arith.constant 0 : index
    %c0_22 = arith.constant 0 : index
    %47 = vector.load %arg2[%c5, %c0_21, %c0_22] : memref<9x8x8xbf16, #tpu.memory_space<vmem>>, vector<1x8x8xbf16>
    %48 = vector.shape_cast %47 : vector<1x8x8xbf16> to vector<8x8xbf16>
    %cst_23 = arith.constant dense<0.000000e+00> : vector<8x512xf32>
    %49 = tpu.matmul %48, %46, %cst_23 {dimension_numbers = #tpu.dot_dimension_numbers<[1], [1], [0], [0], [0, 0, 1, 0], [], []>} : vector<8x8xbf16>, vector<512x8xbf16>, vector<8x512xf32> -> vector<8x512xf32>
    %50 = arith.addf %42, %49 : vector<8x512xf32>
    %c36_i32 = arith.constant 36 : i32
    %51 = arith.addi %1, %c36_i32 : i32
    %52 = arith.index_cast %51 : i32 to index
    %c0_24 = arith.constant 0 : index
    %53 = vector.load %arg1[%52, %c0_24] : memref<1062x8xf32, #tpu.memory_space<vmem>>, vector<512x8xf32>
    %54 = arith.truncf %53 : vector<512x8xf32> to vector<512x8xbf16>
    %c6 = arith.constant 6 : index
    %c0_25 = arith.constant 0 : index
    %c0_26 = arith.constant 0 : index
    %55 = vector.load %arg2[%c6, %c0_25, %c0_26] : memref<9x8x8xbf16, #tpu.memory_space<vmem>>, vector<1x8x8xbf16>
    %56 = vector.shape_cast %55 : vector<1x8x8xbf16> to vector<8x8xbf16>
    %cst_27 = arith.constant dense<0.000000e+00> : vector<8x512xf32>
    %57 = tpu.matmul %56, %54, %cst_27 {dimension_numbers = #tpu.dot_dimension_numbers<[1], [1], [0], [0], [0, 0, 1, 0], [], []>} : vector<8x8xbf16>, vector<512x8xbf16>, vector<8x512xf32> -> vector<8x512xf32>
    %58 = arith.addf %50, %57 : vector<8x512xf32>
    %c37_i32 = arith.constant 37 : i32
    %59 = arith.addi %1, %c37_i32 : i32
    %60 = arith.index_cast %59 : i32 to index
    %c0_28 = arith.constant 0 : index
    %61 = vector.load %arg1[%60, %c0_28] : memref<1062x8xf32, #tpu.memory_space<vmem>>, vector<512x8xf32>
    %62 = arith.truncf %61 : vector<512x8xf32> to vector<512x8xbf16>
    %c7 = arith.constant 7 : index
    %c0_29 = arith.constant 0 : index
    %c0_30 = arith.constant 0 : index
    %63 = vector.load %arg2[%c7, %c0_29, %c0_30] : memref<9x8x8xbf16, #tpu.memory_space<vmem>>, vector<1x8x8xbf16>
    %64 = vector.shape_cast %63 : vector<1x8x8xbf16> to vector<8x8xbf16>
    %cst_31 = arith.constant dense<0.000000e+00> : vector<8x512xf32>
    %65 = tpu.matmul %64, %62, %cst_31 {dimension_numbers = #tpu.dot_dimension_numbers<[1], [1], [0], [0], [0, 0, 1, 0], [], []>} : vector<8x8xbf16>, vector<512x8xbf16>, vector<8x512xf32> -> vector<8x512xf32>
    %66 = arith.addf %58, %65 : vector<8x512xf32>
    %c38_i32 = arith.constant 38 : i32
    %67 = arith.addi %1, %c38_i32 : i32
    %68 = arith.index_cast %67 : i32 to index
    %c0_32 = arith.constant 0 : index
    %69 = vector.load %arg1[%68, %c0_32] : memref<1062x8xf32, #tpu.memory_space<vmem>>, vector<512x8xf32>
    %70 = arith.truncf %69 : vector<512x8xf32> to vector<512x8xbf16>
    %c8 = arith.constant 8 : index
    %c0_33 = arith.constant 0 : index
    %c0_34 = arith.constant 0 : index
    %71 = vector.load %arg2[%c8, %c0_33, %c0_34] : memref<9x8x8xbf16, #tpu.memory_space<vmem>>, vector<1x8x8xbf16>
    %72 = vector.shape_cast %71 : vector<1x8x8xbf16> to vector<8x8xbf16>
    %cst_35 = arith.constant dense<0.000000e+00> : vector<8x512xf32>
    %73 = tpu.matmul %72, %70, %cst_35 {dimension_numbers = #tpu.dot_dimension_numbers<[1], [1], [0], [0], [0, 0, 1, 0], [], []>} : vector<8x8xbf16>, vector<512x8xbf16>, vector<8x512xf32> -> vector<8x512xf32>
    %74 = arith.addf %66, %73 : vector<8x512xf32>
    %75 = arith.index_cast %arg0 : i32 to index
    %c0_36 = arith.constant 0 : index
    %c0_37 = arith.constant 0 : index
    %76 = vector.load %arg6[%75, %c0_36, %c0_37] : memref<2x8x512xf32, #tpu.memory_space<vmem>>, vector<1x8x512xf32>
    %77 = vector.shape_cast %76 : vector<1x8x512xf32> to vector<8x512xf32>
    %78 = vector.shape_cast %74 : vector<8x512xf32> to vector<1x8x512xf32>
    tpu.vector_store %arg6[%75, %c0_36, %c0_37], %78 {strides = array<i32>} : memref<2x8x512xf32, #tpu.memory_space<vmem>>, vector<1x8x512xf32>,
    %c1_i32_38 = arith.constant 1 : i32
    %79 = arith.cmpi eq, %arg0, %c1_i32_38 : i32
    %80 = arith.extui %79 : i1 to i32
    %c0_i32_39 = arith.constant 0 : i32
    %81 = arith.cmpi ne, %80, %c0_i32_39 : i32
    scf.if %81 {
      %c0_40 = arith.constant 0 : index
      %c0_41 = arith.constant 0 : index
      %c0_42 = arith.constant 0 : index
      %82 = vector.load %arg6[%c0_40, %c0_41, %c0_42] : memref<2x8x512xf32, #tpu.memory_space<vmem>>, vector<2x8x512xf32>
      %c0_43 = arith.constant 0 : index
      %c0_44 = arith.constant 0 : index
      %c0_45 = arith.constant 0 : index
      %83 = vector.load %arg5[%c0_43, %c0_44, %c0_45] : memref<2x1x512xf32, #tpu.memory_space<vmem>>, vector<2x1x512xf32>
      %84 = vector.broadcast %83 : vector<2x1x512xf32> to vector<2x8x512xf32>
      %85 = arith.mulf %82, %84 : vector<2x8x512xf32>
      %cst_46 = arith.constant dense<0.000000e+00> : vector<2x8xf32>
      %86 = vector.multi_reduction <add>, %85, %cst_46 [2] : vector<2x8x512xf32> to vector<2x8xf32>
      %87 = vector.shape_cast %86 : vector<2x8xf32> to vector<2x8x1xf32>
      %cst_47 = arith.constant dense<0.000000e+00> : vector<8x1xf32>
      %88 = vector.multi_reduction <add>, %87, %cst_47 [0] : vector<2x8x1xf32> to vector<8x1xf32>
      %89 = vector.shape_cast %88 : vector<8x1xf32> to vector<1x8x1xf32>
      %cst_48 = arith.constant 1.280000e+02 : f32
      %90 = vector.broadcast %cst_48 : f32 to vector<1x8x1xf32>
      %91 = arith.divf %89, %90 : vector<1x8x1xf32>
      %92 = vector.broadcast %91 : vector<1x8x1xf32> to vector<2x8x512xf32>
      %93 = arith.subf %82, %92 : vector<2x8x512xf32>
      %94 = vector.broadcast %83 : vector<2x1x512xf32> to vector<2x8x512xf32>
      %95 = arith.mulf %93, %94 : vector<2x8x512xf32>
      %96 = arith.mulf %95, %95 : vector<2x8x512xf32>
      %cst_49 = arith.constant dense<0.000000e+00> : vector<2x8xf32>
      %97 = vector.multi_reduction <add>, %96, %cst_49 [2] : vector<2x8x512xf32> to vector<2x8xf32>
      %98 = vector.shape_cast %97 : vector<2x8xf32> to vector<2x8x1xf32>
      %cst_50 = arith.constant dense<0.000000e+00> : vector<8x1xf32>
      %99 = vector.multi_reduction <add>, %98, %cst_50 [0] : vector<2x8x1xf32> to vector<8x1xf32>
      %100 = vector.shape_cast %99 : vector<8x1xf32> to vector<1x8x1xf32>
      %cst_51 = arith.constant 1.280000e+02 : f32
      %101 = vector.broadcast %cst_51 : f32 to vector<1x8x1xf32>
      %102 = arith.divf %100, %101 : vector<1x8x1xf32>
      %103 = vector.broadcast %91 : vector<1x8x1xf32> to vector<2x8x512xf32>
      %104 = arith.subf %82, %103 : vector<2x8x512xf32>
      %cst_52 = arith.constant 9.99999974E-6 : f32
      %105 = vector.broadcast %cst_52 : f32 to vector<1x8x1xf32>
      %106 = arith.addf %102, %105 : vector<1x8x1xf32>
      %107 = math.rsqrt %106 : vector<1x8x1xf32>
      %108 = vector.broadcast %107 : vector<1x8x1xf32> to vector<2x8x512xf32>
      %109 = arith.mulf %104, %108 : vector<2x8x512xf32>
      %c0_53 = arith.constant 0 : index
      %c0_54 = arith.constant 0 : index
      %c0_55 = arith.constant 0 : index
      %110 = vector.load %arg3[%c0_53, %c0_54, %c0_55] : memref<1x8x1xf32, #tpu.memory_space<vmem>>, vector<1x8x1xf32>
      %111 = vector.broadcast %110 : vector<1x8x1xf32> to vector<2x8x512xf32>
      %112 = arith.mulf %109, %111 : vector<2x8x512xf32>
      %c0_56 = arith.constant 0 : index
      %c0_57 = arith.constant 0 : index
      %c0_58 = arith.constant 0 : index
      %113 = vector.load %arg4[%c0_56, %c0_57, %c0_58] : memref<1x8x1xf32, #tpu.memory_space<vmem>>, vector<1x8x1xf32>
      %114 = vector.broadcast %113 : vector<1x8x1xf32> to vector<2x8x512xf32>
      %115 = arith.addf %112, %114 : vector<2x8x512xf32>
      %cst_59 = arith.constant 0.000000e+00 : f32
      %116 = vector.broadcast %cst_59 : f32 to vector<2x8x512xf32>
      %117 = arith.maximumf %115, %116 : vector<2x8x512xf32>
      %c0_60 = arith.constant 0 : index
      %c0_61 = arith.constant 0 : index
      %c0_62 = arith.constant 0 : index
      %118 = vector.load %arg6[%c0_60, %c0_61, %c0_62] : memref<2x8x512xf32, #tpu.memory_space<vmem>>, vector<2x8x512xf32>
      tpu.vector_store %arg6[%c0_60, %c0_61, %c0_62], %117 {strides = array<i32>} : memref<2x8x512xf32, #tpu.memory_space<vmem>>, vector<2x8x512xf32>,
    } else {
    }
    return
  }
  func.func @transform_0(%arg0: i32) -> (i32, i32) {
    %c0_i32 = arith.constant 0 : i32
    %c0_i32_0 = arith.constant 0 : i32
    %c0_i32_1 = arith.constant 0 : i32
    return %c0_i32, %c0_i32_0 : i32, i32
  }
  func.func @transform_1(%arg0: i32) -> (i32, i32, i32) {
    %c0_i32 = arith.constant 0 : i32
    %c0_i32_0 = arith.constant 0 : i32
    %c0_i32_1 = arith.constant 0 : i32
    %c0_i32_2 = arith.constant 0 : i32
    return %c0_i32, %c0_i32_0, %c0_i32_1 : i32, i32, i32
  }
  func.func @transform_2(%arg0: i32) -> (i32, i32, i32) {
    %c0_i32 = arith.constant 0 : i32
    %c0_i32_0 = arith.constant 0 : i32
    %c0_i32_1 = arith.constant 0 : i32
    %c0_i32_2 = arith.constant 0 : i32
    return %c0_i32, %c0_i32_0, %c0_i32_1 : i32, i32, i32
  }
  func.func @transform_3(%arg0: i32) -> (i32, i32, i32) {
    %c0_i32 = arith.constant 0 : i32
    %c0_i32_0 = arith.constant 0 : i32
    %c0_i32_1 = arith.constant 0 : i32
    %c0_i32_2 = arith.constant 0 : i32
    return %c0_i32, %c0_i32_0, %c0_i32_1 : i32, i32, i32
  }
  func.func @transform_4(%arg0: i32) -> (i32, i32, i32) {
    %c0_i32 = arith.constant 0 : i32
    %c0_i32_0 = arith.constant 0 : i32
    %c0_i32_1 = arith.constant 0 : i32
    %c0_i32_2 = arith.constant 0 : i32
    return %c0_i32, %c0_i32_0, %c0_i32_1 : i32, i32, i32
  }
  func.func @transform_5(%arg0: i32) -> (i32, i32, i32) {
    %c0_i32 = arith.constant 0 : i32
    %c0_i32_0 = arith.constant 0 : i32
    %c0_i32_1 = arith.constant 0 : i32
    %c0_i32_2 = arith.constant 0 : i32
    return %c0_i32, %c0_i32_0, %c0_i32_1 : i32, i32, i32
  }
}

</mosaic_0001>

<bundles_post_ra>
// kernel: conv_block_forward.2
= control target key start
LH: loop header
LB: loop body
LE: loop exit
PB: predicated region body
PF: predicated region fallthrough
CT: control target
= control target key end

     0   :  { %s4098_s18 = smov 0   ;;  %s5179_s0 = inlined_call_operand.vmem [shape: f32[1062,4], index: 0, kind: input, shape index: {}]   ;;  %s5180_s1 = inlined_call_operand.vmem [shape: bf16[9,8,4], index: 1, kind: input, shape index: {}]   ;;  %s5181_s2 = inlined_call_operand.vmem [shape: f32[1,8,1], index: 2, kind: input, shape index: {}]   ;;  %s5182_s3 = inlined_call_operand.vmem [shape: f32[1,8,1], index: 3, kind: input, shape index: {}]   ;;  %s5183_s4 = inlined_call_operand.vmem [shape: f32[2,1,512], index: 4, kind: input, shape index: {}]   ;;  %s5184_s5 = inlined_call_operand.vmem [shape: f32[2,8,512], index: 5, kind: output, shape index: {}]  }
   0x1 LB: > { %s4104_s19 = sadd.s32 4294967295, %s4065_s18   ;;  %p2960_p0 = scmp.ge.s32.totalorder %s4065_s18, 1  ;;  %s4065_s18 = sphi %s4098_s18, %s15_s18  }
   0x2   : > { %p172_p1 = scmp.lt.s32.totalorder %s4065_s18, 3 }
   0x4   : > { %p173_p2 = pnand %p2960_p0, %p172_p1 }
   0x5   : > { %s2961_s20 = sshll.u32 (!%p173_p2), %s4104_s19, 9  ;;  %vm390_vm0 = vcmask (!%p173_p2), 31744   ;;  %v4112_v0 = vld [vmem:[%s5180_s1 + $0x4] sm:$0xf] (!%p173_p2)  ;;  %s3513_s17 = sshll.u32 (!%p173_p2), %s4104_s19, 5 }
   0x6   : > { %176 = sbr.rel (%p173_p2) target bundleno = 1153 (0x481), region = 40  ;;  %s4117_s25 = scalar_lea.vmem (!%p173_p2), %s5179_s0, %s2961_s20  ;;  %3530 = vmatprep.mubr.msk.bf16.mxu0 (!%p173_p2), %vm390_vm0, %v4112_v0  ;;  %3548 = vmatprep.mubr.msk.bf16.mxu1 (!%p173_p2), %vm390_vm0, %v4112_v0 }
   0x7   : > { %v2979_v1 = vld [vmem:[%s4117_s25 + $0x81] sm:$0xff] (!%p173_p2)  ;;  %v2980_v2 = vld [vmem:[%s4117_s25 + $0x89] sm:$0xff] (!%p173_p2)  ;;  %v2981_v12 = vld [vmem:[%s4117_s25 + $0x91] sm:$0xff] (!%p173_p2)  ;;  %s2750_s22 = scalar_lea.vmem (!%p173_p2), %s5184_s5, %s3513_s17  ;;  %p3510_p3 = scmp.ne.s32.totalorder (!%p173_p2), %s4104_s19, 1 }
   0x8   : > { %v3011_v3 = vld [vmem:[%s4117_s25 + $0x181] sm:$0xff] (!%p173_p2)  ;;  %v364_v4 = vpack.c.bf16 (!%p173_p2), %v2980_v2, %v2979_v1  ;;  %v3012_v5 = vld [vmem:[%s4117_s25 + $0x189] sm:$0xff] (!%p173_p2)  ;;  %v2982_v14 = vld [vmem:[%s4117_s25 + $0x99] sm:$0xff] (!%p173_p2) }
   0x9   : > { %v2963_v6 = vld [vmem:[%s4117_s25 + $0x1] sm:$0xff] (!%p173_p2)  ;;  %v2964_v7 = vld [vmem:[%s4117_s25 + $0x9] sm:$0xff] (!%p173_p2)  ;;  %v380_v8 = vpack.c.bf16 (!%p173_p2), %v3012_v5, %v3011_v3  ;;  %v3013_v15 = vld [vmem:[%s4117_s25 + $0x191] sm:$0xff] (!%p173_p2)  ;;  %v365_v18 = vpack.c.bf16 (!%p173_p2), %v2982_v14, %v2981_v12 }
   0xa   : > { %v356_v9 = vpack.c.bf16 (!%p173_p2), %v2964_v7, %v2963_v6  ;;  %v2995_v10 = vld [vmem:[%s4117_s25 + $0x101] sm:$0xff] (!%p173_p2)  ;;  %v2996_v11 = vld [vmem:[%s4117_s25 + $0x109] sm:$0xff] (!%p173_p2)  ;;  %3902 = vmatprep.subr.msk.bf16.mxu0 (!%p173_p2), %vm390_vm0, %v364_v4  ;;  %v3014_v16 = vld [vmem:[%s4117_s25 + $0x199] sm:$0xff] (!%p173_p2) }
   0xb   : > { %v372_v13 = vpack.c.bf16 (!%p173_p2), %v2996_v11, %v2995_v10  ;;  %3910 = vmatprep.subr.msk.bf16.mxu1 (!%p173_p2), %vm390_vm0, %v380_v8  ;;  %v381_v19 = vpack.c.bf16 (!%p173_p2), %v3014_v16, %v3013_v15  ;;  %v2965_v20 = vld [vmem:[%s4117_s25 + $0x11] sm:$0xff] (!%p173_p2)  ;;  %v2966_v21 = vld [vmem:[%s4117_s25 + $0x19] sm:$0xff] (!%p173_p2)  ;;  %v2983_v27 = vld [vmem:[%s4117_s25 + $0xa1] sm:$0xff] (!%p173_p2) }
   0xc   : > { %v395_v17 = vsel (!%p173_p2), %vm390_vm0, %v356_v9, 0  ;;  %v2997_v22 = vld [vmem:[%s4117_s25 + $0x111] sm:$0xff] (!%p173_p2)  ;;  %v2998_v24 = vld [vmem:[%s4117_s25 + $0x119] sm:$0xff] (!%p173_p2)  ;;  %v357_v25 = vpack.c.bf16 (!%p173_p2), %v2966_v21, %v2965_v20  ;;  %v2984_v28 = vld [vmem:[%s4117_s25 + $0xa9] sm:$0xff] (!%p173_p2) }
   0xd   : > { %3515 = vmatpush3.bf16.xpose.msra.mxu0 %v395_v17  ;;  %v443_v23 = vsel %vm390_vm0, %v372_v13, 0  ;;  %v373_v26 = vpack.c.bf16 %v2998_v24, %v2997_v22  ;;  %v3015_v29 = vld [vmem:[%s4117_s25 + $0x1a1] sm:$0xff]  ;;  %v3016_v30 = vld [vmem:[%s4117_s25 + $0x1a9] sm:$0xff]  ;;  %v366_v32 = vpack.c.bf16 %v2984_v28, %v2983_v27  ;;  %v2985_v41 = vld [vmem:[%s4117_s25 + $0xb1] sm:$0xff] }
   0xe   : > { %3533 = vmatpush3.bf16.xpose.msra.mxu1 %v443_v23  ;;  %3903 = vmatprep.subr.msk.bf16.mxu0 %vm390_vm0, %v365_v18  ;;  %v398_v31 = vsel %vm390_vm0, %v357_v25, 0  ;;  %v382_v34 = vpack.c.bf16 %v3016_v30, %v3015_v29  ;;  %v2967_v35 = vld [vmem:[%s4117_s25 + $0x21] sm:$0xff]  ;;  %v2968_v36 = vld [vmem:[%s4117_s25 + $0x29] sm:$0xff]  ;;  %v2986_v42 = vld [vmem:[%s4117_s25 + $0xb9] sm:$0xff] }
   0xf   : > { %3911 = vmatprep.subr.msk.bf16.mxu1 %vm390_vm0, %v381_v19  ;;  %v446_v33 = vsel %vm390_vm0, %v373_v26, 0  ;;  %v2999_v37 = vld [vmem:[%s4117_s25 + $0x121] sm:$0xff]  ;;  %v3000_v38 = vld [vmem:[%s4117_s25 + $0x129] sm:$0xff]  ;;  %v358_v39 = vpack.c.bf16 %v2968_v36, %v2967_v35  ;;  %v3017_v43 = vld [vmem:[%s4117_s25 + $0x1b1] sm:$0xff]  ;;  %v367_v46 = vpack.c.bf16 %v2986_v42, %v2985_v41 }
  0x10   : > { %v374_v40 = vpack.c.bf16 %v3000_v38, %v2999_v37  ;;  %v3018_v44 = vld [vmem:[%s4117_s25 + $0x1b9] sm:$0xff]  ;;  %v2969_v49 = vld [vmem:[%s4117_s25 + $0x31] sm:$0xff]  ;;  %v2987_v55 = vld [vmem:[%s4117_s25 + $0xc1] sm:$0xff] }
  0x11   : > { %v401_v45 = vsel %vm390_vm0, %v358_v39, 0  ;;  %v383_v48 = vpack.c.bf16 %v3018_v44, %v3017_v43  ;;  %v2970_v50 = vld [vmem:[%s4117_s25 + $0x39] sm:$0xff]  ;;  %v3001_v51 = vld [vmem:[%s4117_s25 + $0x131] sm:$0xff]  ;;  %v2988_v56 = vld [vmem:[%s4117_s25 + $0xc9] sm:$0xff] }
  0x12   : > { %v449_v47 = vsel %vm390_vm0, %v374_v40, 0  ;;  %v3002_v52 = vld [vmem:[%s4117_s25 + $0x139] sm:$0xff]  ;;  %v359_v53 = vpack.c.bf16 %v2970_v50, %v2969_v49  ;;  %v3019_v57 = vld [vmem:[%s4117_s25 + $0x1c1] sm:$0xff]  ;;  %v3020_v58 = vld [vmem:[%s4117_s25 + $0x1c9] sm:$0xff]  ;;  %v368_v60 = vpack.c.bf16 %v2988_v56, %v2987_v55 }
  0x13   : > { %v375_v54 = vpack.c.bf16 %v3002_v52, %v3001_v51  ;;  %v384_v62 = vpack.c.bf16 %v3020_v58, %v3019_v57  ;;  %v2971_v63 = vld [vmem:[%s4117_s25 + $0x41] sm:$0xff]  ;;  %v2972_v1 = vld [vmem:[%s4117_s25 + $0x49] sm:$0xff]  ;;  %v2989_v6 = vld [vmem:[%s4117_s25 + $0xd1] sm:$0xff] }
  0x14   : > { %v404_v59 = vsel %vm390_vm0, %v359_v53, 0  ;;  %v3003_v2 = vld [vmem:[%s4117_s25 + $0x141] sm:$0xff]  ;;  %v3004_v3 = vld [vmem:[%s4117_s25 + $0x149] sm:$0xff]  ;;  %v360_v4 = vpack.c.bf16 %v2972_v1, %v2971_v63  ;;  %v2990_v7 = vld [vmem:[%s4117_s25 + $0xd9] sm:$0xff] }
  0x15   : > { %3517 = vmatpush3.bf16.xpose.msra.mxu0 %v398_v31  ;;  %v452_v61 = vsel %vm390_vm0, %v375_v54, 0  ;;  %v376_v5 = vpack.c.bf16 %v3004_v3, %v3003_v2  ;;  %v3021_v8 = vld [vmem:[%s4117_s25 + $0x1d1] sm:$0xff]  ;;  %v3022_v9 = vld [vmem:[%s4117_s25 + $0x1d9] sm:$0xff]  ;;  %v369_v11 = vpack.c.bf16 %v2990_v7, %v2989_v6  ;;  %v2991_v20 = vld [vmem:[%s4117_s25 + $0xe1] sm:$0xff] }
  0x16   : > { %3535 = vmatpush3.bf16.xpose.msra.mxu1 %v446_v33  ;;  %3904 = vmatprep.subr.msk.bf16.mxu0 %vm390_vm0, %v366_v32  ;;  %v407_v10 = vsel %vm390_vm0, %v360_v4, 0  ;;  %v385_v13 = vpack.c.bf16 %v3022_v9, %v3021_v8  ;;  %v2973_v14 = vld [vmem:[%s4117_s25 + $0x51] sm:$0xff]  ;;  %v2974_v15 = vld [vmem:[%s4117_s25 + $0x59] sm:$0xff]  ;;  %v2992_v21 = vld [vmem:[%s4117_s25 + $0xe9] sm:$0xff] }
  0x17   : > { %3912 = vmatprep.subr.msk.bf16.mxu1 %vm390_vm0, %v382_v34  ;;  %v455_v12 = vsel %vm390_vm0, %v376_v5, 0  ;;  %v3005_v16 = vld [vmem:[%s4117_s25 + $0x151] sm:$0xff]  ;;  %v3006_v17 = vld [vmem:[%s4117_s25 + $0x159] sm:$0xff]  ;;  %v361_v18 = vpack.c.bf16 %v2974_v15, %v2973_v14  ;;  %v3023_v22 = vld [vmem:[%s4117_s25 + $0x1e1] sm:$0xff]  ;;  %v370_v25 = vpack.c.bf16 %v2992_v21, %v2991_v20 }
  0x18   : > { %v377_v19 = vpack.c.bf16 %v3006_v17, %v3005_v16  ;;  %v3024_v23 = vld [vmem:[%s4117_s25 + $0x1e9] sm:$0xff]  ;;  %v2975_v28 = vld [vmem:[%s4117_s25 + $0x61] sm:$0xff]  ;;  %v2993_v34 = vld [vmem:[%s4117_s25 + $0xf1] sm:$0xff] }
  0x19   : > { %v410_v24 = vsel %vm390_vm0, %v361_v18, 0  ;;  %v386_v27 = vpack.c.bf16 %v3024_v23, %v3023_v22  ;;  %v2976_v29 = vld [vmem:[%s4117_s25 + $0x69] sm:$0xff]  ;;  %v3007_v30 = vld [vmem:[%s4117_s25 + $0x161] sm:$0xff]  ;;  %v2994_v35 = vld [vmem:[%s4117_s25 + $0xf9] sm:$0xff] }
  0x1a   : > { %v458_v26 = vsel %vm390_vm0, %v377_v19, 0  ;;  %v3008_v31 = vld [vmem:[%s4117_s25 + $0x169] sm:$0xff]  ;;  %v362_v32 = vpack.c.bf16 %v2976_v29, %v2975_v28  ;;  %v3025_v36 = vld [vmem:[%s4117_s25 + $0x1f1] sm:$0xff]  ;;  %v3026_v37 = vld [vmem:[%s4117_s25 + $0x1f9] sm:$0xff]  ;;  %v371_v39 = vpack.c.bf16 %v2994_v35, %v2993_v34 }
  0x1b   : > { %v378_v33 = vpack.c.bf16 %v3008_v31, %v3007_v30  ;;  %v387_v41 = vpack.c.bf16 %v3026_v37, %v3025_v36  ;;  %v2977_v42 = vld [vmem:[%s4117_s25 + $0x71] sm:$0xff]  ;;  %v2978_v43 = vld [vmem:[%s4117_s25 + $0x79] sm:$0xff]  ;;  %v210_v49 = vld [vmem:[%s4117_s25 + $0x88] sm:$0xff] }
  0x1c   : > { %v413_v38 = vsel %vm390_vm0, %v362_v32, 0  ;;  %v3009_v44 = vld [vmem:[%s4117_s25 + $0x171] sm:$0xff]  ;;  %v241_v50 = vld [vmem:[%s4117_s25 + $0x180] sm:$0xff]  ;;  %v242_v51 = vld [vmem:[%s4117_s25 + $0x188] sm:$0xff] }
  0x1d   : > { %3519 = vmatpush3.bf16.xpose.msra.mxu0 %v401_v45  ;;  %v461_v40 = vsel %vm390_vm0, %v378_v33, 0  ;;  %v3010_v45 = vld [vmem:[%s4117_s25 + $0x179] sm:$0xff]  ;;  %v281_v55 = vpack.c.bf16 %v242_v51, %v241_v50  ;;  %v194_v57 = vld [vmem:[%s4117_s25 + $0x8] sm:$0xff]  ;;  %v243_v1 = vld [vmem:[%s4117_s25 + $0x190] sm:$0xff] }
  0x1e   : > { %3537 = vmatpush3.bf16.xpose.msra.mxu1 %v449_v47  ;;  %3905 = vmatprep.subr.msk.bf16.mxu0 %vm390_vm0, %v367_v46  ;;  %v363_v46 = vpack.c.bf16 %v2978_v43, %v2977_v42  ;;  %v379_v47 = vpack.c.bf16 %v3010_v45, %v3009_v44  ;;  %v193_v56 = vld [vmem:[%s4117_s25] sm:$0xff]  ;;  %v212_v63 = vld [vmem:[%s4117_s25 + $0x98] sm:$0xff]  ;;  %v195_v7 = vld [vmem:[%s4117_s25 + $0x10] sm:$0xff] }
  0x1f   : > { %3913 = vmatprep.subr.msk.bf16.mxu1 %vm390_vm0, %v383_v48  ;;  %v209_v48 = vld [vmem:[%s4117_s25 + $0x80] sm:$0xff]  ;;  %v244_v2 = vld [vmem:[%s4117_s25 + $0x198] sm:$0xff]  ;;  %v227_v9 = vld [vmem:[%s4117_s25 + $0x110] sm:$0xff] }
  0x20   : > { %v416_v52 = vsel %vm390_vm0, %v363_v46, 0  ;;  %v265_v53 = vpack.c.bf16 %v210_v49, %v209_v48  ;;  %v464_v54 = vsel %vm390_vm0, %v379_v47, 0  ;;  %v225_v58 = vld [vmem:[%s4117_s25 + $0x100] sm:$0xff]  ;;  %v282_v6 = vpack.c.bf16 %v244_v2, %v243_v1  ;;  %v196_v8 = vld [vmem:[%s4117_s25 + $0x18] sm:$0xff]  ;;  %v214_v15 = vld [vmem:[%s4117_s25 + $0xa8] sm:$0xff] }
  0x21   : > { %v213_v14 = vld [vmem:[%s4117_s25 + $0xa0] sm:$0xff]  ;;  %v246_v17 = vld [vmem:[%s4117_s25 + $0x1a8] sm:$0xff]  ;;  %v216_v28 = vld [vmem:[%s4117_s25 + $0xb8] sm:$0xff] }
  0x22   : > { %v245_v16 = vld [vmem:[%s4117_s25 + $0x1a0] sm:$0xff]  ;;  %v267_v18 = vpack.c.bf16 %v214_v15, %v213_v14  ;;  %v198_v22 = vld [vmem:[%s4117_s25 + $0x28] sm:$0xff]  ;;  %v247_v29 = vld [vmem:[%s4117_s25 + $0x1b0] sm:$0xff] }
  0x23   : > { %v283_v20 = vpack.c.bf16 %v246_v17, %v245_v16  ;;  %v197_v21 = vld [vmem:[%s4117_s25 + $0x20] sm:$0xff]  ;;  %v248_v30 = vld [vmem:[%s4117_s25 + $0x1b8] sm:$0xff]  ;;  %v199_v35 = vld [vmem:[%s4117_s25 + $0x30] sm:$0xff] }
  0x24   : > { %v229_v23 = vld [vmem:[%s4117_s25 + $0x120] sm:$0xff]  ;;  %v284_v34 = vpack.c.bf16 %v248_v30, %v247_v29  ;;  %v200_v36 = vld [vmem:[%s4117_s25 + $0x38] sm:$0xff]  ;;  %v231_v37 = vld [vmem:[%s4117_s25 + $0x130] sm:$0xff] }
  0x25   : > { %3521 = vmatpush3.bf16.xpose.msra.mxu0 %v404_v59  ;;  %v226_v59 = vld [vmem:[%s4117_s25 + $0x108] sm:$0xff]  ;;  %v249_v43 = vld [vmem:[%s4117_s25 + $0x1c0] sm:$0xff]  ;;  %v204_v1 = vld [vmem:[%s4117_s25 + $0x58] sm:$0xff] }
  0x26   : > { %3539 = vmatpush3.bf16.xpose.msra.mxu1 %v452_v61  ;;  %3906 = vmatprep.subr.msk.bf16.mxu0 %vm390_vm0, %v368_v60  ;;  %v257_v60 = vpack.c.bf16 %v194_v57, %v193_v56  ;;  %v273_v61 = vpack.c.bf16 %v226_v59, %v225_v58  ;;  %v218_v42 = vld [vmem:[%s4117_s25 + $0xc8] sm:$0xff]  ;;  %v201_v49 = vld [vmem:[%s4117_s25 + $0x40] sm:$0xff]  ;;  %v220_v56 = vld [vmem:[%s4117_s25 + $0xd8] sm:$0xff] }
  0x27   : > { %3914 = vmatprep.subr.msk.bf16.mxu1 %vm390_vm0, %v384_v62  ;;  %v211_v62 = vld [vmem:[%s4117_s25 + $0x90] sm:$0xff]  ;;  %v250_v44 = vld [vmem:[%s4117_s25 + $0x1c8] sm:$0xff]  ;;  %v233_v51 = vld [vmem:[%s4117_s25 + $0x140] sm:$0xff] }
  0x28   : > { %v576_v3 = vsel %vm390_vm0, %v257_v60, 0  ;;  %v266_v4 = vpack.c.bf16 %v212_v63, %v211_v62  ;;  %v624_v5 = vsel %vm390_vm0, %v273_v61, 0  ;;  %v285_v48 = vpack.c.bf16 %v250_v44, %v249_v43  ;;  %v202_v50 = vld [vmem:[%s4117_s25 + $0x48] sm:$0xff]  ;;  %v251_v57 = vld [vmem:[%s4117_s25 + $0x1d0] sm:$0xff]  ;;  %v252_v58 = vld [vmem:[%s4117_s25 + $0x1d8] sm:$0xff] }
  0x29   : > { %v286_v62 = vpack.c.bf16 %v252_v58, %v251_v57  ;;  %v203_v63 = vld [vmem:[%s4117_s25 + $0x50] sm:$0xff]  ;;  %v205_v15 = vld [vmem:[%s4117_s25 + $0x60] sm:$0xff]  ;;  %v206_v16 = vld [vmem:[%s4117_s25 + $0x68] sm:$0xff] }
  0x2a   : > { %v235_v2 = vld [vmem:[%s4117_s25 + $0x150] sm:$0xff]  ;;  %v237_v17 = vld [vmem:[%s4117_s25 + $0x160] sm:$0xff]  ;;  %v208_v29 = vld [vmem:[%s4117_s25 + $0x78] sm:$0xff] }
  0x2b   : > { %v239_v30 = vld [vmem:[%s4117_s25 + $0x170] sm:$0xff]  ;;  %v3065_v44 = vld [vmem:[%s4117_s25 + $0x102] sm:$0xff]  ;;  %v3036_v57 = vld [vmem:[%s4117_s25 + $0x1a] sm:$0xff] }
  0x2c   : > { %v3034_v43 = vld [vmem:[%s4117_s25 + $0xa] sm:$0xff]  ;;  %v3067_v58 = vld [vmem:[%s4117_s25 + $0x112] sm:$0xff] }
  0x2d   : > { %3523 = vmatpush3.bf16.xpose.msra.mxu0 %v407_v10  ;;  %v228_v10 = vld [vmem:[%s4117_s25 + $0x118] sm:$0xff] }
  0x2e   : > { %3541 = vmatpush3.bf16.xpose.msra.mxu1 %v455_v12  ;;  %3907 = vmatprep.subr.msk.bf16.mxu0 %vm390_vm0, %v369_v11  ;;  %v4244_v11 = vld [vmem:[%s5180_s1] sm:$0xf]  ;;  %v258_v12 = vpack.c.bf16 %v196_v8, %v195_v7  ;;  %v222_v7 = vld [vmem:[%s4117_s25 + $0xe8] sm:$0xff] }
  0x2f   : > { %3915 = vmatprep.subr.msk.bf16.mxu1 %vm390_vm0, %v385_v13  ;;  %v274_v13 = vpack.c.bf16 %v228_v10, %v227_v9  ;;  %v253_v8 = vld [vmem:[%s4117_s25 + $0x1e0] sm:$0xff]  ;;  %v254_v9 = vld [vmem:[%s4117_s25 + $0x1e8] sm:$0xff] }
  0x30   : > { %v287_v14 = vpack.c.bf16 %v254_v9, %v253_v8  ;;  %v3038_v8 = vld [vmem:[%s4117_s25 + $0x2a] sm:$0xff]  ;;  %v3069_v9 = vld [vmem:[%s4117_s25 + $0x122] sm:$0xff] }
  0x31   : > { %v627_v19 = vsel %vm390_vm0, %v274_v13, 0 }
  0x35   : > { %3525 = vmatpush3.bf16.xpose.msra.mxu0 %v410_v24  ;;  %v230_v24 = vld [vmem:[%s4117_s25 + $0x128] sm:$0xff] }
  0x36   : > { %3543 = vmatpush3.bf16.xpose.msra.mxu1 %v458_v26  ;;  %3908 = vmatprep.subr.msk.bf16.mxu0 %vm390_vm0, %v370_v25  ;;  %v259_v25 = vpack.c.bf16 %v198_v22, %v197_v21  ;;  %v275_v26 = vpack.c.bf16 %v230_v24, %v229_v23  ;;  %v224_v21 = vld [vmem:[%s4117_s25 + $0xf8] sm:$0xff]  ;;  %v255_v22 = vld [vmem:[%s4117_s25 + $0x1f0] sm:$0xff] }
  0x37   : > { %3916 = vmatprep.subr.msk.bf16.mxu1 %vm390_vm0, %v386_v27  ;;  %v215_v27 = vld [vmem:[%s4117_s25 + $0xb0] sm:$0xff]  ;;  %v256_v23 = vld [vmem:[%s4117_s25 + $0x1f8] sm:$0xff] }
  0x38   : > { %v582_v31 = vsel %vm390_vm0, %v259_v25, 0  ;;  %v268_v32 = vpack.c.bf16 %v216_v28, %v215_v27  ;;  %v630_v33 = vsel %vm390_vm0, %v275_v26, 0  ;;  %v288_v27 = vpack.c.bf16 %v256_v23, %v255_v22  ;;  %v207_v28 = vld [vmem:[%s4117_s25 + $0x70] sm:$0xff]  ;;  %v3040_v22 = vld [vmem:[%s4117_s25 + $0x3a] sm:$0xff] }
  0x39   : > { %v3071_v23 = vld [vmem:[%s4117_s25 + $0x132] sm:$0xff] }
  0x3d   : > { %3527 = vmatpush3.bf16.xpose.msra.mxu0 %v413_v38  ;;  %v232_v38 = vld [vmem:[%s4117_s25 + $0x138] sm:$0xff] }
  0x3e   : > { %3545 = vmatpush3.bf16.xpose.msra.mxu1 %v461_v40  ;;  %3909 = vmatprep.subr.msk.bf16.mxu0 %vm390_vm0, %v371_v39  ;;  %v260_v39 = vpack.c.bf16 %v200_v36, %v199_v35  ;;  %v276_v40 = vpack.c.bf16 %v232_v38, %v231_v37  ;;  %v3050_v35 = vld [vmem:[%s4117_s25 + $0x8a] sm:$0xff]  ;;  %v3081_v36 = vld [vmem:[%s4117_s25 + $0x182] sm:$0xff] }
  0x3f   : > { %3917 = vmatprep.subr.msk.bf16.mxu1 %vm390_vm0, %v387_v41  ;;  %v217_v41 = vld [vmem:[%s4117_s25 + $0xc0] sm:$0xff]  ;;  %v3082_v37 = vld [vmem:[%s4117_s25 + $0x18a] sm:$0xff] }
  0x40   : > { %v585_v45 = vsel %vm390_vm0, %v260_v39, 0  ;;  %v269_v46 = vpack.c.bf16 %v218_v42, %v217_v41  ;;  %v633_v47 = vsel %vm390_vm0, %v276_v40, 0  ;;  %v4334_v41 = vpack.c.bf16 %v3082_v37, %v3081_v36  ;;  %v3033_v42 = vld [vmem:[%s4117_s25 + $0x2] sm:$0xff]  ;;  %v3042_v36 = vld [vmem:[%s4117_s25 + $0x4a] sm:$0xff] }
  0x41   : > { %v3073_v37 = vld [vmem:[%s4117_s25 + $0x142] sm:$0xff] }
  0x45   : > { %3529 = vmatpush3.bf16.xpose.msra.mxu0 %v416_v52  ;;  %v234_v52 = vld [vmem:[%s4117_s25 + $0x148] sm:$0xff] }
  0x46   : > { %3547 = vmatpush3.bf16.xpose.msra.mxu1 %v464_v54  ;;  %3918 = vmatprep.subr.msk.bf16.mxu0 %vm390_vm0, %v265_v53  ;;  %v261_v53 = vpack.c.bf16 %v202_v50, %v201_v49  ;;  %v277_v54 = vpack.c.bf16 %v234_v52, %v233_v51  ;;  %v3052_v49 = vld [vmem:[%s4117_s25 + $0x9a] sm:$0xff]  ;;  %v3083_v50 = vld [vmem:[%s4117_s25 + $0x192] sm:$0xff] }
  0x47   : > { %3926 = vmatprep.subr.msk.bf16.mxu1 %vm390_vm0, %v281_v55  ;;  %v219_v55 = vld [vmem:[%s4117_s25 + $0xd0] sm:$0xff]  ;;  %v3084_v51 = vld [vmem:[%s4117_s25 + $0x19a] sm:$0xff] }
  0x48   : > { %v588_v59 = vsel %vm390_vm0, %v261_v53, 0  ;;  %v270_v60 = vpack.c.bf16 %v220_v56, %v219_v55  ;;  %v636_v61 = vsel %vm390_vm0, %v277_v54, 0  ;;  %v4355_v55 = vpack.c.bf16 %v3084_v51, %v3083_v50  ;;  %v3035_v56 = vld [vmem:[%s4117_s25 + $0x12] sm:$0xff] }
  0x4c   : > { %3531 = vmatmul.mubr.msk.bf16.vlgmr.msra.gmra.mrb[0].mxu0 %vm390_vm0, %v4112_v0 }
  0x4d   : > { %3549 = vmatmul.mubr.msk.bf16.vlgmr.msra.gmra.mrb[0].mxu1 %vm390_vm0, %v4112_v0  ;;  %3551 = vmatpush3.bf16.xpose.msra.mxu0 %v576_v3  ;;  %v579_v0 = vsel %vm390_vm0, %v258_v12, 0  ;;  %v236_v3 = vld [vmem:[%s4117_s25 + $0x158] sm:$0xff] }
  0x4e   : > { %3569 = vmatpush3.bf16.xpose.msra.mxu1 %v624_v5  ;;  %3919 = vmatprep.subr.msk.bf16.mxu0 %vm390_vm0, %v266_v4  ;;  %v262_v4 = vpack.c.bf16 %v204_v1, %v203_v63  ;;  %v278_v5 = vpack.c.bf16 %v236_v3, %v235_v2  ;;  %v3053_v63 = vld [vmem:[%s4117_s25 + $0xa2] sm:$0xff]  ;;  %v3054_v1 = vld [vmem:[%s4117_s25 + $0xaa] sm:$0xff] }
  0x4f   : > { %3927 = vmatprep.subr.msk.bf16.mxu1 %vm390_vm0, %v282_v6  ;;  %3566 = vmatprep.mubr.msk.bf16.mxu0 %vm390_vm0, %v4244_v11  ;;  %v221_v6 = vld [vmem:[%s4117_s25 + $0xe0] sm:$0xff]  ;;  %v3086_v2 = vld [vmem:[%s4117_s25 + $0x1aa] sm:$0xff] }
  0x50   : > { %3584 = vmatprep.mubr.msk.bf16.mxu1 %vm390_vm0, %v4244_v11  ;;  %v591_v10 = vsel %vm390_vm0, %v262_v4, 0  ;;  %v271_v12 = vpack.c.bf16 %v222_v7, %v221_v6  ;;  %v639_v13 = vsel %vm390_vm0, %v278_v5, 0  ;;  %v4385_v4 = vpack.c.bf16 %v3054_v1, %v3053_v63  ;;  %v3037_v7 = vld [vmem:[%s4117_s25 + $0x22] sm:$0xff]  ;;  %v3094_v1 = vld [vmem:[%s4117_s25 + $0x1ea] sm:$0xff] }
  0x51   : > { %v3093_v63 = vld [vmem:[%s4117_s25 + $0x1e2] sm:$0xff] }
  0x55   : > { %3553 = vmatpush3.bf16.xpose.msra.mxu0 %v579_v0  ;;  %v238_v0 = vld [vmem:[%s4117_s25 + $0x168] sm:$0xff] }
  0x56   : > { %3571 = vmatpush3.bf16.xpose.msra.mxu1 %v627_v19  ;;  %3920 = vmatprep.subr.msk.bf16.mxu0 %vm390_vm0, %v267_v18  ;;  %v263_v18 = vpack.c.bf16 %v206_v16, %v205_v15  ;;  %v279_v19 = vpack.c.bf16 %v238_v0, %v237_v17  ;;  %v3056_v15 = vld [vmem:[%s4117_s25 + $0xba] sm:$0xff]  ;;  %v3087_v16 = vld [vmem:[%s4117_s25 + $0x1b2] sm:$0xff] }
  0x57   : > { %3928 = vmatprep.subr.msk.bf16.mxu1 %vm390_vm0, %v283_v20  ;;  %v223_v20 = vld [vmem:[%s4117_s25 + $0xf0] sm:$0xff]  ;;  %v3088_v17 = vld [vmem:[%s4117_s25 + $0x1ba] sm:$0xff] }
  0x58   : > { %v594_v24 = vsel %vm390_vm0, %v263_v18, 0  ;;  %v272_v25 = vpack.c.bf16 %v224_v21, %v223_v20  ;;  %v642_v26 = vsel %vm390_vm0, %v279_v19, 0  ;;  %v4414_v20 = vpack.c.bf16 %v3088_v17, %v3087_v16  ;;  %v3039_v21 = vld [vmem:[%s4117_s25 + $0x32] sm:$0xff]  ;;  %v3064_v17 = vld [vmem:[%s4117_s25 + $0xfa] sm:$0xff] }
  0x59   : > { %v3063_v16 = vld [vmem:[%s4117_s25 + $0xf2] sm:$0xff] }
  0x5d   : > { %3555 = vmatpush3.bf16.xpose.msra.mxu0 %v582_v31  ;;  %v240_v31 = vld [vmem:[%s4117_s25 + $0x178] sm:$0xff] }
  0x5e   : > { %3573 = vmatpush3.bf16.xpose.msra.mxu1 %v630_v33  ;;  %3921 = vmatprep.subr.msk.bf16.mxu0 %vm390_vm0, %v268_v32  ;;  %v264_v32 = vpack.c.bf16 %v208_v29, %v207_v28  ;;  %v280_v33 = vpack.c.bf16 %v240_v31, %v239_v30  ;;  %v3058_v28 = vld [vmem:[%s4117_s25 + $0xca] sm:$0xff]  ;;  %v3089_v29 = vld [vmem:[%s4117_s25 + $0x1c2] sm:$0xff] }
  0x5f   : > { %3929 = vmatprep.subr.msk.bf16.mxu1 %vm390_vm0, %v284_v34  ;;  %v3049_v34 = vld [vmem:[%s4117_s25 + $0x82] sm:$0xff]  ;;  %v3090_v30 = vld [vmem:[%s4117_s25 + $0x1ca] sm:$0xff] }
  0x60   : > { %v597_v38 = vsel %vm390_vm0, %v264_v32, 0  ;;  %v4331_v39 = vpack.c.bf16 %v3050_v35, %v3049_v34  ;;  %v645_v40 = vsel %vm390_vm0, %v280_v33, 0  ;;  %v4438_v34 = vpack.c.bf16 %v3090_v30, %v3089_v29  ;;  %v3041_v35 = vld [vmem:[%s4117_s25 + $0x42] sm:$0xff]  ;;  %v3079_v29 = vld [vmem:[%s4117_s25 + $0x172] sm:$0xff]  ;;  %v3080_v30 = vld [vmem:[%s4117_s25 + $0x17a] sm:$0xff] }
  0x65   : > { %3557 = vmatpush3.bf16.xpose.msra.mxu0 %v585_v45  ;;  %v3066_v45 = vld [vmem:[%s4117_s25 + $0x10a] sm:$0xff] }
  0x66   : > { %3575 = vmatpush3.bf16.xpose.msra.mxu1 %v633_v47  ;;  %3922 = vmatprep.subr.msk.bf16.mxu0 %vm390_vm0, %v269_v46  ;;  %v819_v46 = vpack.c.bf16 %v3034_v43, %v3033_v42  ;;  %v4344_v47 = vpack.c.bf16 %v3066_v45, %v3065_v44  ;;  %v3059_v43 = vld [vmem:[%s4117_s25 + $0xd2] sm:$0xff]  ;;  %v3060_v44 = vld [vmem:[%s4117_s25 + $0xda] sm:$0xff] }
  0x67   : > { %3930 = vmatprep.subr.msk.bf16.mxu1 %vm390_vm0, %v285_v48  ;;  %v3051_v48 = vld [vmem:[%s4117_s25 + $0x92] sm:$0xff] }
  0x68   : > { %v857_v52 = vsel %vm390_vm0, %v819_v46, 0  ;;  %v4351_v53 = vpack.c.bf16 %v3052_v49, %v3051_v48  ;;  %v905_v54 = vsel %vm390_vm0, %v4344_v47, 0  ;;  %v3091_v45 = vld [vmem:[%s4117_s25 + $0x1d2] sm:$0xff]  ;;  %v3092_v46 = vld [vmem:[%s4117_s25 + $0x1da] sm:$0xff]  ;;  %v4457_v49 = vpack.c.bf16 %v3060_v44, %v3059_v43 }
  0x69   : > { %v4462_v51 = vpack.c.bf16 %v3092_v46, %v3091_v45  ;;  %v3188_v43 = vld [vmem:[%s4117_s25 + $0xab] sm:$0xff] }
  0x6a   : > { %v3220_v44 = vld [vmem:[%s4117_s25 + $0x1ab] sm:$0xff] }
  0x6d   : > { %3559 = vmatpush3.bf16.xpose.msra.mxu0 %v588_v59  ;;  %v3068_v59 = vld [vmem:[%s4117_s25 + $0x11a] sm:$0xff] }
  0x6e   : > { %3577 = vmatpush3.bf16.xpose.msra.mxu1 %v636_v61  ;;  %3923 = vmatprep.subr.msk.bf16.mxu0 %vm390_vm0, %v270_v60  ;;  %v4366_v60 = vld [vmem:[%s5180_s1 + $0x8] sm:$0xf]  ;;  %v820_v61 = vpack.c.bf16 %v3036_v57, %v3035_v56  ;;  %v3075_v56 = vld [vmem:[%s4117_s25 + $0x152] sm:$0xff]  ;;  %v3076_v57 = vld [vmem:[%s4117_s25 + $0x15a] sm:$0xff] }
  0x6f   : > { %3931 = vmatprep.subr.msk.bf16.mxu1 %vm390_vm0, %v286_v62  ;;  %v836_v62 = vpack.c.bf16 %v3068_v59, %v3067_v58  ;;  %v840_v59 = vpack.c.bf16 %v3076_v57, %v3075_v56  ;;  %v4579_v56 = vld [vmem:[%s5180_s1 + $0x10] sm:$0xf] }
  0x70   : > { %v4383_v3 = vsel %vm390_vm0, %v820_v61, 0  ;;  %v3061_v61 = vld [vmem:[%s4117_s25 + $0xe2] sm:$0xff] }
  0x71   : > { %v4388_v5 = vsel %vm390_vm0, %v836_v62, 0  ;;  %v3062_v62 = vld [vmem:[%s4117_s25 + $0xea] sm:$0xff] }
  0x75   : > { %3561 = vmatpush3.bf16.xpose.msra.mxu0 %v591_v10  ;;  %v3070_v10 = vld [vmem:[%s4117_s25 + $0x12a] sm:$0xff] }
  0x76   : > { %3579 = vmatpush3.bf16.xpose.msra.mxu1 %v639_v13  ;;  %3924 = vmatprep.subr.msk.bf16.mxu0 %vm390_vm0, %v271_v12  ;;  %v821_v12 = vpack.c.bf16 %v3038_v8, %v3037_v7  ;;  %v837_v13 = vpack.c.bf16 %v3070_v10, %v3069_v9  ;;  %v920_v7 = vsel %vm390_vm0, %v840_v59, 0  ;;  %v849_v8 = vpack.c.bf16 %v3094_v1, %v3093_v63  ;;  %v3045_v9 = vld [vmem:[%s4117_s25 + $0x62] sm:$0xff]  ;;  %v3046_v10 = vld [vmem:[%s4117_s25 + $0x6a] sm:$0xff]  ;;  %v3189_v59 = vld [vmem:[%s4117_s25 + $0xb3] sm:$0xff] }
  0x77   : > { %3932 = vmatprep.subr.msk.bf16.mxu1 %vm390_vm0, %v287_v14  ;;  %v3055_v14 = vld [vmem:[%s4117_s25 + $0xb2] sm:$0xff]  ;;  %v3222_v63 = vld [vmem:[%s4117_s25 + $0x1bb] sm:$0xff] }
  0x78   : > { %v4407_v0 = vsel %vm390_vm0, %v821_v12, 0  ;;  %v4409_v18 = vpack.c.bf16 %v3056_v15, %v3055_v14  ;;  %v4412_v19 = vsel %vm390_vm0, %v837_v13, 0  ;;  %v3077_v12 = vld [vmem:[%s4117_s25 + $0x162] sm:$0xff]  ;;  %v3078_v13 = vld [vmem:[%s4117_s25 + $0x16a] sm:$0xff]  ;;  %v825_v14 = vpack.c.bf16 %v3046_v10, %v3045_v9  ;;  %v3205_v10 = vld [vmem:[%s4117_s25 + $0x133] sm:$0xff] }
  0x79   : > { %v841_v15 = vpack.c.bf16 %v3078_v13, %v3077_v12  ;;  %v3174_v9 = vld [vmem:[%s4117_s25 + $0x3b] sm:$0xff] }
  0x7a   : > { %v3206_v12 = vld [vmem:[%s4117_s25 + $0x13b] sm:$0xff] }
  0x7d   : > { %3563 = vmatpush3.bf16.xpose.msra.mxu0 %v594_v24  ;;  %v3072_v24 = vld [vmem:[%s4117_s25 + $0x13a] sm:$0xff] }
  0x7e   : > { %3581 = vmatpush3.bf16.xpose.msra.mxu1 %v642_v26  ;;  %3925 = vmatprep.subr.msk.bf16.mxu0 %vm390_vm0, %v272_v25  ;;  %v822_v25 = vpack.c.bf16 %v3040_v22, %v3039_v21  ;;  %v838_v26 = vpack.c.bf16 %v3072_v24, %v3071_v23  ;;  %v3095_v21 = vld [vmem:[%s4117_s25 + $0x1f2] sm:$0xff]  ;;  %v3096_v22 = vld [vmem:[%s4117_s25 + $0x1fa] sm:$0xff]  ;;  %v875_v23 = vsel %vm390_vm0, %v825_v14, 0  ;;  %v834_v24 = vpack.c.bf16 %v3064_v17, %v3063_v16  ;;  %v3223_v17 = vld [vmem:[%s4117_s25 + $0x1c3] sm:$0xff] }
  0x7f   : > { %3933 = vmatprep.subr.msk.bf16.mxu1 %vm390_vm0, %v288_v27  ;;  %v3057_v27 = vld [vmem:[%s4117_s25 + $0xc2] sm:$0xff]  ;;  %v1407_v14 = vpack.c.bf16 %v3206_v12, %v3205_v10  ;;  %v3192_v16 = vld [vmem:[%s4117_s25 + $0xcb] sm:$0xff] }
  0x80   : > { %v4431_v31 = vsel %vm390_vm0, %v822_v25, 0  ;;  %v4433_v32 = vpack.c.bf16 %v3058_v28, %v3057_v27  ;;  %v4436_v33 = vsel %vm390_vm0, %v838_v26, 0  ;;  %v923_v25 = vsel %vm390_vm0, %v841_v15, 0  ;;  %v3047_v27 = vld [vmem:[%s4117_s25 + $0x72] sm:$0xff]  ;;  %v3048_v28 = vld [vmem:[%s4117_s25 + $0x7a] sm:$0xff]  ;;  %v3191_v15 = vld [vmem:[%s4117_s25 + $0xc3] sm:$0xff] }
  0x81   : > { %v850_v26 = vpack.c.bf16 %v3096_v22, %v3095_v21  ;;  %v3224_v21 = vld [vmem:[%s4117_s25 + $0x1cb] sm:$0xff] }
  0x82   : > { %v3232_v10 = vld [vmem:[%s4117_s25 + $0x20b] sm:$0xff] }
  0x85   : > { %3565 = vmatpush3.bf16.xpose.msra.mxu0 %v597_v38  ;;  %v3074_v38 = vld [vmem:[%s4117_s25 + $0x14a] sm:$0xff] }
  0x86   : > { %3583 = vmatpush3.bf16.xpose.msra.mxu1 %v645_v40  ;;  %3934 = vmatprep.subr.msk.bf16.mxu0 %vm390_vm0, %v4331_v39  ;;  %v823_v40 = vpack.c.bf16 %v3042_v36, %v3041_v35  ;;  %v839_v42 = vpack.c.bf16 %v3074_v38, %v3073_v37  ;;  %v826_v35 = vpack.c.bf16 %v3048_v28, %v3047_v27  ;;  %v3176_v27 = vld [vmem:[%s4117_s25 + $0x4b] sm:$0xff]  ;;  %v3207_v28 = vld [vmem:[%s4117_s25 + $0x143] sm:$0xff] }
  0x87   : > { %3942 = vmatprep.subr.msk.bf16.mxu1 %vm390_vm0, %v4334_v41  ;;  %v842_v36 = vpack.c.bf16 %v3080_v30, %v3079_v29  ;;  %v3208_v29 = vld [vmem:[%s4117_s25 + $0x14b] sm:$0xff] }
  0x88   : > { %v4455_v48 = vsel %vm390_vm0, %v823_v40, 0  ;;  %v4460_v50 = vsel %vm390_vm0, %v839_v42, 0  ;;  %v878_v37 = vsel %vm390_vm0, %v826_v35, 0  ;;  %v4509_v40 = vld [vmem:[%s5180_s1 + $0xc] sm:$0xf]  ;;  %v3187_v42 = vld [vmem:[%s4117_s25 + $0xa3] sm:$0xff]  ;;  %v1408_v35 = vpack.c.bf16 %v3208_v29, %v3207_v28 }
  0x89   : > { %v926_v38 = vsel %vm390_vm0, %v842_v36, 0  ;;  %v1398_v46 = vpack.c.bf16 %v3188_v43, %v3187_v42  ;;  %v3193_v36 = vld [vmem:[%s4117_s25 + $0xd3] sm:$0xff]  ;;  %v3179_v43 = vld [vmem:[%s4117_s25 + $0x63] sm:$0xff] }
  0x8a   : > { %v3286_v28 = vld [vmem:[%s4117_s25 + $0x19c] sm:$0xff] }
  0x8c   : > { %3567 = vmatmul.mubr.msk.bf16.vlgmr.msra.gmra.mrb[0].mxu0 %vm390_vm0, %v4244_v11 }
  0x8d   : > { %3585 = vmatmul.mubr.msk.bf16.vlgmr.msra.gmra.mrb[0].mxu1 %vm390_vm0, %v4244_v11  ;;  %3587 = vmatpush3.bf16.xpose.msra.mxu0 %v857_v52  ;;  %v3085_v11 = vld [vmem:[%s4117_s25 + $0x1a2] sm:$0xff]  ;;  %v3043_v52 = vld [vmem:[%s4117_s25 + $0x52] sm:$0xff] }
  0x8e   : > { %3605 = vmatpush3.bf16.xpose.msra.mxu1 %v905_v54  ;;  %3935 = vmatprep.subr.msk.bf16.mxu0 %vm390_vm0, %v4351_v53  ;;  %v4390_v6 = vpack.c.bf16 %v3086_v2, %v3085_v11  ;;  %v3044_v54 = vld [vmem:[%s4117_s25 + $0x5a] sm:$0xff]  ;;  %v833_v2 = vpack.c.bf16 %v3062_v62, %v3061_v61 }
  0x8f   : > { %3943 = vmatprep.subr.msk.bf16.mxu1 %vm390_vm0, %v4355_v55  ;;  %3602 = vmatprep.mubr.msk.bf16.mxu0 %vm390_vm0, %v4366_v60  ;;  %v824_v58 = vpack.c.bf16 %v3044_v54, %v3043_v52  ;;  %v3203_v52 = vld [vmem:[%s4117_s25 + $0x123] sm:$0xff]  ;;  %v3204_v54 = vld [vmem:[%s4117_s25 + $0x12b] sm:$0xff]  ;;  %v3190_v61 = vld [vmem:[%s4117_s25 + $0xbb] sm:$0xff] }
  0x90   : > { %3620 = vmatprep.mubr.msk.bf16.mxu1 %vm390_vm0, %v4366_v60  ;;  %v3221_v62 = vld [vmem:[%s4117_s25 + $0x1b3] sm:$0xff] }
  0x91   : > { %v872_v11 = vsel %vm390_vm0, %v824_v58, 0  ;;  %v1406_v58 = vpack.c.bf16 %v3204_v54, %v3203_v52  ;;  %v3230_v52 = vld [vmem:[%s4117_s25 + $0x1fb] sm:$0xff] }
  0x95   : > { %3589 = vmatpush3.bf16.xpose.msra.mxu0 %v4383_v3 }
  0x96   : > { %3607 = vmatpush3.bf16.xpose.msra.mxu1 %v4388_v5  ;;  %3936 = vmatprep.subr.msk.bf16.mxu0 %vm390_vm0, %v4385_v4 }
  0x97   : > { %3944 = vmatprep.subr.msk.bf16.mxu1 %vm390_vm0, %v4390_v6 }
  0x9d   : > { %3591 = vmatpush3.bf16.xpose.msra.mxu0 %v4407_v0 }
  0x9e   : > { %3609 = vmatpush3.bf16.xpose.msra.mxu1 %v4412_v19  ;;  %3937 = vmatprep.subr.msk.bf16.mxu0 %vm390_vm0, %v4409_v18 }
  0x9f   : > { %3945 = vmatprep.subr.msk.bf16.mxu1 %vm390_vm0, %v4414_v20 }
  0xa5   : > { %3593 = vmatpush3.bf16.xpose.msra.mxu0 %v4431_v31 }
  0xa6   : > { %3611 = vmatpush3.bf16.xpose.msra.mxu1 %v4436_v33  ;;  %3938 = vmatprep.subr.msk.bf16.mxu0 %vm390_vm0, %v4433_v32 }
  0xa7   : > { %3946 = vmatprep.subr.msk.bf16.mxu1 %vm390_vm0, %v4438_v34 }
  0xad   : > { %3595 = vmatpush3.bf16.xpose.msra.mxu0 %v4455_v48 }
  0xae   : > { %3613 = vmatpush3.bf16.xpose.msra.mxu1 %v4460_v50  ;;  %3939 = vmatprep.subr.msk.bf16.mxu0 %vm390_vm0, %v4457_v49 }
  0xaf   : > { %3947 = vmatprep.subr.msk.bf16.mxu1 %vm390_vm0, %v4462_v51 }
  0xb5   : > { %3597 = vmatpush3.bf16.xpose.msra.mxu0 %v872_v11 }
  0xb6   : > { %3615 = vmatpush3.bf16.xpose.msra.mxu1 %v920_v7  ;;  %3940 = vmatprep.subr.msk.bf16.mxu0 %vm390_vm0, %v833_v2 }
  0xb7   : > { %3948 = vmatprep.subr.msk.bf16.mxu1 %vm390_vm0, %v849_v8 }
  0xbd   : > { %3599 = vmatpush3.bf16.xpose.msra.mxu0 %v875_v23 }
  0xbe   : > { %3617 = vmatpush3.bf16.xpose.msra.mxu1 %v923_v25  ;;  %3941 = vmatprep.subr.msk.bf16.mxu0 %vm390_vm0, %v834_v24 }
  0xbf   : > { %3949 = vmatprep.subr.msk.bf16.mxu1 %vm390_vm0, %v850_v26 }
  0xc5   : > { %3601 = vmatpush3.bf16.xpose.msra.mxu0 %v878_v37 }
  0xc6   : > { %3619 = vmatpush3.bf16.xpose.msra.mxu1 %v926_v38  ;;  %3950 = vmatprep.subr.msk.bf16.mxu0 %vm390_vm0, %v4351_v53  ;;  %v3163_v53 = vld [vmem:[%s4117_s25 + $0x202] sm:$0xff] }
  0xc7   : > { %3958 = vmatprep.subr.msk.bf16.mxu1 %vm390_vm0, %v4355_v55  ;;  %v3164_v55 = vld [vmem:[%s4117_s25 + $0x20a] sm:$0xff] }
  0xcc   : > { %3603 = vmatmul.mubr.msk.bf16.vlgmr.msra.gmra.mrb[0].mxu0 %vm390_vm0, %v4366_v60 }
  0xcd   : > { %3621 = vmatmul.mubr.msk.bf16.vlgmr.msra.gmra.mrb[0].mxu1 %vm390_vm0, %v4366_v60  ;;  %3623 = vmatpush3.bf16.xpose.msra.mxu0 %v4383_v3  ;;  %v1135_v60 = vpack.c.bf16 %v3164_v55, %v3163_v53  ;;  %v3185_v3 = vld [vmem:[%s4117_s25 + $0x93] sm:$0xff] }
  0xce   : > { %3641 = vmatpush3.bf16.xpose.msra.mxu1 %v4388_v5  ;;  %3951 = vmatprep.subr.msk.bf16.mxu0 %vm390_vm0, %v4385_v4  ;;  %v3186_v4 = vld [vmem:[%s4117_s25 + $0x9b] sm:$0xff]  ;;  %v3217_v5 = vld [vmem:[%s4117_s25 + $0x193] sm:$0xff] }
  0xcf   : > { %3959 = vmatprep.subr.msk.bf16.mxu1 %vm390_vm0, %v4390_v6  ;;  %3638 = vmatprep.mubr.msk.bf16.mxu0 %vm390_vm0, %v4509_v40  ;;  %v3218_v6 = vld [vmem:[%s4117_s25 + $0x19b] sm:$0xff] }
  0xd0   : > { %3656 = vmatprep.mubr.msk.bf16.mxu1 %vm390_vm0, %v4509_v40 }
  0xd5   : > { %3625 = vmatpush3.bf16.xpose.msra.mxu0 %v4407_v0  ;;  %v1163_v0 = vsel %vm390_vm0, %v4331_v39, 0 }
  0xd6   : > { %3643 = vmatpush3.bf16.xpose.msra.mxu1 %v4412_v19  ;;  %3952 = vmatprep.subr.msk.bf16.mxu0 %vm390_vm0, %v4409_v18  ;;  %v1397_v18 = vpack.c.bf16 %v3186_v4, %v3185_v3  ;;  %v1211_v19 = vsel %vm390_vm0, %v4334_v41, 0  ;;  %v3219_v41 = vld [vmem:[%s4117_s25 + $0x1a3] sm:$0xff]  ;;  %v3177_v4 = vld [vmem:[%s4117_s25 + $0x53] sm:$0xff] }
  0xd7   : > { %3960 = vmatprep.subr.msk.bf16.mxu1 %vm390_vm0, %v4414_v20  ;;  %v1413_v20 = vpack.c.bf16 %v3218_v6, %v3217_v5  ;;  %v3178_v5 = vld [vmem:[%s4117_s25 + $0x5b] sm:$0xff]  ;;  %v3209_v6 = vld [vmem:[%s4117_s25 + $0x153] sm:$0xff] }
  0xdd   : > { %3627 = vmatpush3.bf16.xpose.msra.mxu0 %v4431_v31  ;;  %v3169_v31 = vld [vmem:[%s4117_s25 + $0x13] sm:$0xff] }
  0xde   : > { %3645 = vmatpush3.bf16.xpose.msra.mxu1 %v4436_v33  ;;  %3953 = vmatprep.subr.msk.bf16.mxu0 %vm390_vm0, %v4433_v32  ;;  %v3201_v32 = vld [vmem:[%s4117_s25 + $0x113] sm:$0xff]  ;;  %v3202_v33 = vld [vmem:[%s4117_s25 + $0x11b] sm:$0xff] }
  0xdf   : > { %3961 = vmatprep.subr.msk.bf16.mxu1 %vm390_vm0, %v4438_v34  ;;  %v1405_v34 = vpack.c.bf16 %v3202_v33, %v3201_v32  ;;  %v3228_v32 = vld [vmem:[%s4117_s25 + $0x1eb] sm:$0xff] }
  0xe5   : > { %3629 = vmatpush3.bf16.xpose.msra.mxu0 %v4455_v48  ;;  %v1475_v48 = vsel %vm390_vm0, %v1405_v34, 0 }
  0xe6   : > { %3647 = vmatpush3.bf16.xpose.msra.mxu1 %v4460_v50  ;;  %3954 = vmatprep.subr.msk.bf16.mxu0 %vm390_vm0, %v4457_v49  ;;  %v1414_v49 = vpack.c.bf16 %v3220_v44, %v3219_v41  ;;  %v3171_v50 = vld [vmem:[%s4117_s25 + $0x23] sm:$0xff]  ;;  %v3180_v41 = vld [vmem:[%s4117_s25 + $0x6b] sm:$0xff] }
  0xe7   : > { %3962 = vmatprep.subr.msk.bf16.mxu1 %vm390_vm0, %v4462_v51  ;;  %v3172_v51 = vld [vmem:[%s4117_s25 + $0x2b] sm:$0xff]  ;;  %v3211_v44 = vld [vmem:[%s4117_s25 + $0x163] sm:$0xff] }
  0xe8   : > { %v1390_v57 = vpack.c.bf16 %v3172_v51, %v3171_v50  ;;  %v3198_v50 = vld [vmem:[%s4117_s25 + $0xfb] sm:$0xff]  ;;  %v3229_v51 = vld [vmem:[%s4117_s25 + $0x1f3] sm:$0xff] }
  0xea   : > { %v1430_v1 = vsel %vm390_vm0, %v1390_v57, 0 }
  0xed   : > { %3631 = vmatpush3.bf16.xpose.msra.mxu0 %v872_v11  ;;  %v1399_v11 = vpack.c.bf16 %v3190_v61, %v3189_v59  ;;  %v1419_v59 = vpack.c.bf16 %v3230_v52, %v3229_v51  ;;  %v3181_v61 = vld [vmem:[%s4117_s25 + $0x73] sm:$0xff]  ;;  %v3242_v51 = vld [vmem:[%s4117_s25 + $0x3c] sm:$0xff] }
  0xee   : > { %3649 = vmatpush3.bf16.xpose.msra.mxu1 %v920_v7  ;;  %3955 = vmatprep.subr.msk.bf16.mxu0 %vm390_vm0, %v833_v2  ;;  %v1478_v2 = vsel %vm390_vm0, %v1406_v58, 0  ;;  %v1415_v7 = vpack.c.bf16 %v3222_v63, %v3221_v62  ;;  %v3182_v62 = vld [vmem:[%s4117_s25 + $0x7b] sm:$0xff]  ;;  %v3213_v63 = vld [vmem:[%s4117_s25 + $0x173] sm:$0xff] }
  0xef   : > { %3963 = vmatprep.subr.msk.bf16.mxu1 %vm390_vm0, %v849_v8  ;;  %v3173_v8 = vld [vmem:[%s4117_s25 + $0x33] sm:$0xff] }
  0xf0   : > { %v1391_v13 = vpack.c.bf16 %v3174_v9, %v3173_v8  ;;  %v3200_v8 = vld [vmem:[%s4117_s25 + $0x10b] sm:$0xff]  ;;  %v3231_v9 = vld [vmem:[%s4117_s25 + $0x203] sm:$0xff]  ;;  %v3273_v52 = vld [vmem:[%s4117_s25 + $0x134] sm:$0xff] }
  0xf2   : > { %v1433_v22 = vsel %vm390_vm0, %v1391_v13, 0 }
  0xf5   : > { %3633 = vmatpush3.bf16.xpose.msra.mxu0 %v875_v23  ;;  %v1400_v23 = vpack.c.bf16 %v3192_v16, %v3191_v15  ;;  %v1420_v15 = vpack.c.bf16 %v3232_v10, %v3231_v9  ;;  %v3183_v16 = vld [vmem:[%s4117_s25 + $0x83] sm:$0xff]  ;;  %v3244_v9 = vld [vmem:[%s4117_s25 + $0x4c] sm:$0xff] }
  0xf6   : > { %3651 = vmatpush3.bf16.xpose.msra.mxu1 %v923_v25  ;;  %3956 = vmatprep.subr.msk.bf16.mxu0 %vm390_vm0, %v834_v24  ;;  %v1481_v24 = vsel %vm390_vm0, %v1407_v14, 0  ;;  %v1416_v25 = vpack.c.bf16 %v3224_v21, %v3223_v17  ;;  %v3184_v17 = vld [vmem:[%s4117_s25 + $0x8b] sm:$0xff]  ;;  %v3215_v21 = vld [vmem:[%s4117_s25 + $0x183] sm:$0xff] }
  0xf7   : > { %3964 = vmatprep.subr.msk.bf16.mxu1 %vm390_vm0, %v850_v26  ;;  %v3175_v26 = vld [vmem:[%s4117_s25 + $0x43] sm:$0xff] }
  0xf8   : > { %v1392_v30 = vpack.c.bf16 %v3176_v27, %v3175_v26  ;;  %v3254_v26 = vld [vmem:[%s4117_s25 + $0x9c] sm:$0xff]  ;;  %v3285_v27 = vld [vmem:[%s4117_s25 + $0x194] sm:$0xff]  ;;  %v3275_v10 = vld [vmem:[%s4117_s25 + $0x144] sm:$0xff] }
  0xfa   : > { %v1436_v53 = vsel %vm390_vm0, %v1392_v30, 0 }
  0xfd   : > { %3635 = vmatpush3.bf16.xpose.msra.mxu0 %v878_v37  ;;  %v3194_v37 = vld [vmem:[%s4117_s25 + $0xdb] sm:$0xff] }
  0xfe   : > { %3653 = vmatpush3.bf16.xpose.msra.mxu1 %v926_v38  ;;  %3957 = vmatprep.subr.msk.bf16.mxu0 %vm390_vm0, %v4344_v47  ;;  %v3170_v47 = vld [vmem:[%s4117_s25 + $0x1b] sm:$0xff]  ;;  %v3225_v38 = vld [vmem:[%s4117_s25 + $0x1d3] sm:$0xff]  ;;  %v1401_v55 = vpack.c.bf16 %v3194_v37, %v3193_v36  ;;  %v4669_v36 = vpack.c.bf16 %v3286_v28, %v3285_v27 }
  0xff   : > { %3965 = vmatprep.subr.msk.bf16.mxu1 %vm390_vm0, %v1135_v60  ;;  %v1389_v39 = vpack.c.bf16 %v3170_v47, %v3169_v31  ;;  %v1484_v60 = vsel %vm390_vm0, %v1408_v35, 0  ;;  %v3196_v31 = vld [vmem:[%s4117_s25 + $0xeb] sm:$0xff]  ;;  %v3227_v47 = vld [vmem:[%s4117_s25 + $0x1e3] sm:$0xff]  ;;  %v3237_v37 = vld [vmem:[%s4117_s25 + $0x14] sm:$0xff] }
 0x100   : > { %v1418_v42 = vpack.c.bf16 %v3228_v32, %v3227_v47  ;;  %v3240_v47 = vld [vmem:[%s4117_s25 + $0x2c] sm:$0xff]  ;;  %v3271_v32 = vld [vmem:[%s4117_s25 + $0x124] sm:$0xff]  ;;  %v3246_v27 = vld [vmem:[%s4117_s25 + $0x5c] sm:$0xff] }
 0x101   : > { %v1427_v45 = vsel %vm390_vm0, %v1389_v39, 0  ;;  %v3277_v28 = vld [vmem:[%s4117_s25 + $0x154] sm:$0xff] }
 0x105   : > { %3637 = vmatpush3.bf16.xpose.msra.mxu0 %v1163_v0  ;;  %v3210_v0 = vld [vmem:[%s4117_s25 + $0x15b] sm:$0xff] }
 0x106   : > { %3655 = vmatpush3.bf16.xpose.msra.mxu1 %v1211_v19  ;;  %3966 = vmatprep.subr.msk.bf16.mxu0 %vm390_vm0, %v1397_v18  ;;  %v1393_v18 = vpack.c.bf16 %v3178_v5, %v3177_v4  ;;  %v1409_v19 = vpack.c.bf16 %v3210_v0, %v3209_v6  ;;  %v3256_v4 = vld [vmem:[%s4117_s25 + $0xac] sm:$0xff]  ;;  %v3287_v5 = vld [vmem:[%s4117_s25 + $0x1a4] sm:$0xff] }
 0x107   : > { %3974 = vmatprep.subr.msk.bf16.mxu1 %vm390_vm0, %v1413_v20  ;;  %v3195_v20 = vld [vmem:[%s4117_s25 + $0xe3] sm:$0xff]  ;;  %v3288_v6 = vld [vmem:[%s4117_s25 + $0x1ac] sm:$0xff] }
 0x108   : > { %v1439_v33 = vsel %vm390_vm0, %v1393_v18, 0  ;;  %v1402_v39 = vpack.c.bf16 %v3196_v31, %v3195_v20  ;;  %v1487_v34 = vsel %vm390_vm0, %v1409_v19, 0  ;;  %v4690_v20 = vpack.c.bf16 %v3288_v6, %v3287_v5  ;;  %v3239_v31 = vld [vmem:[%s4117_s25 + $0x24] sm:$0xff] }
 0x10c   : > { %3639 = vmatmul.mubr.msk.bf16.vlgmr.msra.gmra.mrb[0].mxu0 %vm390_vm0, %v4509_v40 }
 0x10d   : > { %3657 = vmatmul.mubr.msk.bf16.vlgmr.msra.gmra.mrb[0].mxu1 %vm390_vm0, %v4509_v40  ;;  %3659 = vmatpush3.bf16.xpose.msra.mxu0 %v1427_v45  ;;  %v3226_v40 = vld [vmem:[%s4117_s25 + $0x1db] sm:$0xff]  ;;  %v3212_v45 = vld [vmem:[%s4117_s25 + $0x16b] sm:$0xff] }
 0x10e   : > { %3677 = vmatpush3.bf16.xpose.msra.mxu1 %v1475_v48  ;;  %3967 = vmatprep.subr.msk.bf16.mxu0 %vm390_vm0, %v1398_v46  ;;  %v1417_v3 = vpack.c.bf16 %v3226_v40, %v3225_v38  ;;  %v1394_v46 = vpack.c.bf16 %v3180_v41, %v3179_v43  ;;  %v1410_v48 = vpack.c.bf16 %v3212_v45, %v3211_v44  ;;  %v3238_v38 = vld [vmem:[%s4117_s25 + $0x1c] sm:$0xff]  ;;  %v3269_v40 = vld [vmem:[%s4117_s25 + $0x114] sm:$0xff] }
 0x10f   : > { %3975 = vmatprep.subr.msk.bf16.mxu1 %vm390_vm0, %v1414_v49  ;;  %3674 = vmatprep.mubr.msk.bf16.mxu0 %vm390_vm0, %v4579_v56  ;;  %v3197_v49 = vld [vmem:[%s4117_s25 + $0xf3] sm:$0xff]  ;;  %v3258_v41 = vld [vmem:[%s4117_s25 + $0xbc] sm:$0xff] }
 0x110   : > { %3692 = vmatprep.mubr.msk.bf16.mxu1 %vm390_vm0, %v4579_v56  ;;  %v1442_v54 = vsel %vm390_vm0, %v1394_v46, 0  ;;  %v1403_v57 = vpack.c.bf16 %v3198_v50, %v3197_v49  ;;  %v1490_v58 = vsel %vm390_vm0, %v1410_v48, 0  ;;  %v3257_v43 = vld [vmem:[%s4117_s25 + $0xb4] sm:$0xff]  ;;  %v3290_v44 = vld [vmem:[%s4117_s25 + $0x1bc] sm:$0xff] }
 0x111   : > { %v4720_v46 = vpack.c.bf16 %v3258_v41, %v3257_v43  ;;  %v3241_v50 = vld [vmem:[%s4117_s25 + $0x34] sm:$0xff]  ;;  %v3298_v41 = vld [vmem:[%s4117_s25 + $0x1fc] sm:$0xff] }
 0x112   : > { %v3297_v43 = vld [vmem:[%s4117_s25 + $0x1f4] sm:$0xff] }
 0x115   : > { %3661 = vmatpush3.bf16.xpose.msra.mxu0 %v1430_v1  ;;  %v3214_v1 = vld [vmem:[%s4117_s25 + $0x17b] sm:$0xff] }
 0x116   : > { %3679 = vmatpush3.bf16.xpose.msra.mxu1 %v1478_v2  ;;  %3968 = vmatprep.subr.msk.bf16.mxu0 %vm390_vm0, %v1399_v11  ;;  %v1395_v11 = vpack.c.bf16 %v3182_v62, %v3181_v61  ;;  %v1411_v2 = vpack.c.bf16 %v3214_v1, %v3213_v63  ;;  %v3260_v61 = vld [vmem:[%s4117_s25 + $0xcc] sm:$0xff]  ;;  %v3291_v62 = vld [vmem:[%s4117_s25 + $0x1c4] sm:$0xff] }
 0x117   : > { %3976 = vmatprep.subr.msk.bf16.mxu1 %vm390_vm0, %v1415_v7  ;;  %v3199_v7 = vld [vmem:[%s4117_s25 + $0x103] sm:$0xff]  ;;  %v3292_v63 = vld [vmem:[%s4117_s25 + $0x1cc] sm:$0xff] }
 0x118   : > { %v1445_v12 = vsel %vm390_vm0, %v1395_v11, 0  ;;  %v1404_v13 = vpack.c.bf16 %v3200_v8, %v3199_v7  ;;  %v1493_v14 = vsel %vm390_vm0, %v1411_v2, 0  ;;  %v4749_v7 = vpack.c.bf16 %v3292_v63, %v3291_v62  ;;  %v3243_v8 = vld [vmem:[%s4117_s25 + $0x44] sm:$0xff]  ;;  %v3268_v63 = vld [vmem:[%s4117_s25 + $0x10c] sm:$0xff] }
 0x119   : > { %v3267_v62 = vld [vmem:[%s4117_s25 + $0x104] sm:$0xff] }
 0x11d   : > { %3663 = vmatpush3.bf16.xpose.msra.mxu0 %v1433_v22  ;;  %v3216_v22 = vld [vmem:[%s4117_s25 + $0x18b] sm:$0xff] }
 0x11e   : > { %3681 = vmatpush3.bf16.xpose.msra.mxu1 %v1481_v24  ;;  %3969 = vmatprep.subr.msk.bf16.mxu0 %vm390_vm0, %v1400_v23  ;;  %v1396_v23 = vpack.c.bf16 %v3184_v17, %v3183_v16  ;;  %v1412_v24 = vpack.c.bf16 %v3216_v22, %v3215_v21  ;;  %v3262_v16 = vld [vmem:[%s4117_s25 + $0xdc] sm:$0xff]  ;;  %v3293_v17 = vld [vmem:[%s4117_s25 + $0x1d4] sm:$0xff] }
 0x11f   : > { %3977 = vmatprep.subr.msk.bf16.mxu1 %vm390_vm0, %v1416_v25  ;;  %v3253_v25 = vld [vmem:[%s4117_s25 + $0x94] sm:$0xff]  ;;  %v3294_v21 = vld [vmem:[%s4117_s25 + $0x1dc] sm:$0xff] }
 0x120   : > { %v1448_v29 = vsel %vm390_vm0, %v1396_v23, 0  ;;  %v4666_v30 = vpack.c.bf16 %v3254_v26, %v3253_v25  ;;  %v1496_v35 = vsel %vm390_vm0, %v1412_v24, 0  ;;  %v4773_v25 = vpack.c.bf16 %v3294_v21, %v3293_v17  ;;  %v3245_v26 = vld [vmem:[%s4117_s25 + $0x54] sm:$0xff]  ;;  %v3283_v17 = vld [vmem:[%s4117_s25 + $0x184] sm:$0xff]  ;;  %v3284_v21 = vld [vmem:[%s4117_s25 + $0x18c] sm:$0xff] }
 0x125   : > { %3665 = vmatpush3.bf16.xpose.msra.mxu0 %v1436_v53  ;;  %v3270_v53 = vld [vmem:[%s4117_s25 + $0x11c] sm:$0xff] }
 0x126   : > { %3683 = vmatpush3.bf16.xpose.msra.mxu1 %v1484_v60  ;;  %3970 = vmatprep.subr.msk.bf16.mxu0 %vm390_vm0, %v1401_v55  ;;  %v1674_v55 = vpack.c.bf16 %v3238_v38, %v3237_v37  ;;  %v4679_v60 = vpack.c.bf16 %v3270_v53, %v3269_v40  ;;  %v3263_v38 = vld [vmem:[%s4117_s25 + $0xe4] sm:$0xff]  ;;  %v3264_v40 = vld [vmem:[%s4117_s25 + $0xec] sm:$0xff] }
 0x127   : > { %3978 = vmatprep.subr.msk.bf16.mxu1 %vm390_vm0, %v1417_v3  ;;  %v3255_v3 = vld [vmem:[%s4117_s25 + $0xa4] sm:$0xff] }
 0x128   : > { %v1712_v0 = vsel %vm390_vm0, %v1674_v55, 0  ;;  %v4686_v18 = vpack.c.bf16 %v3256_v4, %v3255_v3  ;;  %v1760_v19 = vsel %vm390_vm0, %v4679_v60, 0  ;;  %v3295_v53 = vld [vmem:[%s4117_s25 + $0x1e4] sm:$0xff]  ;;  %v3296_v55 = vld [vmem:[%s4117_s25 + $0x1ec] sm:$0xff]  ;;  %v4792_v4 = vpack.c.bf16 %v3264_v40, %v3263_v38 }
 0x129   : > { %v4797_v6 = vpack.c.bf16 %v3296_v55, %v3295_v53  ;;  %v3392_v38 = vld [vmem:[%s4117_s25 + $0xbd] sm:$0xff] }
 0x12a   : > { %v3424_v40 = vld [vmem:[%s4117_s25 + $0x1bd] sm:$0xff] }
 0x12d   : > { %3667 = vmatpush3.bf16.xpose.msra.mxu0 %v1439_v33  ;;  %v3272_v33 = vld [vmem:[%s4117_s25 + $0x12c] sm:$0xff] }
 0x12e   : > { %3685 = vmatpush3.bf16.xpose.msra.mxu1 %v1487_v34  ;;  %3971 = vmatprep.subr.msk.bf16.mxu0 %vm390_vm0, %v1402_v39  ;;  %v4701_v39 = vld [vmem:[%s5180_s1 + $0x14] sm:$0xf]  ;;  %v1675_v34 = vpack.c.bf16 %v3240_v47, %v3239_v31  ;;  %v3279_v31 = vld [vmem:[%s4117_s25 + $0x164] sm:$0xff]  ;;  %v3280_v47 = vld [vmem:[%s4117_s25 + $0x16c] sm:$0xff] }
 0x12f   : > { %3979 = vmatprep.subr.msk.bf16.mxu1 %vm390_vm0, %v1418_v42  ;;  %v1691_v42 = vpack.c.bf16 %v3272_v33, %v3271_v32  ;;  %v1695_v33 = vpack.c.bf16 %v3280_v47, %v3279_v31  ;;  %v4914_v31 = vld [vmem:[%s5180_s1 + $0x1c] sm:$0xf] }
 0x130   : > { %v4718_v45 = vsel %vm390_vm0, %v1675_v34, 0  ;;  %v3265_v34 = vld [vmem:[%s4117_s25 + $0xf4] sm:$0xff] }
 0x131   : > { %v4723_v48 = vsel %vm390_vm0, %v1691_v42, 0  ;;  %v3266_v42 = vld [vmem:[%s4117_s25 + $0xfc] sm:$0xff] }
 0x135   : > { %3669 = vmatpush3.bf16.xpose.msra.mxu0 %v1442_v54  ;;  %v3274_v54 = vld [vmem:[%s4117_s25 + $0x13c] sm:$0xff] }
 0x136   : > { %3687 = vmatpush3.bf16.xpose.msra.mxu1 %v1490_v58  ;;  %3972 = vmatprep.subr.msk.bf16.mxu0 %vm390_vm0, %v1403_v57  ;;  %v1676_v57 = vpack.c.bf16 %v3242_v51, %v3241_v50  ;;  %v1692_v58 = vpack.c.bf16 %v3274_v54, %v3273_v52  ;;  %v1775_v50 = vsel %vm390_vm0, %v1695_v33, 0  ;;  %v1704_v51 = vpack.c.bf16 %v3298_v41, %v3297_v43  ;;  %v3249_v52 = vld [vmem:[%s4117_s25 + $0x74] sm:$0xff]  ;;  %v3250_v54 = vld [vmem:[%s4117_s25 + $0x7c] sm:$0xff]  ;;  %v3393_v33 = vld [vmem:[%s4117_s25 + $0xc5] sm:$0xff] }
 0x137   : > { %3980 = vmatprep.subr.msk.bf16.mxu1 %vm390_vm0, %v1419_v59  ;;  %v3259_v59 = vld [vmem:[%s4117_s25 + $0xc4] sm:$0xff]  ;;  %v3426_v43 = vld [vmem:[%s4117_s25 + $0x1cd] sm:$0xff] }
 0x138   : > { %v4742_v1 = vsel %vm390_vm0, %v1676_v57, 0  ;;  %v4744_v11 = vpack.c.bf16 %v3260_v61, %v3259_v59  ;;  %v4747_v2 = vsel %vm390_vm0, %v1692_v58, 0  ;;  %v3281_v57 = vld [vmem:[%s4117_s25 + $0x174] sm:$0xff]  ;;  %v3282_v58 = vld [vmem:[%s4117_s25 + $0x17c] sm:$0xff]  ;;  %v1680_v59 = vpack.c.bf16 %v3250_v54, %v3249_v52  ;;  %v3409_v54 = vld [vmem:[%s4117_s25 + $0x145] sm:$0xff] }
 0x139   : > { %v1696_v61 = vpack.c.bf16 %v3282_v58, %v3281_v57  ;;  %v3378_v52 = vld [vmem:[%s4117_s25 + $0x4d] sm:$0xff] }
 0x13a   : > { %v3410_v57 = vld [vmem:[%s4117_s25 + $0x14d] sm:$0xff] }
 0x13d   : > { %3671 = vmatpush3.bf16.xpose.msra.mxu0 %v1445_v12  ;;  %v3276_v12 = vld [vmem:[%s4117_s25 + $0x14c] sm:$0xff] }
 0x13e   : > { %3689 = vmatpush3.bf16.xpose.msra.mxu1 %v1493_v14  ;;  %3973 = vmatprep.subr.msk.bf16.mxu0 %vm390_vm0, %v1404_v13  ;;  %v1677_v13 = vpack.c.bf16 %v3244_v9, %v3243_v8  ;;  %v1693_v14 = vpack.c.bf16 %v3276_v12, %v3275_v10  ;;  %v3299_v8 = vld [vmem:[%s4117_s25 + $0x204] sm:$0xff]  ;;  %v3300_v9 = vld [vmem:[%s4117_s25 + $0x20c] sm:$0xff]  ;;  %v1730_v10 = vsel %vm390_vm0, %v1680_v59, 0  ;;  %v1689_v12 = vpack.c.bf16 %v3268_v63, %v3267_v62  ;;  %v3427_v63 = vld [vmem:[%s4117_s25 + $0x1d5] sm:$0xff] }
 0x13f   : > { %3981 = vmatprep.subr.msk.bf16.mxu1 %vm390_vm0, %v1420_v15  ;;  %v3261_v15 = vld [vmem:[%s4117_s25 + $0xd4] sm:$0xff]  ;;  %v2262_v59 = vpack.c.bf16 %v3410_v57, %v3409_v54  ;;  %v3396_v62 = vld [vmem:[%s4117_s25 + $0xdd] sm:$0xff] }
 0x140   : > { %v4766_v22 = vsel %vm390_vm0, %v1677_v13, 0  ;;  %v4768_v23 = vpack.c.bf16 %v3262_v16, %v3261_v15  ;;  %v4771_v24 = vsel %vm390_vm0, %v1693_v14, 0  ;;  %v1778_v13 = vsel %vm390_vm0, %v1696_v61, 0  ;;  %v3251_v15 = vld [vmem:[%s4117_s25 + $0x84] sm:$0xff]  ;;  %v3252_v16 = vld [vmem:[%s4117_s25 + $0x8c] sm:$0xff]  ;;  %v3395_v61 = vld [vmem:[%s4117_s25 + $0xd5] sm:$0xff] }
 0x141   : > { %v1705_v14 = vpack.c.bf16 %v3300_v9, %v3299_v8  ;;  %v3428_v8 = vld [vmem:[%s4117_s25 + $0x1dd] sm:$0xff] }
 0x142   : > { %v3436_v54 = vld [vmem:[%s4117_s25 + $0x21d] sm:$0xff] }
 0x145   : > { %3673 = vmatpush3.bf16.xpose.msra.mxu0 %v1448_v29  ;;  %v3278_v29 = vld [vmem:[%s4117_s25 + $0x15c] sm:$0xff] }
 0x146   : > { %3691 = vmatpush3.bf16.xpose.msra.mxu1 %v1496_v35  ;;  %3982 = vmatprep.subr.msk.bf16.mxu0 %vm390_vm0, %v4666_v30  ;;  %v1678_v35 = vpack.c.bf16 %v3246_v27, %v3245_v26  ;;  %v1694_v37 = vpack.c.bf16 %v3278_v29, %v3277_v28  ;;  %v1681_v26 = vpack.c.bf16 %v3252_v16, %v3251_v15  ;;  %v3380_v15 = vld [vmem:[%s4117_s25 + $0x5d] sm:$0xff]  ;;  %v3411_v16 = vld [vmem:[%s4117_s25 + $0x155] sm:$0xff] }
 0x147   : > { %3990 = vmatprep.subr.msk.bf16.mxu1 %vm390_vm0, %v4669_v36  ;;  %v1697_v27 = vpack.c.bf16 %v3284_v21, %v3283_v17  ;;  %v3412_v17 = vld [vmem:[%s4117_s25 + $0x15d] sm:$0xff] }
 0x148   : > { %v4790_v3 = vsel %vm390_vm0, %v1678_v35, 0  ;;  %v4795_v5 = vsel %vm390_vm0, %v1694_v37, 0  ;;  %v1733_v28 = vsel %vm390_vm0, %v1681_v26, 0  ;;  %v4844_v35 = vld [vmem:[%s5180_s1 + $0x18] sm:$0xf]  ;;  %v2263_v26 = vpack.c.bf16 %v3412_v17, %v3411_v16  ;;  %v3490_v16 = vld [vmem:[%s4117_s25 + $0x1ae] sm:$0xff] }
 0x149   : > { %v1781_v29 = vsel %vm390_vm0, %v1697_v27, 0  ;;  %v3391_v37 = vld [vmem:[%s4117_s25 + $0xb5] sm:$0xff]  ;;  %v3397_v27 = vld [vmem:[%s4117_s25 + $0xe5] sm:$0xff] }
 0x14a   : > { %v2253_v55 = vpack.c.bf16 %v3392_v38, %v3391_v37  ;;  %v3383_v38 = vld [vmem:[%s4117_s25 + $0x75] sm:$0xff] }
 0x14c   : > { %3675 = vmatmul.mubr.msk.bf16.vlgmr.msra.gmra.mrb[0].mxu0 %vm390_vm0, %v4579_v56 }
 0x14d   : > { %3693 = vmatmul.mubr.msk.bf16.vlgmr.msra.gmra.mrb[0].mxu1 %vm390_vm0, %v4579_v56  ;;  %3695 = vmatpush3.bf16.xpose.msra.mxu0 %v1712_v0  ;;  %v3289_v56 = vld [vmem:[%s4117_s25 + $0x1b4] sm:$0xff]  ;;  %v3247_v0 = vld [vmem:[%s4117_s25 + $0x64] sm:$0xff] }
 0x14e   : > { %3713 = vmatpush3.bf16.xpose.msra.mxu1 %v1760_v19  ;;  %3983 = vmatprep.subr.msk.bf16.mxu0 %vm390_vm0, %v4686_v18  ;;  %v4725_v49 = vpack.c.bf16 %v3290_v44, %v3289_v56  ;;  %v3248_v19 = vld [vmem:[%s4117_s25 + $0x6c] sm:$0xff]  ;;  %v1688_v44 = vpack.c.bf16 %v3266_v42, %v3265_v34 }
 0x14f   : > { %3991 = vmatprep.subr.msk.bf16.mxu1 %vm390_vm0, %v4690_v20  ;;  %3710 = vmatprep.mubr.msk.bf16.mxu0 %vm390_vm0, %v4701_v39  ;;  %v1679_v32 = vpack.c.bf16 %v3248_v19, %v3247_v0  ;;  %v3407_v0 = vld [vmem:[%s4117_s25 + $0x135] sm:$0xff]  ;;  %v3408_v19 = vld [vmem:[%s4117_s25 + $0x13d] sm:$0xff]  ;;  %v3394_v34 = vld [vmem:[%s4117_s25 + $0xcd] sm:$0xff] }
 0x150   : > { %3728 = vmatprep.mubr.msk.bf16.mxu1 %vm390_vm0, %v4701_v39  ;;  %v3425_v42 = vld [vmem:[%s4117_s25 + $0x1c5] sm:$0xff] }
 0x151   : > { %v1727_v56 = vsel %vm390_vm0, %v1679_v32, 0  ;;  %v2261_v32 = vpack.c.bf16 %v3408_v19, %v3407_v0  ;;  %v3434_v0 = vld [vmem:[%s4117_s25 + $0x20d] sm:$0xff] }
 0x155   : > { %3697 = vmatpush3.bf16.xpose.msra.mxu0 %v4718_v45 }
 0x156   : > { %3715 = vmatpush3.bf16.xpose.msra.mxu1 %v4723_v48  ;;  %3984 = vmatprep.subr.msk.bf16.mxu0 %vm390_vm0, %v4720_v46 }
 0x157   : > { %3992 = vmatprep.subr.msk.bf16.mxu1 %vm390_vm0, %v4725_v49 }
 0x15d   : > { %3699 = vmatpush3.bf16.xpose.msra.mxu0 %v4742_v1 }
 0x15e   : > { %3717 = vmatpush3.bf16.xpose.msra.mxu1 %v4747_v2  ;;  %3985 = vmatprep.subr.msk.bf16.mxu0 %vm390_vm0, %v4744_v11 }
 0x15f   : > { %3993 = vmatprep.subr.msk.bf16.mxu1 %vm390_vm0, %v4749_v7 }
 0x165   : > { %3701 = vmatpush3.bf16.xpose.msra.mxu0 %v4766_v22 }
 0x166   : > { %3719 = vmatpush3.bf16.xpose.msra.mxu1 %v4771_v24  ;;  %3986 = vmatprep.subr.msk.bf16.mxu0 %vm390_vm0, %v4768_v23 }
 0x167   : > { %3994 = vmatprep.subr.msk.bf16.mxu1 %vm390_vm0, %v4773_v25 }
 0x16d   : > { %3703 = vmatpush3.bf16.xpose.msra.mxu0 %v4790_v3 }
 0x16e   : > { %3721 = vmatpush3.bf16.xpose.msra.mxu1 %v4795_v5  ;;  %3987 = vmatprep.subr.msk.bf16.mxu0 %vm390_vm0, %v4792_v4 }
 0x16f   : > { %3995 = vmatprep.subr.msk.bf16.mxu1 %vm390_vm0, %v4797_v6 }
 0x175   : > { %3705 = vmatpush3.bf16.xpose.msra.mxu0 %v1727_v56 }
 0x176   : > { %3723 = vmatpush3.bf16.xpose.msra.mxu1 %v1775_v50  ;;  %3988 = vmatprep.subr.msk.bf16.mxu0 %vm390_vm0, %v1688_v44 }
 0x177   : > { %3996 = vmatprep.subr.msk.bf16.mxu1 %vm390_vm0, %v1704_v51 }
 0x17d   : > { %3707 = vmatpush3.bf16.xpose.msra.mxu0 %v1730_v10 }
 0x17e   : > { %3725 = vmatpush3.bf16.xpose.msra.mxu1 %v1778_v13  ;;  %3989 = vmatprep.subr.msk.bf16.mxu0 %vm390_vm0, %v1689_v12 }
 0x17f   : > { %3997 = vmatprep.subr.msk.bf16.mxu1 %vm390_vm0, %v1705_v14 }
 0x185   : > { %3709 = vmatpush3.bf16.xpose.msra.mxu0 %v1733_v28 }
 0x186   : > { %3727 = vmatpush3.bf16.xpose.msra.mxu1 %v1781_v29  ;;  %3998 = vmatprep.subr.msk.bf16.mxu0 %vm390_vm0, %v4686_v18  ;;  %v3367_v18 = vld [vmem:[%s4117_s25 + $0x214] sm:$0xff] }
 0x187   : > { %4006 = vmatprep.subr.msk.bf16.mxu1 %vm390_vm0, %v4690_v20  ;;  %v3368_v20 = vld [vmem:[%s4117_s25 + $0x21c] sm:$0xff] }
 0x18c   : > { %3711 = vmatmul.mubr.msk.bf16.vlgmr.msra.gmra.mrb[0].mxu0 %vm390_vm0, %v4701_v39 }
 0x18d   : > { %3729 = vmatmul.mubr.msk.bf16.vlgmr.msra.gmra.mrb[0].mxu1 %vm390_vm0, %v4701_v39  ;;  %3731 = vmatpush3.bf16.xpose.msra.mxu0 %v4718_v45  ;;  %v1990_v39 = vpack.c.bf16 %v3368_v20, %v3367_v18  ;;  %v3389_v45 = vld [vmem:[%s4117_s25 + $0xa5] sm:$0xff] }
 0x18e   : > { %3749 = vmatpush3.bf16.xpose.msra.mxu1 %v4723_v48  ;;  %3999 = vmatprep.subr.msk.bf16.mxu0 %vm390_vm0, %v4720_v46  ;;  %v3390_v46 = vld [vmem:[%s4117_s25 + $0xad] sm:$0xff]  ;;  %v3421_v48 = vld [vmem:[%s4117_s25 + $0x1a5] sm:$0xff] }
 0x18f   : > { %4007 = vmatprep.subr.msk.bf16.mxu1 %vm390_vm0, %v4725_v49  ;;  %3746 = vmatprep.mubr.msk.bf16.mxu0 %vm390_vm0, %v4844_v35  ;;  %v3422_v49 = vld [vmem:[%s4117_s25 + $0x1ad] sm:$0xff] }
 0x190   : > { %3764 = vmatprep.mubr.msk.bf16.mxu1 %vm390_vm0, %v4844_v35 }
 0x195   : > { %3733 = vmatpush3.bf16.xpose.msra.mxu0 %v4742_v1  ;;  %v2018_v1 = vsel %vm390_vm0, %v4666_v30, 0 }
 0x196   : > { %3751 = vmatpush3.bf16.xpose.msra.mxu1 %v4747_v2  ;;  %4000 = vmatprep.subr.msk.bf16.mxu0 %vm390_vm0, %v4744_v11  ;;  %v2252_v11 = vpack.c.bf16 %v3390_v46, %v3389_v45  ;;  %v2066_v2 = vsel %vm390_vm0, %v4669_v36, 0  ;;  %v3423_v36 = vld [vmem:[%s4117_s25 + $0x1b5] sm:$0xff]  ;;  %v3381_v46 = vld [vmem:[%s4117_s25 + $0x65] sm:$0xff] }
 0x197   : > { %4008 = vmatprep.subr.msk.bf16.mxu1 %vm390_vm0, %v4749_v7  ;;  %v2268_v7 = vpack.c.bf16 %v3422_v49, %v3421_v48  ;;  %v3382_v48 = vld [vmem:[%s4117_s25 + $0x6d] sm:$0xff]  ;;  %v3413_v49 = vld [vmem:[%s4117_s25 + $0x165] sm:$0xff] }
 0x19d   : > { %3735 = vmatpush3.bf16.xpose.msra.mxu0 %v4766_v22  ;;  %v3373_v22 = vld [vmem:[%s4117_s25 + $0x25] sm:$0xff] }
 0x19e   : > { %3753 = vmatpush3.bf16.xpose.msra.mxu1 %v4771_v24  ;;  %4001 = vmatprep.subr.msk.bf16.mxu0 %vm390_vm0, %v4768_v23  ;;  %v3405_v23 = vld [vmem:[%s4117_s25 + $0x125] sm:$0xff]  ;;  %v3406_v24 = vld [vmem:[%s4117_s25 + $0x12d] sm:$0xff] }
 0x19f   : > { %4009 = vmatprep.subr.msk.bf16.mxu1 %vm390_vm0, %v4773_v25  ;;  %v2260_v25 = vpack.c.bf16 %v3406_v24, %v3405_v23  ;;  %v3432_v23 = vld [vmem:[%s4117_s25 + $0x1fd] sm:$0xff] }
 0x1a5   : > { %3737 = vmatpush3.bf16.xpose.msra.mxu0 %v4790_v3  ;;  %v2330_v3 = vsel %vm390_vm0, %v2260_v25, 0 }
 0x1a6   : > { %3755 = vmatpush3.bf16.xpose.msra.mxu1 %v4795_v5  ;;  %4002 = vmatprep.subr.msk.bf16.mxu0 %vm390_vm0, %v4792_v4  ;;  %v2269_v4 = vpack.c.bf16 %v3424_v40, %v3423_v36  ;;  %v3375_v5 = vld [vmem:[%s4117_s25 + $0x35] sm:$0xff]  ;;  %v3384_v36 = vld [vmem:[%s4117_s25 + $0x7d] sm:$0xff] }
 0x1a7   : > { %4010 = vmatprep.subr.msk.bf16.mxu1 %vm390_vm0, %v4797_v6  ;;  %v3376_v6 = vld [vmem:[%s4117_s25 + $0x3d] sm:$0xff]  ;;  %v3415_v40 = vld [vmem:[%s4117_s25 + $0x175] sm:$0xff] }
 0x1a8   : > { %v2245_v47 = vpack.c.bf16 %v3376_v6, %v3375_v5  ;;  %v3402_v5 = vld [vmem:[%s4117_s25 + $0x10d] sm:$0xff]  ;;  %v3433_v6 = vld [vmem:[%s4117_s25 + $0x205] sm:$0xff] }
 0x1aa   : > { %v2285_v41 = vsel %vm390_vm0, %v2245_v47, 0 }
 0x1ad   : > { %3739 = vmatpush3.bf16.xpose.msra.mxu0 %v1727_v56  ;;  %v2254_v56 = vpack.c.bf16 %v3394_v34, %v3393_v33  ;;  %v2274_v33 = vpack.c.bf16 %v3434_v0, %v3433_v6  ;;  %v3385_v34 = vld [vmem:[%s4117_s25 + $0x85] sm:$0xff]  ;;  %v3446_v6 = vld [vmem:[%s4117_s25 + $0x4e] sm:$0xff] }
 0x1ae   : > { %3757 = vmatpush3.bf16.xpose.msra.mxu1 %v1775_v50  ;;  %4003 = vmatprep.subr.msk.bf16.mxu0 %vm390_vm0, %v1688_v44  ;;  %v2333_v44 = vsel %vm390_vm0, %v2261_v32, 0  ;;  %v2270_v50 = vpack.c.bf16 %v3426_v43, %v3425_v42  ;;  %v3386_v42 = vld [vmem:[%s4117_s25 + $0x8d] sm:$0xff]  ;;  %v3417_v43 = vld [vmem:[%s4117_s25 + $0x185] sm:$0xff] }
 0x1af   : > { %4011 = vmatprep.subr.msk.bf16.mxu1 %vm390_vm0, %v1704_v51  ;;  %v3377_v51 = vld [vmem:[%s4117_s25 + $0x45] sm:$0xff] }
 0x1b0   : > { %v2246_v58 = vpack.c.bf16 %v3378_v52, %v3377_v51  ;;  %v3404_v51 = vld [vmem:[%s4117_s25 + $0x11d] sm:$0xff]  ;;  %v3435_v52 = vld [vmem:[%s4117_s25 + $0x215] sm:$0xff]  ;;  %v3477_v0 = vld [vmem:[%s4117_s25 + $0x146] sm:$0xff] }
 0x1b2   : > { %v2288_v9 = vsel %vm390_vm0, %v2246_v58, 0 }
 0x1b5   : > { %3741 = vmatpush3.bf16.xpose.msra.mxu0 %v1730_v10  ;;  %v2255_v10 = vpack.c.bf16 %v3396_v62, %v3395_v61  ;;  %v2275_v61 = vpack.c.bf16 %v3436_v54, %v3435_v52  ;;  %v3387_v62 = vld [vmem:[%s4117_s25 + $0x95] sm:$0xff]  ;;  %v3448_v52 = vld [vmem:[%s4117_s25 + $0x5e] sm:$0xff] }
 0x1b6   : > { %3759 = vmatpush3.bf16.xpose.msra.mxu1 %v1778_v13  ;;  %4004 = vmatprep.subr.msk.bf16.mxu0 %vm390_vm0, %v1689_v12  ;;  %v2336_v12 = vsel %vm390_vm0, %v2262_v59, 0  ;;  %v2271_v13 = vpack.c.bf16 %v3428_v8, %v3427_v63  ;;  %v3388_v63 = vld [vmem:[%s4117_s25 + $0x9d] sm:$0xff]  ;;  %v3419_v8 = vld [vmem:[%s4117_s25 + $0x195] sm:$0xff] }
 0x1b7   : > { %4012 = vmatprep.subr.msk.bf16.mxu1 %vm390_vm0, %v1705_v14  ;;  %v3379_v14 = vld [vmem:[%s4117_s25 + $0x55] sm:$0xff] }
 0x1b8   : > { %v2247_v21 = vpack.c.bf16 %v3380_v15, %v3379_v14  ;;  %v3458_v14 = vld [vmem:[%s4117_s25 + $0xae] sm:$0xff]  ;;  %v3489_v15 = vld [vmem:[%s4117_s25 + $0x1a6] sm:$0xff]  ;;  %v3479_v54 = vld [vmem:[%s4117_s25 + $0x156] sm:$0xff] }
 0x1ba   : > { %v2291_v18 = vsel %vm390_vm0, %v2247_v21, 0 }
 0x1bd   : > { %3743 = vmatpush3.bf16.xpose.msra.mxu0 %v1733_v28  ;;  %v3398_v28 = vld [vmem:[%s4117_s25 + $0xed] sm:$0xff] }
 0x1be   : > { %3761 = vmatpush3.bf16.xpose.msra.mxu1 %v1781_v29  ;;  %4005 = vmatprep.subr.msk.bf16.mxu0 %vm390_vm0, %v4679_v60  ;;  %v3374_v60 = vld [vmem:[%s4117_s25 + $0x2d] sm:$0xff]  ;;  %v3429_v29 = vld [vmem:[%s4117_s25 + $0x1e5] sm:$0xff]  ;;  %v2256_v20 = vpack.c.bf16 %v3398_v28, %v3397_v27  ;;  %v2553_v27 = vpack.c.bf16 %v3490_v16, %v3489_v15 }
 0x1bf   : > { %4013 = vmatprep.subr.msk.bf16.mxu1 %vm390_vm0, %v1990_v39  ;;  %v2244_v30 = vpack.c.bf16 %v3374_v60, %v3373_v22  ;;  %v2339_v39 = vsel %vm390_vm0, %v2263_v26, 0  ;;  %v3400_v22 = vld [vmem:[%s4117_s25 + $0xfd] sm:$0xff]  ;;  %v3431_v60 = vld [vmem:[%s4117_s25 + $0x1f5] sm:$0xff]  ;;  %v3441_v28 = vld [vmem:[%s4117_s25 + $0x26] sm:$0xff] }
 0x1c0   : > { %v2273_v37 = vpack.c.bf16 %v3432_v23, %v3431_v60  ;;  %v3444_v60 = vld [vmem:[%s4117_s25 + $0x3e] sm:$0xff]  ;;  %v3475_v23 = vld [vmem:[%s4117_s25 + $0x136] sm:$0xff]  ;;  %v3450_v15 = vld [vmem:[%s4117_s25 + $0x6e] sm:$0xff] }
 0x1c1   : > { %v2282_v53 = vsel %vm390_vm0, %v2244_v30, 0  ;;  %v3481_v16 = vld [vmem:[%s4117_s25 + $0x166] sm:$0xff] }
 0x1c5   : > { %3745 = vmatpush3.bf16.xpose.msra.mxu0 %v2018_v1  ;;  %v3414_v1 = vld [vmem:[%s4117_s25 + $0x16d] sm:$0xff] }
 0x1c6   : > { %3763 = vmatpush3.bf16.xpose.msra.mxu1 %v2066_v2  ;;  %4014 = vmatprep.subr.msk.bf16.mxu0 %vm390_vm0, %v2252_v11  ;;  %v2248_v11 = vpack.c.bf16 %v3382_v48, %v3381_v46  ;;  %v2264_v2 = vpack.c.bf16 %v3414_v1, %v3413_v49  ;;  %v3460_v46 = vld [vmem:[%s4117_s25 + $0xbe] sm:$0xff]  ;;  %v3491_v48 = vld [vmem:[%s4117_s25 + $0x1b6] sm:$0xff] }
 0x1c7   : > { %4022 = vmatprep.subr.msk.bf16.mxu1 %vm390_vm0, %v2268_v7  ;;  %v3399_v7 = vld [vmem:[%s4117_s25 + $0xf5] sm:$0xff]  ;;  %v3492_v49 = vld [vmem:[%s4117_s25 + $0x1be] sm:$0xff] }
 0x1c8   : > { %v2294_v24 = vsel %vm390_vm0, %v2248_v11, 0  ;;  %v2257_v30 = vpack.c.bf16 %v3400_v22, %v3399_v7  ;;  %v2342_v25 = vsel %vm390_vm0, %v2264_v2, 0  ;;  %v2554_v7 = vpack.c.bf16 %v3492_v49, %v3491_v48  ;;  %v3443_v22 = vld [vmem:[%s4117_s25 + $0x36] sm:$0xff]  ;;  %v3452_v48 = vld [vmem:[%s4117_s25 + $0x7e] sm:$0xff] }
 0x1c9   : > { %v3483_v49 = vld [vmem:[%s4117_s25 + $0x176] sm:$0xff] }
 0x1cc   : > { %3747 = vmatmul.mubr.msk.bf16.vlgmr.msra.gmra.mrb[0].mxu0 %vm390_vm0, %v4844_v35 }
 0x1cd   : > { %3765 = vmatmul.mubr.msk.bf16.vlgmr.msra.gmra.mrb[0].mxu1 %vm390_vm0, %v4844_v35  ;;  %3767 = vmatpush3.bf16.xpose.msra.mxu0 %v2282_v53  ;;  %v3430_v35 = vld [vmem:[%s4117_s25 + $0x1ed] sm:$0xff]  ;;  %v3416_v53 = vld [vmem:[%s4117_s25 + $0x17d] sm:$0xff] }
 0x1ce   : > { %3785 = vmatpush3.bf16.xpose.msra.mxu1 %v2330_v3  ;;  %4015 = vmatprep.subr.msk.bf16.mxu0 %vm390_vm0, %v2253_v55  ;;  %v2272_v45 = vpack.c.bf16 %v3430_v35, %v3429_v29  ;;  %v2249_v55 = vpack.c.bf16 %v3384_v36, %v3383_v38  ;;  %v2265_v3 = vpack.c.bf16 %v3416_v53, %v3415_v40  ;;  %v3442_v29 = vld [vmem:[%s4117_s25 + $0x2e] sm:$0xff]  ;;  %v3473_v35 = vld [vmem:[%s4117_s25 + $0x126] sm:$0xff] }
 0x1cf   : > { %4023 = vmatprep.subr.msk.bf16.mxu1 %vm390_vm0, %v2269_v4  ;;  %3782 = vmatprep.mubr.msk.bf16.mxu0 %vm390_vm0, %v4914_v31  ;;  %v3401_v4 = vld [vmem:[%s4117_s25 + $0x105] sm:$0xff]  ;;  %v3462_v36 = vld [vmem:[%s4117_s25 + $0xce] sm:$0xff] }
 0x1d0   : > { %3800 = vmatprep.mubr.msk.bf16.mxu1 %vm390_vm0, %v4914_v31  ;;  %v2297_v19 = vsel %vm390_vm0, %v2249_v55, 0  ;;  %v2258_v47 = vpack.c.bf16 %v3402_v5, %v3401_v4  ;;  %v2345_v32 = vsel %vm390_vm0, %v2265_v3, 0  ;;  %v3461_v38 = vld [vmem:[%s4117_s25 + $0xc6] sm:$0xff]  ;;  %v3494_v53 = vld [vmem:[%s4117_s25 + $0x1ce] sm:$0xff] }
 0x1d1   : > { %v3493_v40 = vld [vmem:[%s4117_s25 + $0x1c6] sm:$0xff]  ;;  %v2539_v55 = vpack.c.bf16 %v3462_v36, %v3461_v38 }
 0x1d2   : > { %v2555_v4 = vpack.c.bf16 %v3494_v53, %v3493_v40  ;;  %v3445_v5 = vld [vmem:[%s4117_s25 + $0x46] sm:$0xff]  ;;  %v3454_v40 = vld [vmem:[%s4117_s25 + $0x8e] sm:$0xff] }
 0x1d3   : > { %v3453_v36 = vld [vmem:[%s4117_s25 + $0x86] sm:$0xff] }
 0x1d4   : > { %v3485_v53 = vld [vmem:[%s4117_s25 + $0x186] sm:$0xff] }
 0x1d5   : > { %3769 = vmatpush3.bf16.xpose.msra.mxu0 %v2285_v41  ;;  %v3418_v41 = vld [vmem:[%s4117_s25 + $0x18d] sm:$0xff] }
 0x1d6   : > { %3787 = vmatpush3.bf16.xpose.msra.mxu1 %v2333_v44  ;;  %4016 = vmatprep.subr.msk.bf16.mxu0 %vm390_vm0, %v2254_v56  ;;  %v2250_v56 = vpack.c.bf16 %v3386_v42, %v3385_v34  ;;  %v2266_v44 = vpack.c.bf16 %v3418_v41, %v3417_v43  ;;  %v3464_v34 = vld [vmem:[%s4117_s25 + $0xde] sm:$0xff]  ;;  %v3495_v42 = vld [vmem:[%s4117_s25 + $0x1d6] sm:$0xff] }
 0x1d7   : > { %4024 = vmatprep.subr.msk.bf16.mxu1 %vm390_vm0, %v2270_v50  ;;  %v3403_v50 = vld [vmem:[%s4117_s25 + $0x115] sm:$0xff]  ;;  %v3496_v43 = vld [vmem:[%s4117_s25 + $0x1de] sm:$0xff] }
 0x1d8   : > { %v2300_v57 = vsel %vm390_vm0, %v2250_v56, 0  ;;  %v2259_v58 = vpack.c.bf16 %v3404_v51, %v3403_v50  ;;  %v2348_v59 = vsel %vm390_vm0, %v2266_v44, 0  ;;  %v2556_v50 = vpack.c.bf16 %v3496_v43, %v3495_v42  ;;  %v3447_v51 = vld [vmem:[%s4117_s25 + $0x56] sm:$0xff]  ;;  %v3456_v42 = vld [vmem:[%s4117_s25 + $0x9e] sm:$0xff] }
 0x1d9   : > { %v3487_v43 = vld [vmem:[%s4117_s25 + $0x196] sm:$0xff] }
 0x1dd   : > { %3771 = vmatpush3.bf16.xpose.msra.mxu0 %v2288_v9  ;;  %v3420_v9 = vld [vmem:[%s4117_s25 + $0x19d] sm:$0xff] }
 0x1de   : > { %3789 = vmatpush3.bf16.xpose.msra.mxu1 %v2336_v12  ;;  %4017 = vmatprep.subr.msk.bf16.mxu0 %vm390_vm0, %v2255_v10  ;;  %v2251_v10 = vpack.c.bf16 %v3388_v63, %v3387_v62  ;;  %v2267_v12 = vpack.c.bf16 %v3420_v9, %v3419_v8  ;;  %v3466_v62 = vld [vmem:[%s4117_s25 + $0xee] sm:$0xff]  ;;  %v3497_v63 = vld [vmem:[%s4117_s25 + $0x1e6] sm:$0xff] }
 0x1df   : > { %4025 = vmatprep.subr.msk.bf16.mxu1 %vm390_vm0, %v2271_v13  ;;  %v3457_v13 = vld [vmem:[%s4117_s25 + $0xa6] sm:$0xff]  ;;  %v3498_v8 = vld [vmem:[%s4117_s25 + $0x1ee] sm:$0xff] }
 0x1e0   : > { %v2303_v17 = vsel %vm390_vm0, %v2251_v10, 0  ;;  %v2537_v21 = vpack.c.bf16 %v3458_v14, %v3457_v13  ;;  %v2351_v26 = vsel %vm390_vm0, %v2267_v12, 0  ;;  %v2557_v13 = vpack.c.bf16 %v3498_v8, %v3497_v63  ;;  %v3449_v14 = vld [vmem:[%s4117_s25 + $0x66] sm:$0xff] }
 0x1e5   : > { %3773 = vmatpush3.bf16.xpose.msra.mxu0 %v2291_v18  ;;  %v3474_v18 = vld [vmem:[%s4117_s25 + $0x12e] sm:$0xff] }
 0x1e6   : > { %3791 = vmatpush3.bf16.xpose.msra.mxu1 %v2339_v39  ;;  %4018 = vmatprep.subr.msk.bf16.mxu0 %vm390_vm0, %v2256_v20  ;;  %v2529_v20 = vpack.c.bf16 %v3442_v29, %v3441_v28  ;;  %v2545_v39 = vpack.c.bf16 %v3474_v18, %v3473_v35  ;;  %v3468_v28 = vld [vmem:[%s4117_s25 + $0xfe] sm:$0xff]  ;;  %v3499_v29 = vld [vmem:[%s4117_s25 + $0x1f6] sm:$0xff] }
 0x1e7   : > { %4026 = vmatprep.subr.msk.bf16.mxu1 %vm390_vm0, %v2272_v45  ;;  %v3459_v45 = vld [vmem:[%s4117_s25 + $0xb6] sm:$0xff]  ;;  %v3500_v35 = vld [vmem:[%s4117_s25 + $0x1fe] sm:$0xff] }
 0x1e8   : > { %v2567_v1 = vsel %vm390_vm0, %v2529_v20, 0  ;;  %v2538_v11 = vpack.c.bf16 %v3460_v46, %v3459_v45  ;;  %v2615_v2 = vsel %vm390_vm0, %v2545_v39, 0  ;;  %v2558_v45 = vpack.c.bf16 %v3500_v35, %v3499_v29  ;;  %v3451_v46 = vld [vmem:[%s4117_s25 + $0x76] sm:$0xff] }
 0x1ed   : > { %3775 = vmatpush3.bf16.xpose.msra.mxu0 %v2294_v24  ;;  %v3476_v24 = vld [vmem:[%s4117_s25 + $0x13e] sm:$0xff] }
 0x1ee   : > { %3793 = vmatpush3.bf16.xpose.msra.mxu1 %v2342_v25  ;;  %4019 = vmatprep.subr.msk.bf16.mxu0 %vm390_vm0, %v2257_v30  ;;  %v5023_v30 = vld [vmem:[%s5180_s1 + $0x20] sm:$0xf]  ;;  %v2530_v25 = vpack.c.bf16 %v3444_v60, %v3443_v22  ;;  %v3470_v22 = vld [vmem:[%s4117_s25 + $0x10e] sm:$0xff]  ;;  %v3501_v60 = vld [vmem:[%s4117_s25 + $0x206] sm:$0xff] }
 0x1ef   : > { %4027 = vmatprep.subr.msk.bf16.mxu1 %vm390_vm0, %v2273_v37  ;;  %v2546_v37 = vpack.c.bf16 %v3476_v24, %v3475_v23  ;;  %v3502_v23 = vld [vmem:[%s4117_s25 + $0x20e] sm:$0xff] }
 0x1f0   : > { %v2559_v38 = vpack.c.bf16 %v3502_v23, %v3501_v60 }
 0x1f1   : > { %v2618_v3 = vsel %vm390_vm0, %v2546_v37, 0 }
 0x1f5   : > { %3777 = vmatpush3.bf16.xpose.msra.mxu0 %v2297_v19  ;;  %v3478_v19 = vld [vmem:[%s4117_s25 + $0x14e] sm:$0xff] }
 0x1f6   : > { %3795 = vmatpush3.bf16.xpose.msra.mxu1 %v2345_v32  ;;  %4020 = vmatprep.subr.msk.bf16.mxu0 %vm390_vm0, %v2258_v47  ;;  %v2531_v47 = vpack.c.bf16 %v3446_v6, %v3445_v5  ;;  %v2547_v32 = vpack.c.bf16 %v3478_v19, %v3477_v0  ;;  %v3472_v5 = vld [vmem:[%s4117_s25 + $0x11e] sm:$0xff]  ;;  %v3503_v6 = vld [vmem:[%s4117_s25 + $0x216] sm:$0xff] }
 0x1f7   : > { %4028 = vmatprep.subr.msk.bf16.mxu1 %vm390_vm0, %v2274_v33  ;;  %v3463_v33 = vld [vmem:[%s4117_s25 + $0xd6] sm:$0xff]  ;;  %v3504_v0 = vld [vmem:[%s4117_s25 + $0x21e] sm:$0xff] }
 0x1f8   : > { %v2573_v41 = vsel %vm390_vm0, %v2531_v47, 0  ;;  %v2540_v56 = vpack.c.bf16 %v3464_v34, %v3463_v33  ;;  %v2621_v44 = vsel %vm390_vm0, %v2547_v32, 0  ;;  %v2560_v33 = vpack.c.bf16 %v3504_v0, %v3503_v6  ;;  %v3455_v34 = vld [vmem:[%s4117_s25 + $0x96] sm:$0xff] }
 0x1fd   : > { %3779 = vmatpush3.bf16.xpose.msra.mxu0 %v2300_v57  ;;  %v3480_v57 = vld [vmem:[%s4117_s25 + $0x15e] sm:$0xff] }
 0x1fe   : > { %3797 = vmatpush3.bf16.xpose.msra.mxu1 %v2348_v59  ;;  %4021 = vmatprep.subr.msk.bf16.mxu0 %vm390_vm0, %v2259_v58  ;;  %v2532_v58 = vpack.c.bf16 %v3448_v52, %v3447_v51  ;;  %v2548_v59 = vpack.c.bf16 %v3480_v57, %v3479_v54 }
 0x1ff   : > { %4029 = vmatprep.subr.msk.bf16.mxu1 %vm390_vm0, %v2275_v61  ;;  %v3465_v61 = vld [vmem:[%s4117_s25 + $0xe6] sm:$0xff] }
 0x200   : > { %v2576_v9 = vsel %vm390_vm0, %v2532_v58, 0  ;;  %v2541_v10 = vpack.c.bf16 %v3466_v62, %v3465_v61  ;;  %v2624_v12 = vsel %vm390_vm0, %v2548_v59, 0 }
 0x205   : > { %3781 = vmatpush3.bf16.xpose.msra.mxu0 %v2303_v17  ;;  %v3482_v17 = vld [vmem:[%s4117_s25 + $0x16e] sm:$0xff] }
 0x206   : > { %3799 = vmatpush3.bf16.xpose.msra.mxu1 %v2351_v26  ;;  %4030 = vmatprep.subr.msk.bf16.mxu0 %vm390_vm0, %v2537_v21  ;;  %v2533_v21 = vpack.c.bf16 %v3450_v15, %v3449_v14  ;;  %v2549_v26 = vpack.c.bf16 %v3482_v17, %v3481_v16  ;;  %v2768_v15 = vld [vmem:[%s5183_s4 + $0x4] sm:$0xf] (!%p3510_p3) }
 0x207   : > { %4038 = vmatprep.subr.msk.bf16.mxu1 %vm390_vm0, %v2553_v27  ;;  %v3467_v27 = vld [vmem:[%s4117_s25 + $0xf6] sm:$0xff] }
 0x208   : > { %v2579_v18 = vsel %vm390_vm0, %v2533_v21, 0  ;;  %v2542_v20 = vpack.c.bf16 %v3468_v28, %v3467_v27  ;;  %v2627_v39 = vsel %vm390_vm0, %v2549_v26, 0 }
 0x20c   : > { %3783 = vmatmul.mubr.msk.bf16.vlgmr.msra.gmra.mrb[0].mxu0 %vm390_vm0, %v4914_v31 }
 0x20d   : > { %3801 = vmatmul.mubr.msk.bf16.vlgmr.msra.gmra.mrb[0].mxu1 %vm390_vm0, %v4914_v31  ;;  %3803 = vmatpush3.bf16.xpose.msra.mxu0 %v2567_v1  ;;  %v2570_v31 = vsel %vm390_vm0, %v2530_v25, 0  ;;  %v3484_v1 = vld [vmem:[%s4117_s25 + $0x17e] sm:$0xff] }
 0x20e   : > { %3821 = vmatpush3.bf16.xpose.msra.mxu1 %v2615_v2  ;;  %4031 = vmatprep.subr.msk.bf16.mxu0 %vm390_vm0, %v2538_v11  ;;  %v2534_v11 = vpack.c.bf16 %v3452_v48, %v3451_v46  ;;  %v2550_v2 = vpack.c.bf16 %v3484_v1, %v3483_v49 }
 0x20f   : > { %4039 = vmatprep.subr.msk.bf16.mxu1 %vm390_vm0, %v2554_v7  ;;  %3818 = vmatprep.mubr.msk.bf16.mxu0 %vm390_vm0, %v5023_v30  ;;  %v3469_v7 = vld [vmem:[%s4117_s25 + $0x106] sm:$0xff] }
 0x210   : > { %3836 = vmatprep.mubr.msk.bf16.mxu1 %vm390_vm0, %v5023_v30  ;;  %v2582_v24 = vsel %vm390_vm0, %v2534_v11, 0  ;;  %v2543_v25 = vpack.c.bf16 %v3470_v22, %v3469_v7  ;;  %v2630_v37 = vsel %vm390_vm0, %v2550_v2, 0 }
 0x215   : > { %3805 = vmatpush3.bf16.xpose.msra.mxu0 %v2570_v31  ;;  %v3486_v31 = vld [vmem:[%s4117_s25 + $0x18e] sm:$0xff] }
 0x216   : > { %3823 = vmatpush3.bf16.xpose.msra.mxu1 %v2618_v3  ;;  %4032 = vmatprep.subr.msk.bf16.mxu0 %vm390_vm0, %v2539_v55  ;;  %v2535_v55 = vpack.c.bf16 %v3454_v40, %v3453_v36  ;;  %v2551_v3 = vpack.c.bf16 %v3486_v31, %v3485_v53 }
 0x217   : > { %4040 = vmatprep.subr.msk.bf16.mxu1 %vm390_vm0, %v2555_v4  ;;  %v3471_v4 = vld [vmem:[%s4117_s25 + $0x116] sm:$0xff] }
 0x218   : > { %v2585_v19 = vsel %vm390_vm0, %v2535_v55, 0  ;;  %v2544_v47 = vpack.c.bf16 %v3472_v5, %v3471_v4  ;;  %v2633_v32 = vsel %vm390_vm0, %v2551_v3, 0  ;;  %v2878_v55 = vld [vmem:[%s5181_s2] sm:$0xff] (!%p3510_p3)  ;;  %v4067_v3 = vmov (!%p3510_p3), 0  }
 0x219   : > { %4055 = vset.pattern.permute.xlu0 (!%p3510_p3), %v4067_v3  ;;  %4056 = vset.pattern.permute.xlu1 (!%p3510_p3), %v4067_v3 }
 0x21d   : > { %3807 = vmatpush3.bf16.xpose.msra.mxu0 %v2573_v41  ;;  %v3488_v41 = vld [vmem:[%s4117_s25 + $0x19e] sm:$0xff] }
 0x21e   : > { %3825 = vmatpush3.bf16.xpose.msra.mxu1 %v2621_v44  ;;  %4033 = vmatprep.subr.msk.bf16.mxu0 %vm390_vm0, %v2540_v56  ;;  %v2536_v56 = vpack.c.bf16 %v3456_v42, %v3455_v34  ;;  %v2552_v44 = vpack.c.bf16 %v3488_v41, %v3487_v43 }
 0x21f   : > { %4041 = vmatprep.subr.msk.bf16.mxu1 %vm390_vm0, %v2556_v50 }
 0x220   : > { %v2588_v50 = vsel %vm390_vm0, %v2536_v56, 0  ;;  %v2636_v51 = vsel %vm390_vm0, %v2552_v44, 0 }
 0x225   : > { %3809 = vmatpush3.bf16.xpose.msra.mxu0 %v2576_v9  ;;  %v2767_v9 = vld [vmem:[%s5183_s4] sm:$0xf] (!%p3510_p3) }
 0x226   : > { %3827 = vmatpush3.bf16.xpose.msra.mxu1 %v2624_v12  ;;  %4034 = vmatprep.subr.msk.bf16.mxu0 %vm390_vm0, %v2541_v10 }
 0x227   : > { %4042 = vmatprep.subr.msk.bf16.mxu1 %vm390_vm0, %v2557_v13 }
 0x22d   : > { %3811 = vmatpush3.bf16.xpose.msra.mxu0 %v2579_v18 }
 0x22e   : > { %3829 = vmatpush3.bf16.xpose.msra.mxu1 %v2627_v39  ;;  %4035 = vmatprep.subr.msk.bf16.mxu0 %vm390_vm0, %v2542_v20 }
 0x22f   : > { %4043 = vmatprep.subr.msk.bf16.mxu1 %vm390_vm0, %v2558_v45 }
 0x235   : > { %3813 = vmatpush3.bf16.xpose.msra.mxu0 %v2582_v24 }
 0x236   : > { %3831 = vmatpush3.bf16.xpose.msra.mxu1 %v2630_v37  ;;  %4036 = vmatprep.subr.msk.bf16.mxu0 %vm390_vm0, %v2543_v25 }
 0x237   : > { %4044 = vmatprep.subr.msk.bf16.mxu1 %vm390_vm0, %v2559_v38 }
 0x23d   : > { %3815 = vmatpush3.bf16.xpose.msra.mxu0 %v2585_v19 }
 0x23e   : > { %3833 = vmatpush3.bf16.xpose.msra.mxu1 %v2633_v32  ;;  %4037 = vmatprep.subr.msk.bf16.mxu0 %vm390_vm0, %v2544_v47 }
 0x23f   : > { %4045 = vmatprep.subr.msk.bf16.mxu1 %vm390_vm0, %v2560_v33 }
 0x245   : > { %3817 = vmatpush3.bf16.xpose.msra.mxu0 %v2588_v50 }
 0x246   : > { %3835 = vmatpush3.bf16.xpose.msra.mxu1 %v2636_v51 }
 0x24c   : > { %3819 = vmatmul.mubr.msk.bf16.vlgmr.msra.gmra.mrb[0].mxu0 %vm390_vm0, %v5023_v30 }
 0x24d   : > { %3837 = vmatmul.mubr.msk.bf16.vlgmr.msra.gmra.mrb[0].mxu1 %vm390_vm0, %v5023_v30  ;;  %v2771_v30 = vlaneseq (!%p3510_p3) }
 0x24f   : > { %v2772_v8 = vshrl.u32 (!%p3510_p3), %v2771_v30, 7 }
 0x251   : > { %v2773_v10 = vsub.s32 (!%p3510_p3), 0, %v2772_v8  ;;  %v2777_v12 = vsub.s32 (!%p3510_p3), 1, %v2772_v8  ;;  %v2781_v13 = vsub.s32 (!%p3510_p3), 2, %v2772_v8  ;;  %v2785_v14 = vsub.s32 (!%p3510_p3), 3, %v2772_v8 }
 0x253   : > { %v2774_v26 = vrot.slane (!%p3510_p3), %v2767_v9, %v2773_v10  ;;  %v2778_v27 = vrot.slane (!%p3510_p3), %v2767_v9, %v2777_v12  ;;  %v2782_v28 = vrot.slane (!%p3510_p3), %v2767_v9, %v2781_v13  ;;  %v2786_v29 = vrot.slane (!%p3510_p3), %v2767_v9, %v2785_v14 }
 0x254   : > { %v2790_v45 = vrot.slane (!%p3510_p3), %v2768_v15, %v2773_v10  ;;  %v2794_v46 = vrot.slane (!%p3510_p3), %v2768_v15, %v2777_v12  ;;  %v2798_v48 = vrot.slane (!%p3510_p3), %v2768_v15, %v2781_v13  ;;  %v2802_v2 = vrot.slane (!%p3510_p3), %v2768_v15, %v2785_v14 }
 0x31d   : > { %2758 = sbr.rel (%p3510_p3) target bundleno = 1153 (0x481), region = 44 }
 0x31f   : > { %v2696_v52 = vpop.f32.mrb[0].mxu0 }
 0x320   : > { %2751 = vst [vmem:[%s2750_s22] sm:$0xff] %v2696_v52  ;;  %v2737_v54 = vpop.f32.mrb[0].mxu1  ;;  %v2698_v57 = vpop.f32.mrb[1].mxu0 }
 0x321   : > { %2753 = vst [vmem:[%s2750_s22 + $0x10] sm:$0xff] %v2737_v54  ;;  %2752 = vst [vmem:[%s2750_s22 + $0x8] sm:$0xff] %v2698_v57  ;;  %v2739_v58 = vpop.f32.mrb[1].mxu1  ;;  %v2700_v59 = vpop.f32.mrb[2].mxu0 }
 0x322   : > { %2754 = vst [vmem:[%s2750_s22 + $0x18] sm:$0xff] %v2739_v58  ;;  %v2741_v61 = vpop.f32.mrb[2].mxu1  ;;  %v2701_v62 = vpop.f32.mrb[3].mxu0 }
 0x323   : > { %v2742_v63 = vpop.f32.mrb[3].mxu1 }
 0x329   : > { %v2759_v16 = vld [vmem:[%s5184_s5] sm:$0xff]  ;;  %v2760_v17 = vld [vmem:[%s5184_s5 + $0x8] sm:$0xff]  ;;  %v2761_v21 = vld [vmem:[%s5184_s5 + $0x10] sm:$0xff] }
 0x32a   : > { %v2763_v35 = vld [vmem:[%s5184_s5 + $0x20] sm:$0xff]  ;;  %v2764_v18 = vld [vmem:[%s5184_s5 + $0x28] sm:$0xff]  ;;  %v2765_v20 = vld [vmem:[%s5184_s5 + $0x30] sm:$0xff]  ;;  %v2811_v49 = vmul.f32 %v2774_v26, %v2759_v16  ;;  %v2812_v1 = vmul.f32 %v2778_v27, %v2760_v17  ;;  %v2813_v11 = vmul.f32 %v2782_v28, %v2761_v21 }
 0x32b   : > { %v2762_v39 = vld [vmem:[%s5184_s5 + $0x18] sm:$0xff]  ;;  %v2815_v22 = vmul.f32 %v2790_v45, %v2763_v35  ;;  %v2816_v60 = vmul.f32 %v2794_v46, %v2764_v18  ;;  %v2817_v23 = vmul.f32 %v2798_v48, %v2765_v20 }
 0x32c   : > { %v2766_v7 = vld [vmem:[%s5184_s5 + $0x38] sm:$0xff]  ;;  %v2814_v24 = vmul.f32 %v2786_v29, %v2762_v39  ;;  %v2819_v25 = vadd.f32 %v2812_v1, %v2811_v49 }
 0x32d   : > { %v2824_v37 = vadd.f32 %v2816_v60, %v2815_v22  ;;  %v2818_v36 = vmul.f32 %v2802_v2, %v2766_v7 }
 0x32e   : > { %v2820_v38 = vadd.f32 %v2819_v25, %v2813_v11 }
 0x32f   : > { %v2825_v40 = vadd.f32 %v2824_v37, %v2817_v23 }
 0x330   : > { %v2821_v53 = vadd.f32 %v2820_v38, %v2814_v24 }
 0x331   : > { %v2826_v31 = vadd.f32 %v2825_v40, %v2818_v36 }
 0x332   : > { %2822 = vadd.xlane.f32.xlu0 %v2821_v53 }
 0x336   : > { %2827 = vadd.xlane.f32.xlu0 %v2826_v31 }
 0x34c   : > { %2881 = vperm.xlu0 %4055, %v2878_v55  }
 0x3bf   : > { %v2823_v4 = vpop.xlane.xlu0 %2822 }
 0x3c3   : > { %v2828_v5 = vpop.xlane.xlu0 %2827 }
 0x3c4   : > { %v2829_v6 = vadd.f32 %v2828_v5, %v2823_v4 }
 0x3c6   : > { %v2831_v0 = vmul.f32 0.001953125, %v2829_v6 }
 0x3c8   : > { %v2832_v19 = vsub.f32 %v2759_v16, %v2831_v0  ;;  %v2833_v47 = vsub.f32 %v2760_v17, %v2831_v0  ;;  %v2834_v32 = vsub.f32 %v2761_v21, %v2831_v0  ;;  %v2835_v33 = vsub.f32 %v2762_v39, %v2831_v0  ;;  %v2892_v21 = vld [vmem:[%s5182_s3] sm:$0xff] }
 0x3c9   : > { %v2836_v34 = vsub.f32 %v2763_v35, %v2831_v0  ;;  %v2837_v42 = vsub.f32 %v2764_v18, %v2831_v0  ;;  %v2838_v43 = vsub.f32 %v2765_v20, %v2831_v0  ;;  %v2839_v50 = vsub.f32 %v2766_v7, %v2831_v0 }
 0x3ca   : > { %v2840_v41 = vmul.f32 %v2832_v19, %v2774_v26  ;;  %v2841_v56 = vmul.f32 %v2833_v47, %v2778_v27  ;;  %v2842_v44 = vmul.f32 %v2834_v32, %v2782_v28  ;;  %v2843_v54 = vmul.f32 %v2835_v33, %v2786_v29 }
 0x3cb   : > { %v2844_v51 = vmul.f32 %v2836_v34, %v2790_v45  ;;  %v2845_v52 = vmul.f32 %v2837_v42, %v2794_v46  ;;  %v2846_v59 = vmul.f32 %v2838_v43, %v2798_v48  ;;  %v2847_v12 = vmul.f32 %v2839_v50, %v2802_v2  ;;  %v2882_v20 = vpop.permute.xlu0 %2881 }
 0x3cc   : > { %v2848_v57 = vmul.f32 %v2840_v41, %v2840_v41  ;;  %v2849_v58 = vmul.f32 %v2841_v56, %v2841_v56  ;;  %v2850_v63 = vmul.f32 %v2842_v44, %v2842_v44  ;;  %v2851_v9 = vmul.f32 %v2843_v54, %v2843_v54 }
 0x3cd   : > { %v2852_v61 = vmul.f32 %v2844_v51, %v2844_v51  ;;  %v2853_v62 = vmul.f32 %v2845_v52, %v2845_v52  ;;  %v2854_v13 = vmul.f32 %v2846_v59, %v2846_v59  ;;  %v2855_v16 = vmul.f32 %v2847_v12, %v2847_v12 }
 0x3ce   : > { %v2856_v30 = vadd.f32 %v2849_v58, %v2848_v57 }
 0x3cf   : > { %v2861_v8 = vadd.f32 %v2853_v62, %v2852_v61 }
 0x3d0   : > { %v2857_v10 = vadd.f32 %v2856_v30, %v2850_v63 }
 0x3d1   : > { %v2862_v15 = vadd.f32 %v2861_v8, %v2854_v13 }
 0x3d2   : > { %v2858_v14 = vadd.f32 %v2857_v10, %v2851_v9 }
 0x3d3   : > { %v2863_v17 = vadd.f32 %v2862_v15, %v2855_v16 }
 0x3d4   : > { %2859 = vadd.xlane.f32.xlu1 %v2858_v14 }
 0x3d8   : > { %2864 = vadd.xlane.f32.xlu1 %v2863_v17 }
 0x3e9   : > { %2895 = vperm.xlu1 %4056, %v2892_v21  }
 0x461   : > { %v2860_v26 = vpop.xlane.xlu1 %2859 }
 0x465   : > { %v2865_v27 = vpop.xlane.xlu1 %2864 }
 0x466   : > { %v2866_v28 = vadd.f32 %v2865_v27, %v2860_v26 }
 0x468   : > { %v2867_v29 = vmul.f32 0.001953125, %v2866_v28 }
 0x469   : > { %v2896_v7 = vpop.permute.xlu1 %2895 }
 0x46a   : > { %v2868_v35 = vadd.f32 1e-05, %v2867_v29 }
 0x46c   : > { %4057 = vrsqrt.f32 %v2868_v35 }
 0x476   : > { %v4058_v18 = vpop.eup %4057 }
 0x477   : > { %v2870_v39 = vmul.f32 %v4058_v18, %v2832_v19  ;;  %v2871_v45 = vmul.f32 %v4058_v18, %v2833_v47  ;;  %v2872_v46 = vmul.f32 %v4058_v18, %v2834_v32  ;;  %v2873_v48 = vmul.f32 %v4058_v18, %v2835_v33 }
 0x478   : > { %v2874_v49 = vmul.f32 %v4058_v18, %v2836_v34  ;;  %v2875_v1 = vmul.f32 %v4058_v18, %v2837_v42  ;;  %v2876_v11 = vmul.f32 %v4058_v18, %v2838_v43  ;;  %v2877_v2 = vmul.f32 %v4058_v18, %v2839_v50 }
 0x479   : > { %v2884_v22 = vmul.f32 %v2882_v20, %v2870_v39  ;;  %v2885_v60 = vmul.f32 %v2882_v20, %v2871_v45  ;;  %v2886_v23 = vmul.f32 %v2882_v20, %v2872_v46  ;;  %v2887_v24 = vmul.f32 %v2882_v20, %v2873_v48 }
 0x47a   : > { %v2888_v25 = vmul.f32 %v2882_v20, %v2874_v49  ;;  %v2889_v37 = vmul.f32 %v2882_v20, %v2875_v1  ;;  %v2890_v38 = vmul.f32 %v2882_v20, %v2876_v11  ;;  %v2891_v36 = vmul.f32 %v2882_v20, %v2877_v2 }
 0x47b   : > { %v2898_v40 = vadd.f32 %v2896_v7, %v2884_v22  ;;  %v2899_v53 = vadd.f32 %v2896_v7, %v2885_v60  ;;  %v2900_v31 = vadd.f32 %v2896_v7, %v2886_v23  ;;  %v2901_v55 = vadd.f32 %v2896_v7, %v2887_v24 }
 0x47c   : > { %v2902_v3 = vadd.f32 %v2896_v7, %v2888_v25  ;;  %v2903_v4 = vadd.f32 %v2896_v7, %v2889_v37  ;;  %v2904_v5 = vadd.f32 %v2896_v7, %v2890_v38  ;;  %v2905_v6 = vadd.f32 %v2896_v7, %v2891_v36 }
 0x47d   : > { %2906 = vst [vmem:[%s5184_s5] sm:$0xff] %v2898_v40  ;;  %2907 = vst [vmem:[%s5184_s5 + $0x8] sm:$0xff] %v2899_v53 }
 0x47e   : > { %2908 = vst [vmem:[%s5184_s5 + $0x10] sm:$0xff] %v2900_v31  ;;  %2909 = vst [vmem:[%s5184_s5 + $0x18] sm:$0xff] %v2901_v55 }
 0x47f   : > { %2910 = vst [vmem:[%s5184_s5 + $0x20] sm:$0xff] %v2902_v3  ;;  %2911 = vst [vmem:[%s5184_s5 + $0x28] sm:$0xff] %v2903_v4 }
 0x480   : > { %2912 = vst [vmem:[%s5184_s5 + $0x30] sm:$0xff] %v2904_v5  ;;  %2913 = vst [vmem:[%s5184_s5 + $0x38] sm:$0xff] %v2905_v6 }
 0x481 PF: > { %s15_s18 = sadd.s32 1, %s4065_s18  }
 0x482   : > { %p12_p4 = scmp.ge.s32.totalorder %s15_s18, 4  }
 0x484   :  { %14 = sbr.rel (!%p12_p4) target bundleno = 1 (0x1), region = 85 }

// kernel: conv_block_forward.3
= control target key start
LH: loop header
LB: loop body
LE: loop exit
PB: predicated region body
PF: predicated region fallthrough
CT: control target
= control target key end

     0   :  { %s4106_s18 = smov 0   ;;  %s5187_s0 = inlined_call_operand.vmem [shape: f32[1062,8], index: 0, kind: input, shape index: {}]   ;;  %s5188_s1 = inlined_call_operand.vmem [shape: bf16[9,8,8], index: 1, kind: input, shape index: {}]   ;;  %s5189_s2 = inlined_call_operand.vmem [shape: f32[1,8,1], index: 2, kind: input, shape index: {}]   ;;  %s5190_s3 = inlined_call_operand.vmem [shape: f32[1,8,1], index: 3, kind: input, shape index: {}]   ;;  %s5191_s4 = inlined_call_operand.vmem [shape: f32[2,1,512], index: 4, kind: input, shape index: {}]   ;;  %s5192_s5 = inlined_call_operand.vmem [shape: f32[2,8,512], index: 5, kind: output, shape index: {}]  }
   0x1 LB: > { %s4112_s19 = sadd.s32 4294967295, %s4073_s18   ;;  %p2968_p0 = scmp.ge.s32.totalorder %s4073_s18, 1  ;;  %s4073_s18 = sphi %s4106_s18, %s15_s18  }
   0x2   : > { %p172_p1 = scmp.lt.s32.totalorder %s4073_s18, 3 }
   0x4   : > { %p173_p2 = pnand %p2968_p0, %p172_p1 }
   0x5   : > { %s2969_s20 = sshll.u32 (!%p173_p2), %s4112_s19, 9  ;;  %vm390_vm0 = vcmask (!%p173_p2), 64512   ;;  %v4120_v0 = vld [vmem:[%s5188_s1 + $0x4] sm:$0xf] (!%p173_p2)  ;;  %s3521_s17 = sshll.u32 (!%p173_p2), %s4112_s19, 5 }
   0x6   : > { %176 = sbr.rel (%p173_p2) target bundleno = 1155 (0x483), region = 40  ;;  %s4125_s25 = scalar_lea.vmem (!%p173_p2), %s5187_s0, %s2969_s20  ;;  %3538 = vmatprep.mubr.msk.bf16.mxu0 (!%p173_p2), %vm390_vm0, %v4120_v0  ;;  %3556 = vmatprep.mubr.msk.bf16.mxu1 (!%p173_p2), %vm390_vm0, %v4120_v0 }
   0x7   : > { %v2987_v1 = vld [vmem:[%s4125_s25 + $0x81] sm:$0xff] (!%p173_p2)  ;;  %v2988_v2 = vld [vmem:[%s4125_s25 + $0x89] sm:$0xff] (!%p173_p2)  ;;  %v2989_v12 = vld [vmem:[%s4125_s25 + $0x91] sm:$0xff] (!%p173_p2)  ;;  %s2750_s22 = scalar_lea.vmem (!%p173_p2), %s5192_s5, %s3521_s17  ;;  %p3518_p3 = scmp.ne.s32.totalorder (!%p173_p2), %s4112_s19, 1 }
   0x8   : > { %v3019_v3 = vld [vmem:[%s4125_s25 + $0x181] sm:$0xff] (!%p173_p2)  ;;  %v364_v4 = vpack.c.bf16 (!%p173_p2), %v2988_v2, %v2987_v1  ;;  %v3020_v5 = vld [vmem:[%s4125_s25 + $0x189] sm:$0xff] (!%p173_p2)  ;;  %v2990_v14 = vld [vmem:[%s4125_s25 + $0x99] sm:$0xff] (!%p173_p2) }
   0x9   : > { %v2971_v6 = vld [vmem:[%s4125_s25 + $0x1] sm:$0xff] (!%p173_p2)  ;;  %v2972_v7 = vld [vmem:[%s4125_s25 + $0x9] sm:$0xff] (!%p173_p2)  ;;  %v380_v8 = vpack.c.bf16 (!%p173_p2), %v3020_v5, %v3019_v3  ;;  %v3021_v15 = vld [vmem:[%s4125_s25 + $0x191] sm:$0xff] (!%p173_p2)  ;;  %v365_v18 = vpack.c.bf16 (!%p173_p2), %v2990_v14, %v2989_v12 }
   0xa   : > { %v356_v9 = vpack.c.bf16 (!%p173_p2), %v2972_v7, %v2971_v6  ;;  %v3003_v10 = vld [vmem:[%s4125_s25 + $0x101] sm:$0xff] (!%p173_p2)  ;;  %v3004_v11 = vld [vmem:[%s4125_s25 + $0x109] sm:$0xff] (!%p173_p2)  ;;  %3910 = vmatprep.subr.msk.bf16.mxu0 (!%p173_p2), %vm390_vm0, %v364_v4  ;;  %v3022_v16 = vld [vmem:[%s4125_s25 + $0x199] sm:$0xff] (!%p173_p2) }
   0xb   : > { %v372_v13 = vpack.c.bf16 (!%p173_p2), %v3004_v11, %v3003_v10  ;;  %3918 = vmatprep.subr.msk.bf16.mxu1 (!%p173_p2), %vm390_vm0, %v380_v8  ;;  %v381_v19 = vpack.c.bf16 (!%p173_p2), %v3022_v16, %v3021_v15  ;;  %v2973_v20 = vld [vmem:[%s4125_s25 + $0x11] sm:$0xff] (!%p173_p2)  ;;  %v2974_v21 = vld [vmem:[%s4125_s25 + $0x19] sm:$0xff] (!%p173_p2)  ;;  %v2991_v27 = vld [vmem:[%s4125_s25 + $0xa1] sm:$0xff] (!%p173_p2) }
   0xc   : > { %v395_v17 = vsel (!%p173_p2), %vm390_vm0, %v356_v9, 0  ;;  %v3005_v22 = vld [vmem:[%s4125_s25 + $0x111] sm:$0xff] (!%p173_p2)  ;;  %v3006_v24 = vld [vmem:[%s4125_s25 + $0x119] sm:$0xff] (!%p173_p2)  ;;  %v357_v25 = vpack.c.bf16 (!%p173_p2), %v2974_v21, %v2973_v20  ;;  %v2992_v28 = vld [vmem:[%s4125_s25 + $0xa9] sm:$0xff] (!%p173_p2) }
   0xd   : > { %3523 = vmatpush3.bf16.xpose.msra.mxu0 %v395_v17  ;;  %v443_v23 = vsel %vm390_vm0, %v372_v13, 0  ;;  %v373_v26 = vpack.c.bf16 %v3006_v24, %v3005_v22  ;;  %v3023_v29 = vld [vmem:[%s4125_s25 + $0x1a1] sm:$0xff]  ;;  %v3024_v30 = vld [vmem:[%s4125_s25 + $0x1a9] sm:$0xff]  ;;  %v366_v32 = vpack.c.bf16 %v2992_v28, %v2991_v27  ;;  %v2993_v41 = vld [vmem:[%s4125_s25 + $0xb1] sm:$0xff] }
   0xe   : > { %3541 = vmatpush3.bf16.xpose.msra.mxu1 %v443_v23  ;;  %3911 = vmatprep.subr.msk.bf16.mxu0 %vm390_vm0, %v365_v18  ;;  %v398_v31 = vsel %vm390_vm0, %v357_v25, 0  ;;  %v382_v34 = vpack.c.bf16 %v3024_v30, %v3023_v29  ;;  %v2975_v35 = vld [vmem:[%s4125_s25 + $0x21] sm:$0xff]  ;;  %v2976_v36 = vld [vmem:[%s4125_s25 + $0x29] sm:$0xff]  ;;  %v2994_v42 = vld [vmem:[%s4125_s25 + $0xb9] sm:$0xff] }
   0xf   : > { %3919 = vmatprep.subr.msk.bf16.mxu1 %vm390_vm0, %v381_v19  ;;  %v446_v33 = vsel %vm390_vm0, %v373_v26, 0  ;;  %v3007_v37 = vld [vmem:[%s4125_s25 + $0x121] sm:$0xff]  ;;  %v3008_v38 = vld [vmem:[%s4125_s25 + $0x129] sm:$0xff]  ;;  %v358_v39 = vpack.c.bf16 %v2976_v36, %v2975_v35  ;;  %v3025_v43 = vld [vmem:[%s4125_s25 + $0x1b1] sm:$0xff]  ;;  %v367_v46 = vpack.c.bf16 %v2994_v42, %v2993_v41 }
  0x10   : > { %v374_v40 = vpack.c.bf16 %v3008_v38, %v3007_v37  ;;  %v3026_v44 = vld [vmem:[%s4125_s25 + $0x1b9] sm:$0xff]  ;;  %v2977_v49 = vld [vmem:[%s4125_s25 + $0x31] sm:$0xff]  ;;  %v2995_v55 = vld [vmem:[%s4125_s25 + $0xc1] sm:$0xff] }
  0x11   : > { %v401_v45 = vsel %vm390_vm0, %v358_v39, 0  ;;  %v383_v48 = vpack.c.bf16 %v3026_v44, %v3025_v43  ;;  %v2978_v50 = vld [vmem:[%s4125_s25 + $0x39] sm:$0xff]  ;;  %v3009_v51 = vld [vmem:[%s4125_s25 + $0x131] sm:$0xff]  ;;  %v2996_v56 = vld [vmem:[%s4125_s25 + $0xc9] sm:$0xff] }
  0x12   : > { %v449_v47 = vsel %vm390_vm0, %v374_v40, 0  ;;  %v3010_v52 = vld [vmem:[%s4125_s25 + $0x139] sm:$0xff]  ;;  %v359_v53 = vpack.c.bf16 %v2978_v50, %v2977_v49  ;;  %v3027_v57 = vld [vmem:[%s4125_s25 + $0x1c1] sm:$0xff]  ;;  %v3028_v58 = vld [vmem:[%s4125_s25 + $0x1c9] sm:$0xff]  ;;  %v368_v60 = vpack.c.bf16 %v2996_v56, %v2995_v55 }
  0x13   : > { %v375_v54 = vpack.c.bf16 %v3010_v52, %v3009_v51  ;;  %v384_v62 = vpack.c.bf16 %v3028_v58, %v3027_v57  ;;  %v2979_v63 = vld [vmem:[%s4125_s25 + $0x41] sm:$0xff]  ;;  %v2980_v1 = vld [vmem:[%s4125_s25 + $0x49] sm:$0xff]  ;;  %v2997_v6 = vld [vmem:[%s4125_s25 + $0xd1] sm:$0xff] }
  0x14   : > { %v404_v59 = vsel %vm390_vm0, %v359_v53, 0  ;;  %v3011_v2 = vld [vmem:[%s4125_s25 + $0x141] sm:$0xff]  ;;  %v3012_v3 = vld [vmem:[%s4125_s25 + $0x149] sm:$0xff]  ;;  %v360_v4 = vpack.c.bf16 %v2980_v1, %v2979_v63  ;;  %v2998_v7 = vld [vmem:[%s4125_s25 + $0xd9] sm:$0xff] }
  0x15   : > { %3525 = vmatpush3.bf16.xpose.msra.mxu0 %v398_v31  ;;  %v452_v61 = vsel %vm390_vm0, %v375_v54, 0  ;;  %v376_v5 = vpack.c.bf16 %v3012_v3, %v3011_v2  ;;  %v3029_v8 = vld [vmem:[%s4125_s25 + $0x1d1] sm:$0xff]  ;;  %v3030_v9 = vld [vmem:[%s4125_s25 + $0x1d9] sm:$0xff]  ;;  %v369_v11 = vpack.c.bf16 %v2998_v7, %v2997_v6  ;;  %v2999_v20 = vld [vmem:[%s4125_s25 + $0xe1] sm:$0xff] }
  0x16   : > { %3543 = vmatpush3.bf16.xpose.msra.mxu1 %v446_v33  ;;  %3912 = vmatprep.subr.msk.bf16.mxu0 %vm390_vm0, %v366_v32  ;;  %v407_v10 = vsel %vm390_vm0, %v360_v4, 0  ;;  %v385_v13 = vpack.c.bf16 %v3030_v9, %v3029_v8  ;;  %v2981_v14 = vld [vmem:[%s4125_s25 + $0x51] sm:$0xff]  ;;  %v2982_v15 = vld [vmem:[%s4125_s25 + $0x59] sm:$0xff]  ;;  %v3000_v21 = vld [vmem:[%s4125_s25 + $0xe9] sm:$0xff] }
  0x17   : > { %3920 = vmatprep.subr.msk.bf16.mxu1 %vm390_vm0, %v382_v34  ;;  %v455_v12 = vsel %vm390_vm0, %v376_v5, 0  ;;  %v3013_v16 = vld [vmem:[%s4125_s25 + $0x151] sm:$0xff]  ;;  %v3014_v17 = vld [vmem:[%s4125_s25 + $0x159] sm:$0xff]  ;;  %v361_v18 = vpack.c.bf16 %v2982_v15, %v2981_v14  ;;  %v3031_v22 = vld [vmem:[%s4125_s25 + $0x1e1] sm:$0xff]  ;;  %v370_v25 = vpack.c.bf16 %v3000_v21, %v2999_v20 }
  0x18   : > { %v377_v19 = vpack.c.bf16 %v3014_v17, %v3013_v16  ;;  %v3032_v23 = vld [vmem:[%s4125_s25 + $0x1e9] sm:$0xff]  ;;  %v2983_v28 = vld [vmem:[%s4125_s25 + $0x61] sm:$0xff]  ;;  %v3001_v34 = vld [vmem:[%s4125_s25 + $0xf1] sm:$0xff] }
  0x19   : > { %v410_v24 = vsel %vm390_vm0, %v361_v18, 0  ;;  %v386_v27 = vpack.c.bf16 %v3032_v23, %v3031_v22  ;;  %v2984_v29 = vld [vmem:[%s4125_s25 + $0x69] sm:$0xff]  ;;  %v3015_v30 = vld [vmem:[%s4125_s25 + $0x161] sm:$0xff]  ;;  %v3002_v35 = vld [vmem:[%s4125_s25 + $0xf9] sm:$0xff] }
  0x1a   : > { %v458_v26 = vsel %vm390_vm0, %v377_v19, 0  ;;  %v3016_v31 = vld [vmem:[%s4125_s25 + $0x169] sm:$0xff]  ;;  %v362_v32 = vpack.c.bf16 %v2984_v29, %v2983_v28  ;;  %v3033_v36 = vld [vmem:[%s4125_s25 + $0x1f1] sm:$0xff]  ;;  %v3034_v37 = vld [vmem:[%s4125_s25 + $0x1f9] sm:$0xff]  ;;  %v371_v39 = vpack.c.bf16 %v3002_v35, %v3001_v34 }
  0x1b   : > { %v378_v33 = vpack.c.bf16 %v3016_v31, %v3015_v30  ;;  %v387_v41 = vpack.c.bf16 %v3034_v37, %v3033_v36  ;;  %v2985_v42 = vld [vmem:[%s4125_s25 + $0x71] sm:$0xff]  ;;  %v2986_v43 = vld [vmem:[%s4125_s25 + $0x79] sm:$0xff]  ;;  %v210_v49 = vld [vmem:[%s4125_s25 + $0x88] sm:$0xff] }
  0x1c   : > { %v413_v38 = vsel %vm390_vm0, %v362_v32, 0  ;;  %v3017_v44 = vld [vmem:[%s4125_s25 + $0x171] sm:$0xff]  ;;  %v241_v50 = vld [vmem:[%s4125_s25 + $0x180] sm:$0xff]  ;;  %v242_v51 = vld [vmem:[%s4125_s25 + $0x188] sm:$0xff] }
  0x1d   : > { %3527 = vmatpush3.bf16.xpose.msra.mxu0 %v401_v45  ;;  %v461_v40 = vsel %vm390_vm0, %v378_v33, 0  ;;  %v3018_v45 = vld [vmem:[%s4125_s25 + $0x179] sm:$0xff]  ;;  %v281_v55 = vpack.c.bf16 %v242_v51, %v241_v50  ;;  %v194_v57 = vld [vmem:[%s4125_s25 + $0x8] sm:$0xff]  ;;  %v243_v1 = vld [vmem:[%s4125_s25 + $0x190] sm:$0xff] }
  0x1e   : > { %3545 = vmatpush3.bf16.xpose.msra.mxu1 %v449_v47  ;;  %3913 = vmatprep.subr.msk.bf16.mxu0 %vm390_vm0, %v367_v46  ;;  %v363_v46 = vpack.c.bf16 %v2986_v43, %v2985_v42  ;;  %v379_v47 = vpack.c.bf16 %v3018_v45, %v3017_v44  ;;  %v193_v56 = vld [vmem:[%s4125_s25] sm:$0xff]  ;;  %v212_v63 = vld [vmem:[%s4125_s25 + $0x98] sm:$0xff]  ;;  %v195_v7 = vld [vmem:[%s4125_s25 + $0x10] sm:$0xff] }
  0x1f   : > { %3921 = vmatprep.subr.msk.bf16.mxu1 %vm390_vm0, %v383_v48  ;;  %v209_v48 = vld [vmem:[%s4125_s25 + $0x80] sm:$0xff]  ;;  %v244_v2 = vld [vmem:[%s4125_s25 + $0x198] sm:$0xff]  ;;  %v227_v9 = vld [vmem:[%s4125_s25 + $0x110] sm:$0xff] }
  0x20   : > { %v416_v52 = vsel %vm390_vm0, %v363_v46, 0  ;;  %v265_v53 = vpack.c.bf16 %v210_v49, %v209_v48  ;;  %v464_v54 = vsel %vm390_vm0, %v379_v47, 0  ;;  %v225_v58 = vld [vmem:[%s4125_s25 + $0x100] sm:$0xff]  ;;  %v282_v6 = vpack.c.bf16 %v244_v2, %v243_v1  ;;  %v196_v8 = vld [vmem:[%s4125_s25 + $0x18] sm:$0xff]  ;;  %v214_v15 = vld [vmem:[%s4125_s25 + $0xa8] sm:$0xff] }
  0x21   : > { %v213_v14 = vld [vmem:[%s4125_s25 + $0xa0] sm:$0xff]  ;;  %v246_v17 = vld [vmem:[%s4125_s25 + $0x1a8] sm:$0xff]  ;;  %v216_v28 = vld [vmem:[%s4125_s25 + $0xb8] sm:$0xff] }
  0x22   : > { %v245_v16 = vld [vmem:[%s4125_s25 + $0x1a0] sm:$0xff]  ;;  %v267_v18 = vpack.c.bf16 %v214_v15, %v213_v14  ;;  %v198_v22 = vld [vmem:[%s4125_s25 + $0x28] sm:$0xff]  ;;  %v247_v29 = vld [vmem:[%s4125_s25 + $0x1b0] sm:$0xff] }
  0x23   : > { %v283_v20 = vpack.c.bf16 %v246_v17, %v245_v16  ;;  %v197_v21 = vld [vmem:[%s4125_s25 + $0x20] sm:$0xff]  ;;  %v248_v30 = vld [vmem:[%s4125_s25 + $0x1b8] sm:$0xff]  ;;  %v199_v35 = vld [vmem:[%s4125_s25 + $0x30] sm:$0xff] }
  0x24   : > { %v229_v23 = vld [vmem:[%s4125_s25 + $0x120] sm:$0xff]  ;;  %v284_v34 = vpack.c.bf16 %v248_v30, %v247_v29  ;;  %v200_v36 = vld [vmem:[%s4125_s25 + $0x38] sm:$0xff]  ;;  %v231_v37 = vld [vmem:[%s4125_s25 + $0x130] sm:$0xff] }
  0x25   : > { %3529 = vmatpush3.bf16.xpose.msra.mxu0 %v404_v59  ;;  %v226_v59 = vld [vmem:[%s4125_s25 + $0x108] sm:$0xff]  ;;  %v249_v43 = vld [vmem:[%s4125_s25 + $0x1c0] sm:$0xff]  ;;  %v204_v1 = vld [vmem:[%s4125_s25 + $0x58] sm:$0xff] }
  0x26   : > { %3547 = vmatpush3.bf16.xpose.msra.mxu1 %v452_v61  ;;  %3914 = vmatprep.subr.msk.bf16.mxu0 %vm390_vm0, %v368_v60  ;;  %v257_v60 = vpack.c.bf16 %v194_v57, %v193_v56  ;;  %v273_v61 = vpack.c.bf16 %v226_v59, %v225_v58  ;;  %v218_v42 = vld [vmem:[%s4125_s25 + $0xc8] sm:$0xff]  ;;  %v201_v49 = vld [vmem:[%s4125_s25 + $0x40] sm:$0xff]  ;;  %v220_v56 = vld [vmem:[%s4125_s25 + $0xd8] sm:$0xff] }
  0x27   : > { %3922 = vmatprep.subr.msk.bf16.mxu1 %vm390_vm0, %v384_v62  ;;  %v211_v62 = vld [vmem:[%s4125_s25 + $0x90] sm:$0xff]  ;;  %v250_v44 = vld [vmem:[%s4125_s25 + $0x1c8] sm:$0xff]  ;;  %v233_v51 = vld [vmem:[%s4125_s25 + $0x140] sm:$0xff] }
  0x28   : > { %v576_v3 = vsel %vm390_vm0, %v257_v60, 0  ;;  %v266_v4 = vpack.c.bf16 %v212_v63, %v211_v62  ;;  %v624_v5 = vsel %vm390_vm0, %v273_v61, 0  ;;  %v285_v48 = vpack.c.bf16 %v250_v44, %v249_v43  ;;  %v202_v50 = vld [vmem:[%s4125_s25 + $0x48] sm:$0xff]  ;;  %v251_v57 = vld [vmem:[%s4125_s25 + $0x1d0] sm:$0xff]  ;;  %v252_v58 = vld [vmem:[%s4125_s25 + $0x1d8] sm:$0xff] }
  0x29   : > { %v286_v62 = vpack.c.bf16 %v252_v58, %v251_v57  ;;  %v203_v63 = vld [vmem:[%s4125_s25 + $0x50] sm:$0xff]  ;;  %v205_v15 = vld [vmem:[%s4125_s25 + $0x60] sm:$0xff]  ;;  %v206_v16 = vld [vmem:[%s4125_s25 + $0x68] sm:$0xff] }
  0x2a   : > { %v235_v2 = vld [vmem:[%s4125_s25 + $0x150] sm:$0xff]  ;;  %v237_v17 = vld [vmem:[%s4125_s25 + $0x160] sm:$0xff]  ;;  %v208_v29 = vld [vmem:[%s4125_s25 + $0x78] sm:$0xff] }
  0x2b   : > { %v239_v30 = vld [vmem:[%s4125_s25 + $0x170] sm:$0xff]  ;;  %v3073_v44 = vld [vmem:[%s4125_s25 + $0x102] sm:$0xff]  ;;  %v3044_v57 = vld [vmem:[%s4125_s25 + $0x1a] sm:$0xff] }
  0x2c   : > { %v3042_v43 = vld [vmem:[%s4125_s25 + $0xa] sm:$0xff]  ;;  %v3075_v58 = vld [vmem:[%s4125_s25 + $0x112] sm:$0xff] }
  0x2d   : > { %3531 = vmatpush3.bf16.xpose.msra.mxu0 %v407_v10  ;;  %v228_v10 = vld [vmem:[%s4125_s25 + $0x118] sm:$0xff] }
  0x2e   : > { %3549 = vmatpush3.bf16.xpose.msra.mxu1 %v455_v12  ;;  %3915 = vmatprep.subr.msk.bf16.mxu0 %vm390_vm0, %v369_v11  ;;  %v4252_v11 = vld [vmem:[%s5188_s1] sm:$0xf]  ;;  %v258_v12 = vpack.c.bf16 %v196_v8, %v195_v7  ;;  %v222_v7 = vld [vmem:[%s4125_s25 + $0xe8] sm:$0xff] }
  0x2f   : > { %3923 = vmatprep.subr.msk.bf16.mxu1 %vm390_vm0, %v385_v13  ;;  %v274_v13 = vpack.c.bf16 %v228_v10, %v227_v9  ;;  %v253_v8 = vld [vmem:[%s4125_s25 + $0x1e0] sm:$0xff]  ;;  %v254_v9 = vld [vmem:[%s4125_s25 + $0x1e8] sm:$0xff] }
  0x30   : > { %v287_v14 = vpack.c.bf16 %v254_v9, %v253_v8  ;;  %v3046_v8 = vld [vmem:[%s4125_s25 + $0x2a] sm:$0xff]  ;;  %v3077_v9 = vld [vmem:[%s4125_s25 + $0x122] sm:$0xff] }
  0x31   : > { %v627_v19 = vsel %vm390_vm0, %v274_v13, 0 }
  0x35   : > { %3533 = vmatpush3.bf16.xpose.msra.mxu0 %v410_v24  ;;  %v230_v24 = vld [vmem:[%s4125_s25 + $0x128] sm:$0xff] }
  0x36   : > { %3551 = vmatpush3.bf16.xpose.msra.mxu1 %v458_v26  ;;  %3916 = vmatprep.subr.msk.bf16.mxu0 %vm390_vm0, %v370_v25  ;;  %v259_v25 = vpack.c.bf16 %v198_v22, %v197_v21  ;;  %v275_v26 = vpack.c.bf16 %v230_v24, %v229_v23  ;;  %v224_v21 = vld [vmem:[%s4125_s25 + $0xf8] sm:$0xff]  ;;  %v255_v22 = vld [vmem:[%s4125_s25 + $0x1f0] sm:$0xff] }
  0x37   : > { %3924 = vmatprep.subr.msk.bf16.mxu1 %vm390_vm0, %v386_v27  ;;  %v215_v27 = vld [vmem:[%s4125_s25 + $0xb0] sm:$0xff]  ;;  %v256_v23 = vld [vmem:[%s4125_s25 + $0x1f8] sm:$0xff] }
  0x38   : > { %v582_v31 = vsel %vm390_vm0, %v259_v25, 0  ;;  %v268_v32 = vpack.c.bf16 %v216_v28, %v215_v27  ;;  %v630_v33 = vsel %vm390_vm0, %v275_v26, 0  ;;  %v288_v27 = vpack.c.bf16 %v256_v23, %v255_v22  ;;  %v207_v28 = vld [vmem:[%s4125_s25 + $0x70] sm:$0xff]  ;;  %v3048_v22 = vld [vmem:[%s4125_s25 + $0x3a] sm:$0xff] }
  0x39   : > { %v3079_v23 = vld [vmem:[%s4125_s25 + $0x132] sm:$0xff] }
  0x3d   : > { %3535 = vmatpush3.bf16.xpose.msra.mxu0 %v413_v38  ;;  %v232_v38 = vld [vmem:[%s4125_s25 + $0x138] sm:$0xff] }
  0x3e   : > { %3553 = vmatpush3.bf16.xpose.msra.mxu1 %v461_v40  ;;  %3917 = vmatprep.subr.msk.bf16.mxu0 %vm390_vm0, %v371_v39  ;;  %v260_v39 = vpack.c.bf16 %v200_v36, %v199_v35  ;;  %v276_v40 = vpack.c.bf16 %v232_v38, %v231_v37  ;;  %v3058_v35 = vld [vmem:[%s4125_s25 + $0x8a] sm:$0xff]  ;;  %v3089_v36 = vld [vmem:[%s4125_s25 + $0x182] sm:$0xff] }
  0x3f   : > { %3925 = vmatprep.subr.msk.bf16.mxu1 %vm390_vm0, %v387_v41  ;;  %v217_v41 = vld [vmem:[%s4125_s25 + $0xc0] sm:$0xff]  ;;  %v3090_v37 = vld [vmem:[%s4125_s25 + $0x18a] sm:$0xff] }
  0x40   : > { %v585_v45 = vsel %vm390_vm0, %v260_v39, 0  ;;  %v269_v46 = vpack.c.bf16 %v218_v42, %v217_v41  ;;  %v633_v47 = vsel %vm390_vm0, %v276_v40, 0  ;;  %v4342_v41 = vpack.c.bf16 %v3090_v37, %v3089_v36  ;;  %v3041_v42 = vld [vmem:[%s4125_s25 + $0x2] sm:$0xff]  ;;  %v3050_v36 = vld [vmem:[%s4125_s25 + $0x4a] sm:$0xff] }
  0x41   : > { %v3081_v37 = vld [vmem:[%s4125_s25 + $0x142] sm:$0xff] }
  0x45   : > { %3537 = vmatpush3.bf16.xpose.msra.mxu0 %v416_v52  ;;  %v234_v52 = vld [vmem:[%s4125_s25 + $0x148] sm:$0xff] }
  0x46   : > { %3555 = vmatpush3.bf16.xpose.msra.mxu1 %v464_v54  ;;  %3926 = vmatprep.subr.msk.bf16.mxu0 %vm390_vm0, %v265_v53  ;;  %v261_v53 = vpack.c.bf16 %v202_v50, %v201_v49  ;;  %v277_v54 = vpack.c.bf16 %v234_v52, %v233_v51  ;;  %v3060_v49 = vld [vmem:[%s4125_s25 + $0x9a] sm:$0xff]  ;;  %v3091_v50 = vld [vmem:[%s4125_s25 + $0x192] sm:$0xff] }
  0x47   : > { %3934 = vmatprep.subr.msk.bf16.mxu1 %vm390_vm0, %v281_v55  ;;  %v219_v55 = vld [vmem:[%s4125_s25 + $0xd0] sm:$0xff]  ;;  %v3092_v51 = vld [vmem:[%s4125_s25 + $0x19a] sm:$0xff] }
  0x48   : > { %v588_v59 = vsel %vm390_vm0, %v261_v53, 0  ;;  %v270_v60 = vpack.c.bf16 %v220_v56, %v219_v55  ;;  %v636_v61 = vsel %vm390_vm0, %v277_v54, 0  ;;  %v4363_v55 = vpack.c.bf16 %v3092_v51, %v3091_v50  ;;  %v3043_v56 = vld [vmem:[%s4125_s25 + $0x12] sm:$0xff] }
  0x4c   : > { %3539 = vmatmul.mubr.msk.bf16.vlgmr.msra.gmra.mrb[0].mxu0 %vm390_vm0, %v4120_v0 }
  0x4d   : > { %3557 = vmatmul.mubr.msk.bf16.vlgmr.msra.gmra.mrb[0].mxu1 %vm390_vm0, %v4120_v0  ;;  %3559 = vmatpush3.bf16.xpose.msra.mxu0 %v576_v3  ;;  %v579_v0 = vsel %vm390_vm0, %v258_v12, 0  ;;  %v236_v3 = vld [vmem:[%s4125_s25 + $0x158] sm:$0xff] }
  0x4e   : > { %3577 = vmatpush3.bf16.xpose.msra.mxu1 %v624_v5  ;;  %3927 = vmatprep.subr.msk.bf16.mxu0 %vm390_vm0, %v266_v4  ;;  %v262_v4 = vpack.c.bf16 %v204_v1, %v203_v63  ;;  %v278_v5 = vpack.c.bf16 %v236_v3, %v235_v2  ;;  %v3061_v63 = vld [vmem:[%s4125_s25 + $0xa2] sm:$0xff]  ;;  %v3062_v1 = vld [vmem:[%s4125_s25 + $0xaa] sm:$0xff] }
  0x4f   : > { %3935 = vmatprep.subr.msk.bf16.mxu1 %vm390_vm0, %v282_v6  ;;  %3574 = vmatprep.mubr.msk.bf16.mxu0 %vm390_vm0, %v4252_v11  ;;  %v221_v6 = vld [vmem:[%s4125_s25 + $0xe0] sm:$0xff]  ;;  %v3094_v2 = vld [vmem:[%s4125_s25 + $0x1aa] sm:$0xff] }
  0x50   : > { %3592 = vmatprep.mubr.msk.bf16.mxu1 %vm390_vm0, %v4252_v11  ;;  %v591_v10 = vsel %vm390_vm0, %v262_v4, 0  ;;  %v271_v12 = vpack.c.bf16 %v222_v7, %v221_v6  ;;  %v639_v13 = vsel %vm390_vm0, %v278_v5, 0  ;;  %v4393_v4 = vpack.c.bf16 %v3062_v1, %v3061_v63  ;;  %v3045_v7 = vld [vmem:[%s4125_s25 + $0x22] sm:$0xff]  ;;  %v3102_v1 = vld [vmem:[%s4125_s25 + $0x1ea] sm:$0xff] }
  0x51   : > { %v3101_v63 = vld [vmem:[%s4125_s25 + $0x1e2] sm:$0xff] }
  0x55   : > { %3561 = vmatpush3.bf16.xpose.msra.mxu0 %v579_v0  ;;  %v238_v0 = vld [vmem:[%s4125_s25 + $0x168] sm:$0xff] }
  0x56   : > { %3579 = vmatpush3.bf16.xpose.msra.mxu1 %v627_v19  ;;  %3928 = vmatprep.subr.msk.bf16.mxu0 %vm390_vm0, %v267_v18  ;;  %v263_v18 = vpack.c.bf16 %v206_v16, %v205_v15  ;;  %v279_v19 = vpack.c.bf16 %v238_v0, %v237_v17  ;;  %v3064_v15 = vld [vmem:[%s4125_s25 + $0xba] sm:$0xff]  ;;  %v3095_v16 = vld [vmem:[%s4125_s25 + $0x1b2] sm:$0xff] }
  0x57   : > { %3936 = vmatprep.subr.msk.bf16.mxu1 %vm390_vm0, %v283_v20  ;;  %v223_v20 = vld [vmem:[%s4125_s25 + $0xf0] sm:$0xff]  ;;  %v3096_v17 = vld [vmem:[%s4125_s25 + $0x1ba] sm:$0xff] }
  0x58   : > { %v594_v24 = vsel %vm390_vm0, %v263_v18, 0  ;;  %v272_v25 = vpack.c.bf16 %v224_v21, %v223_v20  ;;  %v642_v26 = vsel %vm390_vm0, %v279_v19, 0  ;;  %v4422_v20 = vpack.c.bf16 %v3096_v17, %v3095_v16  ;;  %v3047_v21 = vld [vmem:[%s4125_s25 + $0x32] sm:$0xff]  ;;  %v3072_v17 = vld [vmem:[%s4125_s25 + $0xfa] sm:$0xff] }
  0x59   : > { %v3071_v16 = vld [vmem:[%s4125_s25 + $0xf2] sm:$0xff] }
  0x5d   : > { %3563 = vmatpush3.bf16.xpose.msra.mxu0 %v582_v31  ;;  %v240_v31 = vld [vmem:[%s4125_s25 + $0x178] sm:$0xff] }
  0x5e   : > { %3581 = vmatpush3.bf16.xpose.msra.mxu1 %v630_v33  ;;  %3929 = vmatprep.subr.msk.bf16.mxu0 %vm390_vm0, %v268_v32  ;;  %v264_v32 = vpack.c.bf16 %v208_v29, %v207_v28  ;;  %v280_v33 = vpack.c.bf16 %v240_v31, %v239_v30  ;;  %v3066_v28 = vld [vmem:[%s4125_s25 + $0xca] sm:$0xff]  ;;  %v3097_v29 = vld [vmem:[%s4125_s25 + $0x1c2] sm:$0xff] }
  0x5f   : > { %3937 = vmatprep.subr.msk.bf16.mxu1 %vm390_vm0, %v284_v34  ;;  %v3057_v34 = vld [vmem:[%s4125_s25 + $0x82] sm:$0xff]  ;;  %v3098_v30 = vld [vmem:[%s4125_s25 + $0x1ca] sm:$0xff] }
  0x60   : > { %v597_v38 = vsel %vm390_vm0, %v264_v32, 0  ;;  %v4339_v39 = vpack.c.bf16 %v3058_v35, %v3057_v34  ;;  %v645_v40 = vsel %vm390_vm0, %v280_v33, 0  ;;  %v4446_v34 = vpack.c.bf16 %v3098_v30, %v3097_v29  ;;  %v3049_v35 = vld [vmem:[%s4125_s25 + $0x42] sm:$0xff]  ;;  %v3087_v29 = vld [vmem:[%s4125_s25 + $0x172] sm:$0xff]  ;;  %v3088_v30 = vld [vmem:[%s4125_s25 + $0x17a] sm:$0xff] }
  0x65   : > { %3565 = vmatpush3.bf16.xpose.msra.mxu0 %v585_v45  ;;  %v3074_v45 = vld [vmem:[%s4125_s25 + $0x10a] sm:$0xff] }
  0x66   : > { %3583 = vmatpush3.bf16.xpose.msra.mxu1 %v633_v47  ;;  %3930 = vmatprep.subr.msk.bf16.mxu0 %vm390_vm0, %v269_v46  ;;  %v819_v46 = vpack.c.bf16 %v3042_v43, %v3041_v42  ;;  %v4352_v47 = vpack.c.bf16 %v3074_v45, %v3073_v44  ;;  %v3067_v43 = vld [vmem:[%s4125_s25 + $0xd2] sm:$0xff]  ;;  %v3068_v44 = vld [vmem:[%s4125_s25 + $0xda] sm:$0xff] }
  0x67   : > { %3938 = vmatprep.subr.msk.bf16.mxu1 %vm390_vm0, %v285_v48  ;;  %v3059_v48 = vld [vmem:[%s4125_s25 + $0x92] sm:$0xff] }
  0x68   : > { %v857_v52 = vsel %vm390_vm0, %v819_v46, 0  ;;  %v4359_v53 = vpack.c.bf16 %v3060_v49, %v3059_v48  ;;  %v905_v54 = vsel %vm390_vm0, %v4352_v47, 0  ;;  %v3099_v45 = vld [vmem:[%s4125_s25 + $0x1d2] sm:$0xff]  ;;  %v3100_v46 = vld [vmem:[%s4125_s25 + $0x1da] sm:$0xff]  ;;  %v4465_v49 = vpack.c.bf16 %v3068_v44, %v3067_v43 }
  0x69   : > { %v4470_v51 = vpack.c.bf16 %v3100_v46, %v3099_v45  ;;  %v3196_v43 = vld [vmem:[%s4125_s25 + $0xab] sm:$0xff] }
  0x6a   : > { %v3228_v44 = vld [vmem:[%s4125_s25 + $0x1ab] sm:$0xff] }
  0x6d   : > { %3567 = vmatpush3.bf16.xpose.msra.mxu0 %v588_v59  ;;  %v3076_v59 = vld [vmem:[%s4125_s25 + $0x11a] sm:$0xff] }
  0x6e   : > { %3585 = vmatpush3.bf16.xpose.msra.mxu1 %v636_v61  ;;  %3931 = vmatprep.subr.msk.bf16.mxu0 %vm390_vm0, %v270_v60  ;;  %v4374_v60 = vld [vmem:[%s5188_s1 + $0x8] sm:$0xf]  ;;  %v820_v61 = vpack.c.bf16 %v3044_v57, %v3043_v56  ;;  %v3083_v56 = vld [vmem:[%s4125_s25 + $0x152] sm:$0xff]  ;;  %v3084_v57 = vld [vmem:[%s4125_s25 + $0x15a] sm:$0xff] }
  0x6f   : > { %3939 = vmatprep.subr.msk.bf16.mxu1 %vm390_vm0, %v286_v62  ;;  %v836_v62 = vpack.c.bf16 %v3076_v59, %v3075_v58  ;;  %v840_v59 = vpack.c.bf16 %v3084_v57, %v3083_v56  ;;  %v4587_v56 = vld [vmem:[%s5188_s1 + $0x10] sm:$0xf] }
  0x70   : > { %v4391_v3 = vsel %vm390_vm0, %v820_v61, 0  ;;  %v3069_v61 = vld [vmem:[%s4125_s25 + $0xe2] sm:$0xff] }
  0x71   : > { %v4396_v5 = vsel %vm390_vm0, %v836_v62, 0  ;;  %v3070_v62 = vld [vmem:[%s4125_s25 + $0xea] sm:$0xff] }
  0x75   : > { %3569 = vmatpush3.bf16.xpose.msra.mxu0 %v591_v10  ;;  %v3078_v10 = vld [vmem:[%s4125_s25 + $0x12a] sm:$0xff] }
  0x76   : > { %3587 = vmatpush3.bf16.xpose.msra.mxu1 %v639_v13  ;;  %3932 = vmatprep.subr.msk.bf16.mxu0 %vm390_vm0, %v271_v12  ;;  %v821_v12 = vpack.c.bf16 %v3046_v8, %v3045_v7  ;;  %v837_v13 = vpack.c.bf16 %v3078_v10, %v3077_v9  ;;  %v920_v7 = vsel %vm390_vm0, %v840_v59, 0  ;;  %v849_v8 = vpack.c.bf16 %v3102_v1, %v3101_v63  ;;  %v3053_v9 = vld [vmem:[%s4125_s25 + $0x62] sm:$0xff]  ;;  %v3054_v10 = vld [vmem:[%s4125_s25 + $0x6a] sm:$0xff]  ;;  %v3197_v59 = vld [vmem:[%s4125_s25 + $0xb3] sm:$0xff] }
  0x77   : > { %3940 = vmatprep.subr.msk.bf16.mxu1 %vm390_vm0, %v287_v14  ;;  %v3063_v14 = vld [vmem:[%s4125_s25 + $0xb2] sm:$0xff]  ;;  %v3230_v63 = vld [vmem:[%s4125_s25 + $0x1bb] sm:$0xff] }
  0x78   : > { %v4415_v0 = vsel %vm390_vm0, %v821_v12, 0  ;;  %v4417_v18 = vpack.c.bf16 %v3064_v15, %v3063_v14  ;;  %v4420_v19 = vsel %vm390_vm0, %v837_v13, 0  ;;  %v3085_v12 = vld [vmem:[%s4125_s25 + $0x162] sm:$0xff]  ;;  %v3086_v13 = vld [vmem:[%s4125_s25 + $0x16a] sm:$0xff]  ;;  %v825_v14 = vpack.c.bf16 %v3054_v10, %v3053_v9  ;;  %v3213_v10 = vld [vmem:[%s4125_s25 + $0x133] sm:$0xff] }
  0x79   : > { %v841_v15 = vpack.c.bf16 %v3086_v13, %v3085_v12  ;;  %v3182_v9 = vld [vmem:[%s4125_s25 + $0x3b] sm:$0xff] }
  0x7a   : > { %v3214_v12 = vld [vmem:[%s4125_s25 + $0x13b] sm:$0xff] }
  0x7d   : > { %3571 = vmatpush3.bf16.xpose.msra.mxu0 %v594_v24  ;;  %v3080_v24 = vld [vmem:[%s4125_s25 + $0x13a] sm:$0xff] }
  0x7e   : > { %3589 = vmatpush3.bf16.xpose.msra.mxu1 %v642_v26  ;;  %3933 = vmatprep.subr.msk.bf16.mxu0 %vm390_vm0, %v272_v25  ;;  %v822_v25 = vpack.c.bf16 %v3048_v22, %v3047_v21  ;;  %v838_v26 = vpack.c.bf16 %v3080_v24, %v3079_v23  ;;  %v3103_v21 = vld [vmem:[%s4125_s25 + $0x1f2] sm:$0xff]  ;;  %v3104_v22 = vld [vmem:[%s4125_s25 + $0x1fa] sm:$0xff]  ;;  %v875_v23 = vsel %vm390_vm0, %v825_v14, 0  ;;  %v834_v24 = vpack.c.bf16 %v3072_v17, %v3071_v16  ;;  %v3231_v17 = vld [vmem:[%s4125_s25 + $0x1c3] sm:$0xff] }
  0x7f   : > { %3941 = vmatprep.subr.msk.bf16.mxu1 %vm390_vm0, %v288_v27  ;;  %v3065_v27 = vld [vmem:[%s4125_s25 + $0xc2] sm:$0xff]  ;;  %v1407_v14 = vpack.c.bf16 %v3214_v12, %v3213_v10  ;;  %v3200_v16 = vld [vmem:[%s4125_s25 + $0xcb] sm:$0xff] }
  0x80   : > { %v4439_v31 = vsel %vm390_vm0, %v822_v25, 0  ;;  %v4441_v32 = vpack.c.bf16 %v3066_v28, %v3065_v27  ;;  %v4444_v33 = vsel %vm390_vm0, %v838_v26, 0  ;;  %v923_v25 = vsel %vm390_vm0, %v841_v15, 0  ;;  %v3055_v27 = vld [vmem:[%s4125_s25 + $0x72] sm:$0xff]  ;;  %v3056_v28 = vld [vmem:[%s4125_s25 + $0x7a] sm:$0xff]  ;;  %v3199_v15 = vld [vmem:[%s4125_s25 + $0xc3] sm:$0xff] }
  0x81   : > { %v850_v26 = vpack.c.bf16 %v3104_v22, %v3103_v21  ;;  %v3232_v21 = vld [vmem:[%s4125_s25 + $0x1cb] sm:$0xff] }
  0x82   : > { %v3240_v10 = vld [vmem:[%s4125_s25 + $0x20b] sm:$0xff] }
  0x85   : > { %3573 = vmatpush3.bf16.xpose.msra.mxu0 %v597_v38  ;;  %v3082_v38 = vld [vmem:[%s4125_s25 + $0x14a] sm:$0xff] }
  0x86   : > { %3591 = vmatpush3.bf16.xpose.msra.mxu1 %v645_v40  ;;  %3942 = vmatprep.subr.msk.bf16.mxu0 %vm390_vm0, %v4339_v39  ;;  %v823_v40 = vpack.c.bf16 %v3050_v36, %v3049_v35  ;;  %v839_v42 = vpack.c.bf16 %v3082_v38, %v3081_v37  ;;  %v826_v35 = vpack.c.bf16 %v3056_v28, %v3055_v27  ;;  %v3184_v27 = vld [vmem:[%s4125_s25 + $0x4b] sm:$0xff]  ;;  %v3215_v28 = vld [vmem:[%s4125_s25 + $0x143] sm:$0xff] }
  0x87   : > { %3950 = vmatprep.subr.msk.bf16.mxu1 %vm390_vm0, %v4342_v41  ;;  %v842_v36 = vpack.c.bf16 %v3088_v30, %v3087_v29  ;;  %v3216_v29 = vld [vmem:[%s4125_s25 + $0x14b] sm:$0xff] }
  0x88   : > { %v4463_v48 = vsel %vm390_vm0, %v823_v40, 0  ;;  %v4468_v50 = vsel %vm390_vm0, %v839_v42, 0  ;;  %v878_v37 = vsel %vm390_vm0, %v826_v35, 0  ;;  %v4517_v40 = vld [vmem:[%s5188_s1 + $0xc] sm:$0xf]  ;;  %v3195_v42 = vld [vmem:[%s4125_s25 + $0xa3] sm:$0xff]  ;;  %v1408_v35 = vpack.c.bf16 %v3216_v29, %v3215_v28 }
  0x89   : > { %v926_v38 = vsel %vm390_vm0, %v842_v36, 0  ;;  %v1398_v46 = vpack.c.bf16 %v3196_v43, %v3195_v42  ;;  %v3201_v36 = vld [vmem:[%s4125_s25 + $0xd3] sm:$0xff]  ;;  %v3187_v43 = vld [vmem:[%s4125_s25 + $0x63] sm:$0xff] }
  0x8a   : > { %v3294_v28 = vld [vmem:[%s4125_s25 + $0x19c] sm:$0xff] }
  0x8c   : > { %3575 = vmatmul.mubr.msk.bf16.vlgmr.msra.gmra.mrb[0].mxu0 %vm390_vm0, %v4252_v11 }
  0x8d   : > { %3593 = vmatmul.mubr.msk.bf16.vlgmr.msra.gmra.mrb[0].mxu1 %vm390_vm0, %v4252_v11  ;;  %3595 = vmatpush3.bf16.xpose.msra.mxu0 %v857_v52  ;;  %v3093_v11 = vld [vmem:[%s4125_s25 + $0x1a2] sm:$0xff]  ;;  %v3051_v52 = vld [vmem:[%s4125_s25 + $0x52] sm:$0xff] }
  0x8e   : > { %3613 = vmatpush3.bf16.xpose.msra.mxu1 %v905_v54  ;;  %3943 = vmatprep.subr.msk.bf16.mxu0 %vm390_vm0, %v4359_v53  ;;  %v4398_v6 = vpack.c.bf16 %v3094_v2, %v3093_v11  ;;  %v3052_v54 = vld [vmem:[%s4125_s25 + $0x5a] sm:$0xff]  ;;  %v833_v2 = vpack.c.bf16 %v3070_v62, %v3069_v61 }
  0x8f   : > { %3951 = vmatprep.subr.msk.bf16.mxu1 %vm390_vm0, %v4363_v55  ;;  %3610 = vmatprep.mubr.msk.bf16.mxu0 %vm390_vm0, %v4374_v60  ;;  %v824_v58 = vpack.c.bf16 %v3052_v54, %v3051_v52  ;;  %v3211_v52 = vld [vmem:[%s4125_s25 + $0x123] sm:$0xff]  ;;  %v3212_v54 = vld [vmem:[%s4125_s25 + $0x12b] sm:$0xff]  ;;  %v3198_v61 = vld [vmem:[%s4125_s25 + $0xbb] sm:$0xff] }
  0x90   : > { %3628 = vmatprep.mubr.msk.bf16.mxu1 %vm390_vm0, %v4374_v60  ;;  %v3229_v62 = vld [vmem:[%s4125_s25 + $0x1b3] sm:$0xff] }
  0x91   : > { %v872_v11 = vsel %vm390_vm0, %v824_v58, 0  ;;  %v1406_v58 = vpack.c.bf16 %v3212_v54, %v3211_v52  ;;  %v3238_v52 = vld [vmem:[%s4125_s25 + $0x1fb] sm:$0xff] }
  0x95   : > { %3597 = vmatpush3.bf16.xpose.msra.mxu0 %v4391_v3 }
  0x96   : > { %3615 = vmatpush3.bf16.xpose.msra.mxu1 %v4396_v5  ;;  %3944 = vmatprep.subr.msk.bf16.mxu0 %vm390_vm0, %v4393_v4 }
  0x97   : > { %3952 = vmatprep.subr.msk.bf16.mxu1 %vm390_vm0, %v4398_v6 }
  0x9d   : > { %3599 = vmatpush3.bf16.xpose.msra.mxu0 %v4415_v0 }
  0x9e   : > { %3617 = vmatpush3.bf16.xpose.msra.mxu1 %v4420_v19  ;;  %3945 = vmatprep.subr.msk.bf16.mxu0 %vm390_vm0, %v4417_v18 }
  0x9f   : > { %3953 = vmatprep.subr.msk.bf16.mxu1 %vm390_vm0, %v4422_v20 }
  0xa5   : > { %3601 = vmatpush3.bf16.xpose.msra.mxu0 %v4439_v31 }
  0xa6   : > { %3619 = vmatpush3.bf16.xpose.msra.mxu1 %v4444_v33  ;;  %3946 = vmatprep.subr.msk.bf16.mxu0 %vm390_vm0, %v4441_v32 }
  0xa7   : > { %3954 = vmatprep.subr.msk.bf16.mxu1 %vm390_vm0, %v4446_v34 }
  0xad   : > { %3603 = vmatpush3.bf16.xpose.msra.mxu0 %v4463_v48 }
  0xae   : > { %3621 = vmatpush3.bf16.xpose.msra.mxu1 %v4468_v50  ;;  %3947 = vmatprep.subr.msk.bf16.mxu0 %vm390_vm0, %v4465_v49 }
  0xaf   : > { %3955 = vmatprep.subr.msk.bf16.mxu1 %vm390_vm0, %v4470_v51 }
  0xb5   : > { %3605 = vmatpush3.bf16.xpose.msra.mxu0 %v872_v11 }
  0xb6   : > { %3623 = vmatpush3.bf16.xpose.msra.mxu1 %v920_v7  ;;  %3948 = vmatprep.subr.msk.bf16.mxu0 %vm390_vm0, %v833_v2 }
  0xb7   : > { %3956 = vmatprep.subr.msk.bf16.mxu1 %vm390_vm0, %v849_v8 }
  0xbd   : > { %3607 = vmatpush3.bf16.xpose.msra.mxu0 %v875_v23 }
  0xbe   : > { %3625 = vmatpush3.bf16.xpose.msra.mxu1 %v923_v25  ;;  %3949 = vmatprep.subr.msk.bf16.mxu0 %vm390_vm0, %v834_v24 }
  0xbf   : > { %3957 = vmatprep.subr.msk.bf16.mxu1 %vm390_vm0, %v850_v26 }
  0xc5   : > { %3609 = vmatpush3.bf16.xpose.msra.mxu0 %v878_v37 }
  0xc6   : > { %3627 = vmatpush3.bf16.xpose.msra.mxu1 %v926_v38  ;;  %3958 = vmatprep.subr.msk.bf16.mxu0 %vm390_vm0, %v4359_v53  ;;  %v3171_v53 = vld [vmem:[%s4125_s25 + $0x202] sm:$0xff] }
  0xc7   : > { %3966 = vmatprep.subr.msk.bf16.mxu1 %vm390_vm0, %v4363_v55  ;;  %v3172_v55 = vld [vmem:[%s4125_s25 + $0x20a] sm:$0xff] }
  0xcc   : > { %3611 = vmatmul.mubr.msk.bf16.vlgmr.msra.gmra.mrb[0].mxu0 %vm390_vm0, %v4374_v60 }
  0xcd   : > { %3629 = vmatmul.mubr.msk.bf16.vlgmr.msra.gmra.mrb[0].mxu1 %vm390_vm0, %v4374_v60  ;;  %3631 = vmatpush3.bf16.xpose.msra.mxu0 %v4391_v3  ;;  %v1135_v60 = vpack.c.bf16 %v3172_v55, %v3171_v53  ;;  %v3193_v3 = vld [vmem:[%s4125_s25 + $0x93] sm:$0xff] }
  0xce   : > { %3649 = vmatpush3.bf16.xpose.msra.mxu1 %v4396_v5  ;;  %3959 = vmatprep.subr.msk.bf16.mxu0 %vm390_vm0, %v4393_v4  ;;  %v3194_v4 = vld [vmem:[%s4125_s25 + $0x9b] sm:$0xff]  ;;  %v3225_v5 = vld [vmem:[%s4125_s25 + $0x193] sm:$0xff] }
  0xcf   : > { %3967 = vmatprep.subr.msk.bf16.mxu1 %vm390_vm0, %v4398_v6  ;;  %3646 = vmatprep.mubr.msk.bf16.mxu0 %vm390_vm0, %v4517_v40  ;;  %v3226_v6 = vld [vmem:[%s4125_s25 + $0x19b] sm:$0xff] }
  0xd0   : > { %3664 = vmatprep.mubr.msk.bf16.mxu1 %vm390_vm0, %v4517_v40 }
  0xd5   : > { %3633 = vmatpush3.bf16.xpose.msra.mxu0 %v4415_v0  ;;  %v1163_v0 = vsel %vm390_vm0, %v4339_v39, 0 }
  0xd6   : > { %3651 = vmatpush3.bf16.xpose.msra.mxu1 %v4420_v19  ;;  %3960 = vmatprep.subr.msk.bf16.mxu0 %vm390_vm0, %v4417_v18  ;;  %v1397_v18 = vpack.c.bf16 %v3194_v4, %v3193_v3  ;;  %v1211_v19 = vsel %vm390_vm0, %v4342_v41, 0  ;;  %v3227_v41 = vld [vmem:[%s4125_s25 + $0x1a3] sm:$0xff]  ;;  %v3185_v4 = vld [vmem:[%s4125_s25 + $0x53] sm:$0xff] }
  0xd7   : > { %3968 = vmatprep.subr.msk.bf16.mxu1 %vm390_vm0, %v4422_v20  ;;  %v1413_v20 = vpack.c.bf16 %v3226_v6, %v3225_v5  ;;  %v3186_v5 = vld [vmem:[%s4125_s25 + $0x5b] sm:$0xff]  ;;  %v3217_v6 = vld [vmem:[%s4125_s25 + $0x153] sm:$0xff] }
  0xdd   : > { %3635 = vmatpush3.bf16.xpose.msra.mxu0 %v4439_v31  ;;  %v3177_v31 = vld [vmem:[%s4125_s25 + $0x13] sm:$0xff] }
  0xde   : > { %3653 = vmatpush3.bf16.xpose.msra.mxu1 %v4444_v33  ;;  %3961 = vmatprep.subr.msk.bf16.mxu0 %vm390_vm0, %v4441_v32  ;;  %v3209_v32 = vld [vmem:[%s4125_s25 + $0x113] sm:$0xff]  ;;  %v3210_v33 = vld [vmem:[%s4125_s25 + $0x11b] sm:$0xff] }
  0xdf   : > { %3969 = vmatprep.subr.msk.bf16.mxu1 %vm390_vm0, %v4446_v34  ;;  %v1405_v34 = vpack.c.bf16 %v3210_v33, %v3209_v32  ;;  %v3236_v32 = vld [vmem:[%s4125_s25 + $0x1eb] sm:$0xff] }
  0xe5   : > { %3637 = vmatpush3.bf16.xpose.msra.mxu0 %v4463_v48  ;;  %v1475_v48 = vsel %vm390_vm0, %v1405_v34, 0 }
  0xe6   : > { %3655 = vmatpush3.bf16.xpose.msra.mxu1 %v4468_v50  ;;  %3962 = vmatprep.subr.msk.bf16.mxu0 %vm390_vm0, %v4465_v49  ;;  %v1414_v49 = vpack.c.bf16 %v3228_v44, %v3227_v41  ;;  %v3179_v50 = vld [vmem:[%s4125_s25 + $0x23] sm:$0xff]  ;;  %v3188_v41 = vld [vmem:[%s4125_s25 + $0x6b] sm:$0xff] }
  0xe7   : > { %3970 = vmatprep.subr.msk.bf16.mxu1 %vm390_vm0, %v4470_v51  ;;  %v3180_v51 = vld [vmem:[%s4125_s25 + $0x2b] sm:$0xff]  ;;  %v3219_v44 = vld [vmem:[%s4125_s25 + $0x163] sm:$0xff] }
  0xe8   : > { %v1390_v57 = vpack.c.bf16 %v3180_v51, %v3179_v50  ;;  %v3206_v50 = vld [vmem:[%s4125_s25 + $0xfb] sm:$0xff]  ;;  %v3237_v51 = vld [vmem:[%s4125_s25 + $0x1f3] sm:$0xff] }
  0xea   : > { %v1430_v1 = vsel %vm390_vm0, %v1390_v57, 0 }
  0xed   : > { %3639 = vmatpush3.bf16.xpose.msra.mxu0 %v872_v11  ;;  %v1399_v11 = vpack.c.bf16 %v3198_v61, %v3197_v59  ;;  %v1419_v59 = vpack.c.bf16 %v3238_v52, %v3237_v51  ;;  %v3189_v61 = vld [vmem:[%s4125_s25 + $0x73] sm:$0xff]  ;;  %v3250_v51 = vld [vmem:[%s4125_s25 + $0x3c] sm:$0xff] }
  0xee   : > { %3657 = vmatpush3.bf16.xpose.msra.mxu1 %v920_v7  ;;  %3963 = vmatprep.subr.msk.bf16.mxu0 %vm390_vm0, %v833_v2  ;;  %v1478_v2 = vsel %vm390_vm0, %v1406_v58, 0  ;;  %v1415_v7 = vpack.c.bf16 %v3230_v63, %v3229_v62  ;;  %v3190_v62 = vld [vmem:[%s4125_s25 + $0x7b] sm:$0xff]  ;;  %v3221_v63 = vld [vmem:[%s4125_s25 + $0x173] sm:$0xff] }
  0xef   : > { %3971 = vmatprep.subr.msk.bf16.mxu1 %vm390_vm0, %v849_v8  ;;  %v3181_v8 = vld [vmem:[%s4125_s25 + $0x33] sm:$0xff] }
  0xf0   : > { %v1391_v13 = vpack.c.bf16 %v3182_v9, %v3181_v8  ;;  %v3208_v8 = vld [vmem:[%s4125_s25 + $0x10b] sm:$0xff]  ;;  %v3239_v9 = vld [vmem:[%s4125_s25 + $0x203] sm:$0xff]  ;;  %v3281_v52 = vld [vmem:[%s4125_s25 + $0x134] sm:$0xff] }
  0xf2   : > { %v1433_v22 = vsel %vm390_vm0, %v1391_v13, 0 }
  0xf5   : > { %3641 = vmatpush3.bf16.xpose.msra.mxu0 %v875_v23  ;;  %v1400_v23 = vpack.c.bf16 %v3200_v16, %v3199_v15  ;;  %v1420_v15 = vpack.c.bf16 %v3240_v10, %v3239_v9  ;;  %v3191_v16 = vld [vmem:[%s4125_s25 + $0x83] sm:$0xff]  ;;  %v3252_v9 = vld [vmem:[%s4125_s25 + $0x4c] sm:$0xff] }
  0xf6   : > { %3659 = vmatpush3.bf16.xpose.msra.mxu1 %v923_v25  ;;  %3964 = vmatprep.subr.msk.bf16.mxu0 %vm390_vm0, %v834_v24  ;;  %v1481_v24 = vsel %vm390_vm0, %v1407_v14, 0  ;;  %v1416_v25 = vpack.c.bf16 %v3232_v21, %v3231_v17  ;;  %v3192_v17 = vld [vmem:[%s4125_s25 + $0x8b] sm:$0xff]  ;;  %v3223_v21 = vld [vmem:[%s4125_s25 + $0x183] sm:$0xff] }
  0xf7   : > { %3972 = vmatprep.subr.msk.bf16.mxu1 %vm390_vm0, %v850_v26  ;;  %v3183_v26 = vld [vmem:[%s4125_s25 + $0x43] sm:$0xff] }
  0xf8   : > { %v1392_v30 = vpack.c.bf16 %v3184_v27, %v3183_v26  ;;  %v3262_v26 = vld [vmem:[%s4125_s25 + $0x9c] sm:$0xff]  ;;  %v3293_v27 = vld [vmem:[%s4125_s25 + $0x194] sm:$0xff]  ;;  %v3283_v10 = vld [vmem:[%s4125_s25 + $0x144] sm:$0xff] }
  0xfa   : > { %v1436_v53 = vsel %vm390_vm0, %v1392_v30, 0 }
  0xfd   : > { %3643 = vmatpush3.bf16.xpose.msra.mxu0 %v878_v37  ;;  %v3202_v37 = vld [vmem:[%s4125_s25 + $0xdb] sm:$0xff] }
  0xfe   : > { %3661 = vmatpush3.bf16.xpose.msra.mxu1 %v926_v38  ;;  %3965 = vmatprep.subr.msk.bf16.mxu0 %vm390_vm0, %v4352_v47  ;;  %v3178_v47 = vld [vmem:[%s4125_s25 + $0x1b] sm:$0xff]  ;;  %v3233_v38 = vld [vmem:[%s4125_s25 + $0x1d3] sm:$0xff]  ;;  %v1401_v55 = vpack.c.bf16 %v3202_v37, %v3201_v36  ;;  %v4677_v36 = vpack.c.bf16 %v3294_v28, %v3293_v27 }
  0xff   : > { %3973 = vmatprep.subr.msk.bf16.mxu1 %vm390_vm0, %v1135_v60  ;;  %v1389_v39 = vpack.c.bf16 %v3178_v47, %v3177_v31  ;;  %v1484_v60 = vsel %vm390_vm0, %v1408_v35, 0  ;;  %v3204_v31 = vld [vmem:[%s4125_s25 + $0xeb] sm:$0xff]  ;;  %v3235_v47 = vld [vmem:[%s4125_s25 + $0x1e3] sm:$0xff]  ;;  %v3245_v37 = vld [vmem:[%s4125_s25 + $0x14] sm:$0xff] }
 0x100   : > { %v1418_v42 = vpack.c.bf16 %v3236_v32, %v3235_v47  ;;  %v3248_v47 = vld [vmem:[%s4125_s25 + $0x2c] sm:$0xff]  ;;  %v3279_v32 = vld [vmem:[%s4125_s25 + $0x124] sm:$0xff]  ;;  %v3254_v27 = vld [vmem:[%s4125_s25 + $0x5c] sm:$0xff] }
 0x101   : > { %v1427_v45 = vsel %vm390_vm0, %v1389_v39, 0  ;;  %v3285_v28 = vld [vmem:[%s4125_s25 + $0x154] sm:$0xff] }
 0x105   : > { %3645 = vmatpush3.bf16.xpose.msra.mxu0 %v1163_v0  ;;  %v3218_v0 = vld [vmem:[%s4125_s25 + $0x15b] sm:$0xff] }
 0x106   : > { %3663 = vmatpush3.bf16.xpose.msra.mxu1 %v1211_v19  ;;  %3974 = vmatprep.subr.msk.bf16.mxu0 %vm390_vm0, %v1397_v18  ;;  %v1393_v18 = vpack.c.bf16 %v3186_v5, %v3185_v4  ;;  %v1409_v19 = vpack.c.bf16 %v3218_v0, %v3217_v6  ;;  %v3264_v4 = vld [vmem:[%s4125_s25 + $0xac] sm:$0xff]  ;;  %v3295_v5 = vld [vmem:[%s4125_s25 + $0x1a4] sm:$0xff] }
 0x107   : > { %3982 = vmatprep.subr.msk.bf16.mxu1 %vm390_vm0, %v1413_v20  ;;  %v3203_v20 = vld [vmem:[%s4125_s25 + $0xe3] sm:$0xff]  ;;  %v3296_v6 = vld [vmem:[%s4125_s25 + $0x1ac] sm:$0xff] }
 0x108   : > { %v1439_v33 = vsel %vm390_vm0, %v1393_v18, 0  ;;  %v1402_v39 = vpack.c.bf16 %v3204_v31, %v3203_v20  ;;  %v1487_v34 = vsel %vm390_vm0, %v1409_v19, 0  ;;  %v4698_v20 = vpack.c.bf16 %v3296_v6, %v3295_v5  ;;  %v3247_v31 = vld [vmem:[%s4125_s25 + $0x24] sm:$0xff] }
 0x10c   : > { %3647 = vmatmul.mubr.msk.bf16.vlgmr.msra.gmra.mrb[0].mxu0 %vm390_vm0, %v4517_v40 }
 0x10d   : > { %3665 = vmatmul.mubr.msk.bf16.vlgmr.msra.gmra.mrb[0].mxu1 %vm390_vm0, %v4517_v40  ;;  %3667 = vmatpush3.bf16.xpose.msra.mxu0 %v1427_v45  ;;  %v3234_v40 = vld [vmem:[%s4125_s25 + $0x1db] sm:$0xff]  ;;  %v3220_v45 = vld [vmem:[%s4125_s25 + $0x16b] sm:$0xff] }
 0x10e   : > { %3685 = vmatpush3.bf16.xpose.msra.mxu1 %v1475_v48  ;;  %3975 = vmatprep.subr.msk.bf16.mxu0 %vm390_vm0, %v1398_v46  ;;  %v1417_v3 = vpack.c.bf16 %v3234_v40, %v3233_v38  ;;  %v1394_v46 = vpack.c.bf16 %v3188_v41, %v3187_v43  ;;  %v1410_v48 = vpack.c.bf16 %v3220_v45, %v3219_v44  ;;  %v3246_v38 = vld [vmem:[%s4125_s25 + $0x1c] sm:$0xff]  ;;  %v3277_v40 = vld [vmem:[%s4125_s25 + $0x114] sm:$0xff] }
 0x10f   : > { %3983 = vmatprep.subr.msk.bf16.mxu1 %vm390_vm0, %v1414_v49  ;;  %3682 = vmatprep.mubr.msk.bf16.mxu0 %vm390_vm0, %v4587_v56  ;;  %v3205_v49 = vld [vmem:[%s4125_s25 + $0xf3] sm:$0xff]  ;;  %v3266_v41 = vld [vmem:[%s4125_s25 + $0xbc] sm:$0xff] }
 0x110   : > { %3700 = vmatprep.mubr.msk.bf16.mxu1 %vm390_vm0, %v4587_v56  ;;  %v1442_v54 = vsel %vm390_vm0, %v1394_v46, 0  ;;  %v1403_v57 = vpack.c.bf16 %v3206_v50, %v3205_v49  ;;  %v1490_v58 = vsel %vm390_vm0, %v1410_v48, 0  ;;  %v3265_v43 = vld [vmem:[%s4125_s25 + $0xb4] sm:$0xff]  ;;  %v3298_v44 = vld [vmem:[%s4125_s25 + $0x1bc] sm:$0xff] }
 0x111   : > { %v4728_v46 = vpack.c.bf16 %v3266_v41, %v3265_v43  ;;  %v3249_v50 = vld [vmem:[%s4125_s25 + $0x34] sm:$0xff]  ;;  %v3306_v41 = vld [vmem:[%s4125_s25 + $0x1fc] sm:$0xff] }
 0x112   : > { %v3305_v43 = vld [vmem:[%s4125_s25 + $0x1f4] sm:$0xff] }
 0x115   : > { %3669 = vmatpush3.bf16.xpose.msra.mxu0 %v1430_v1  ;;  %v3222_v1 = vld [vmem:[%s4125_s25 + $0x17b] sm:$0xff] }
 0x116   : > { %3687 = vmatpush3.bf16.xpose.msra.mxu1 %v1478_v2  ;;  %3976 = vmatprep.subr.msk.bf16.mxu0 %vm390_vm0, %v1399_v11  ;;  %v1395_v11 = vpack.c.bf16 %v3190_v62, %v3189_v61  ;;  %v1411_v2 = vpack.c.bf16 %v3222_v1, %v3221_v63  ;;  %v3268_v61 = vld [vmem:[%s4125_s25 + $0xcc] sm:$0xff]  ;;  %v3299_v62 = vld [vmem:[%s4125_s25 + $0x1c4] sm:$0xff] }
 0x117   : > { %3984 = vmatprep.subr.msk.bf16.mxu1 %vm390_vm0, %v1415_v7  ;;  %v3207_v7 = vld [vmem:[%s4125_s25 + $0x103] sm:$0xff]  ;;  %v3300_v63 = vld [vmem:[%s4125_s25 + $0x1cc] sm:$0xff] }
 0x118   : > { %v1445_v12 = vsel %vm390_vm0, %v1395_v11, 0  ;;  %v1404_v13 = vpack.c.bf16 %v3208_v8, %v3207_v7  ;;  %v1493_v14 = vsel %vm390_vm0, %v1411_v2, 0  ;;  %v4757_v7 = vpack.c.bf16 %v3300_v63, %v3299_v62  ;;  %v3251_v8 = vld [vmem:[%s4125_s25 + $0x44] sm:$0xff]  ;;  %v3276_v63 = vld [vmem:[%s4125_s25 + $0x10c] sm:$0xff] }
 0x119   : > { %v3275_v62 = vld [vmem:[%s4125_s25 + $0x104] sm:$0xff] }
 0x11d   : > { %3671 = vmatpush3.bf16.xpose.msra.mxu0 %v1433_v22  ;;  %v3224_v22 = vld [vmem:[%s4125_s25 + $0x18b] sm:$0xff] }
 0x11e   : > { %3689 = vmatpush3.bf16.xpose.msra.mxu1 %v1481_v24  ;;  %3977 = vmatprep.subr.msk.bf16.mxu0 %vm390_vm0, %v1400_v23  ;;  %v1396_v23 = vpack.c.bf16 %v3192_v17, %v3191_v16  ;;  %v1412_v24 = vpack.c.bf16 %v3224_v22, %v3223_v21  ;;  %v3270_v16 = vld [vmem:[%s4125_s25 + $0xdc] sm:$0xff]  ;;  %v3301_v17 = vld [vmem:[%s4125_s25 + $0x1d4] sm:$0xff] }
 0x11f   : > { %3985 = vmatprep.subr.msk.bf16.mxu1 %vm390_vm0, %v1416_v25  ;;  %v3261_v25 = vld [vmem:[%s4125_s25 + $0x94] sm:$0xff]  ;;  %v3302_v21 = vld [vmem:[%s4125_s25 + $0x1dc] sm:$0xff] }
 0x120   : > { %v1448_v29 = vsel %vm390_vm0, %v1396_v23, 0  ;;  %v4674_v30 = vpack.c.bf16 %v3262_v26, %v3261_v25  ;;  %v1496_v35 = vsel %vm390_vm0, %v1412_v24, 0  ;;  %v4781_v25 = vpack.c.bf16 %v3302_v21, %v3301_v17  ;;  %v3253_v26 = vld [vmem:[%s4125_s25 + $0x54] sm:$0xff]  ;;  %v3291_v17 = vld [vmem:[%s4125_s25 + $0x184] sm:$0xff]  ;;  %v3292_v21 = vld [vmem:[%s4125_s25 + $0x18c] sm:$0xff] }
 0x125   : > { %3673 = vmatpush3.bf16.xpose.msra.mxu0 %v1436_v53  ;;  %v3278_v53 = vld [vmem:[%s4125_s25 + $0x11c] sm:$0xff] }
 0x126   : > { %3691 = vmatpush3.bf16.xpose.msra.mxu1 %v1484_v60  ;;  %3978 = vmatprep.subr.msk.bf16.mxu0 %vm390_vm0, %v1401_v55  ;;  %v1674_v55 = vpack.c.bf16 %v3246_v38, %v3245_v37  ;;  %v4687_v60 = vpack.c.bf16 %v3278_v53, %v3277_v40  ;;  %v3271_v38 = vld [vmem:[%s4125_s25 + $0xe4] sm:$0xff]  ;;  %v3272_v40 = vld [vmem:[%s4125_s25 + $0xec] sm:$0xff] }
 0x127   : > { %3986 = vmatprep.subr.msk.bf16.mxu1 %vm390_vm0, %v1417_v3  ;;  %v3263_v3 = vld [vmem:[%s4125_s25 + $0xa4] sm:$0xff] }
 0x128   : > { %v1712_v0 = vsel %vm390_vm0, %v1674_v55, 0  ;;  %v4694_v18 = vpack.c.bf16 %v3264_v4, %v3263_v3  ;;  %v1760_v19 = vsel %vm390_vm0, %v4687_v60, 0  ;;  %v3303_v53 = vld [vmem:[%s4125_s25 + $0x1e4] sm:$0xff]  ;;  %v3304_v55 = vld [vmem:[%s4125_s25 + $0x1ec] sm:$0xff]  ;;  %v4800_v4 = vpack.c.bf16 %v3272_v40, %v3271_v38 }
 0x129   : > { %v4805_v6 = vpack.c.bf16 %v3304_v55, %v3303_v53  ;;  %v3400_v38 = vld [vmem:[%s4125_s25 + $0xbd] sm:$0xff] }
 0x12a   : > { %v3432_v40 = vld [vmem:[%s4125_s25 + $0x1bd] sm:$0xff] }
 0x12d   : > { %3675 = vmatpush3.bf16.xpose.msra.mxu0 %v1439_v33  ;;  %v3280_v33 = vld [vmem:[%s4125_s25 + $0x12c] sm:$0xff] }
 0x12e   : > { %3693 = vmatpush3.bf16.xpose.msra.mxu1 %v1487_v34  ;;  %3979 = vmatprep.subr.msk.bf16.mxu0 %vm390_vm0, %v1402_v39  ;;  %v4709_v39 = vld [vmem:[%s5188_s1 + $0x14] sm:$0xf]  ;;  %v1675_v34 = vpack.c.bf16 %v3248_v47, %v3247_v31  ;;  %v3287_v31 = vld [vmem:[%s4125_s25 + $0x164] sm:$0xff]  ;;  %v3288_v47 = vld [vmem:[%s4125_s25 + $0x16c] sm:$0xff] }
 0x12f   : > { %3987 = vmatprep.subr.msk.bf16.mxu1 %vm390_vm0, %v1418_v42  ;;  %v1691_v42 = vpack.c.bf16 %v3280_v33, %v3279_v32  ;;  %v1695_v33 = vpack.c.bf16 %v3288_v47, %v3287_v31  ;;  %v4922_v31 = vld [vmem:[%s5188_s1 + $0x1c] sm:$0xf] }
 0x130   : > { %v4726_v45 = vsel %vm390_vm0, %v1675_v34, 0  ;;  %v3273_v34 = vld [vmem:[%s4125_s25 + $0xf4] sm:$0xff] }
 0x131   : > { %v4731_v48 = vsel %vm390_vm0, %v1691_v42, 0  ;;  %v3274_v42 = vld [vmem:[%s4125_s25 + $0xfc] sm:$0xff] }
 0x135   : > { %3677 = vmatpush3.bf16.xpose.msra.mxu0 %v1442_v54  ;;  %v3282_v54 = vld [vmem:[%s4125_s25 + $0x13c] sm:$0xff] }
 0x136   : > { %3695 = vmatpush3.bf16.xpose.msra.mxu1 %v1490_v58  ;;  %3980 = vmatprep.subr.msk.bf16.mxu0 %vm390_vm0, %v1403_v57  ;;  %v1676_v57 = vpack.c.bf16 %v3250_v51, %v3249_v50  ;;  %v1692_v58 = vpack.c.bf16 %v3282_v54, %v3281_v52  ;;  %v1775_v50 = vsel %vm390_vm0, %v1695_v33, 0  ;;  %v1704_v51 = vpack.c.bf16 %v3306_v41, %v3305_v43  ;;  %v3257_v52 = vld [vmem:[%s4125_s25 + $0x74] sm:$0xff]  ;;  %v3258_v54 = vld [vmem:[%s4125_s25 + $0x7c] sm:$0xff]  ;;  %v3401_v33 = vld [vmem:[%s4125_s25 + $0xc5] sm:$0xff] }
 0x137   : > { %3988 = vmatprep.subr.msk.bf16.mxu1 %vm390_vm0, %v1419_v59  ;;  %v3267_v59 = vld [vmem:[%s4125_s25 + $0xc4] sm:$0xff]  ;;  %v3434_v43 = vld [vmem:[%s4125_s25 + $0x1cd] sm:$0xff] }
 0x138   : > { %v4750_v1 = vsel %vm390_vm0, %v1676_v57, 0  ;;  %v4752_v11 = vpack.c.bf16 %v3268_v61, %v3267_v59  ;;  %v4755_v2 = vsel %vm390_vm0, %v1692_v58, 0  ;;  %v3289_v57 = vld [vmem:[%s4125_s25 + $0x174] sm:$0xff]  ;;  %v3290_v58 = vld [vmem:[%s4125_s25 + $0x17c] sm:$0xff]  ;;  %v1680_v59 = vpack.c.bf16 %v3258_v54, %v3257_v52  ;;  %v3417_v54 = vld [vmem:[%s4125_s25 + $0x145] sm:$0xff] }
 0x139   : > { %v1696_v61 = vpack.c.bf16 %v3290_v58, %v3289_v57  ;;  %v3386_v52 = vld [vmem:[%s4125_s25 + $0x4d] sm:$0xff] }
 0x13a   : > { %v3418_v57 = vld [vmem:[%s4125_s25 + $0x14d] sm:$0xff] }
 0x13d   : > { %3679 = vmatpush3.bf16.xpose.msra.mxu0 %v1445_v12  ;;  %v3284_v12 = vld [vmem:[%s4125_s25 + $0x14c] sm:$0xff] }
 0x13e   : > { %3697 = vmatpush3.bf16.xpose.msra.mxu1 %v1493_v14  ;;  %3981 = vmatprep.subr.msk.bf16.mxu0 %vm390_vm0, %v1404_v13  ;;  %v1677_v13 = vpack.c.bf16 %v3252_v9, %v3251_v8  ;;  %v1693_v14 = vpack.c.bf16 %v3284_v12, %v3283_v10  ;;  %v3307_v8 = vld [vmem:[%s4125_s25 + $0x204] sm:$0xff]  ;;  %v3308_v9 = vld [vmem:[%s4125_s25 + $0x20c] sm:$0xff]  ;;  %v1730_v10 = vsel %vm390_vm0, %v1680_v59, 0  ;;  %v1689_v12 = vpack.c.bf16 %v3276_v63, %v3275_v62  ;;  %v3435_v63 = vld [vmem:[%s4125_s25 + $0x1d5] sm:$0xff] }
 0x13f   : > { %3989 = vmatprep.subr.msk.bf16.mxu1 %vm390_vm0, %v1420_v15  ;;  %v3269_v15 = vld [vmem:[%s4125_s25 + $0xd4] sm:$0xff]  ;;  %v2262_v59 = vpack.c.bf16 %v3418_v57, %v3417_v54  ;;  %v3404_v62 = vld [vmem:[%s4125_s25 + $0xdd] sm:$0xff] }
 0x140   : > { %v4774_v22 = vsel %vm390_vm0, %v1677_v13, 0  ;;  %v4776_v23 = vpack.c.bf16 %v3270_v16, %v3269_v15  ;;  %v4779_v24 = vsel %vm390_vm0, %v1693_v14, 0  ;;  %v1778_v13 = vsel %vm390_vm0, %v1696_v61, 0  ;;  %v3259_v15 = vld [vmem:[%s4125_s25 + $0x84] sm:$0xff]  ;;  %v3260_v16 = vld [vmem:[%s4125_s25 + $0x8c] sm:$0xff]  ;;  %v3403_v61 = vld [vmem:[%s4125_s25 + $0xd5] sm:$0xff] }
 0x141   : > { %v1705_v14 = vpack.c.bf16 %v3308_v9, %v3307_v8  ;;  %v3436_v8 = vld [vmem:[%s4125_s25 + $0x1dd] sm:$0xff] }
 0x142   : > { %v3444_v54 = vld [vmem:[%s4125_s25 + $0x21d] sm:$0xff] }
 0x145   : > { %3681 = vmatpush3.bf16.xpose.msra.mxu0 %v1448_v29  ;;  %v3286_v29 = vld [vmem:[%s4125_s25 + $0x15c] sm:$0xff] }
 0x146   : > { %3699 = vmatpush3.bf16.xpose.msra.mxu1 %v1496_v35  ;;  %3990 = vmatprep.subr.msk.bf16.mxu0 %vm390_vm0, %v4674_v30  ;;  %v1678_v35 = vpack.c.bf16 %v3254_v27, %v3253_v26  ;;  %v1694_v37 = vpack.c.bf16 %v3286_v29, %v3285_v28  ;;  %v1681_v26 = vpack.c.bf16 %v3260_v16, %v3259_v15  ;;  %v3388_v15 = vld [vmem:[%s4125_s25 + $0x5d] sm:$0xff]  ;;  %v3419_v16 = vld [vmem:[%s4125_s25 + $0x155] sm:$0xff] }
 0x147   : > { %3998 = vmatprep.subr.msk.bf16.mxu1 %vm390_vm0, %v4677_v36  ;;  %v1697_v27 = vpack.c.bf16 %v3292_v21, %v3291_v17  ;;  %v3420_v17 = vld [vmem:[%s4125_s25 + $0x15d] sm:$0xff] }
 0x148   : > { %v4798_v3 = vsel %vm390_vm0, %v1678_v35, 0  ;;  %v4803_v5 = vsel %vm390_vm0, %v1694_v37, 0  ;;  %v1733_v28 = vsel %vm390_vm0, %v1681_v26, 0  ;;  %v4852_v35 = vld [vmem:[%s5188_s1 + $0x18] sm:$0xf]  ;;  %v2263_v26 = vpack.c.bf16 %v3420_v17, %v3419_v16  ;;  %v3498_v16 = vld [vmem:[%s4125_s25 + $0x1ae] sm:$0xff] }
 0x149   : > { %v1781_v29 = vsel %vm390_vm0, %v1697_v27, 0  ;;  %v3399_v37 = vld [vmem:[%s4125_s25 + $0xb5] sm:$0xff]  ;;  %v3405_v27 = vld [vmem:[%s4125_s25 + $0xe5] sm:$0xff] }
 0x14a   : > { %v2253_v55 = vpack.c.bf16 %v3400_v38, %v3399_v37  ;;  %v3391_v38 = vld [vmem:[%s4125_s25 + $0x75] sm:$0xff] }
 0x14c   : > { %3683 = vmatmul.mubr.msk.bf16.vlgmr.msra.gmra.mrb[0].mxu0 %vm390_vm0, %v4587_v56 }
 0x14d   : > { %3701 = vmatmul.mubr.msk.bf16.vlgmr.msra.gmra.mrb[0].mxu1 %vm390_vm0, %v4587_v56  ;;  %3703 = vmatpush3.bf16.xpose.msra.mxu0 %v1712_v0  ;;  %v3297_v56 = vld [vmem:[%s4125_s25 + $0x1b4] sm:$0xff]  ;;  %v3255_v0 = vld [vmem:[%s4125_s25 + $0x64] sm:$0xff] }
 0x14e   : > { %3721 = vmatpush3.bf16.xpose.msra.mxu1 %v1760_v19  ;;  %3991 = vmatprep.subr.msk.bf16.mxu0 %vm390_vm0, %v4694_v18  ;;  %v4733_v49 = vpack.c.bf16 %v3298_v44, %v3297_v56  ;;  %v3256_v19 = vld [vmem:[%s4125_s25 + $0x6c] sm:$0xff]  ;;  %v1688_v44 = vpack.c.bf16 %v3274_v42, %v3273_v34 }
 0x14f   : > { %3999 = vmatprep.subr.msk.bf16.mxu1 %vm390_vm0, %v4698_v20  ;;  %3718 = vmatprep.mubr.msk.bf16.mxu0 %vm390_vm0, %v4709_v39  ;;  %v1679_v32 = vpack.c.bf16 %v3256_v19, %v3255_v0  ;;  %v3415_v0 = vld [vmem:[%s4125_s25 + $0x135] sm:$0xff]  ;;  %v3416_v19 = vld [vmem:[%s4125_s25 + $0x13d] sm:$0xff]  ;;  %v3402_v34 = vld [vmem:[%s4125_s25 + $0xcd] sm:$0xff] }
 0x150   : > { %3736 = vmatprep.mubr.msk.bf16.mxu1 %vm390_vm0, %v4709_v39  ;;  %v3433_v42 = vld [vmem:[%s4125_s25 + $0x1c5] sm:$0xff] }
 0x151   : > { %v1727_v56 = vsel %vm390_vm0, %v1679_v32, 0  ;;  %v2261_v32 = vpack.c.bf16 %v3416_v19, %v3415_v0  ;;  %v3442_v0 = vld [vmem:[%s4125_s25 + $0x20d] sm:$0xff] }
 0x155   : > { %3705 = vmatpush3.bf16.xpose.msra.mxu0 %v4726_v45 }
 0x156   : > { %3723 = vmatpush3.bf16.xpose.msra.mxu1 %v4731_v48  ;;  %3992 = vmatprep.subr.msk.bf16.mxu0 %vm390_vm0, %v4728_v46 }
 0x157   : > { %4000 = vmatprep.subr.msk.bf16.mxu1 %vm390_vm0, %v4733_v49 }
 0x15d   : > { %3707 = vmatpush3.bf16.xpose.msra.mxu0 %v4750_v1 }
 0x15e   : > { %3725 = vmatpush3.bf16.xpose.msra.mxu1 %v4755_v2  ;;  %3993 = vmatprep.subr.msk.bf16.mxu0 %vm390_vm0, %v4752_v11 }
 0x15f   : > { %4001 = vmatprep.subr.msk.bf16.mxu1 %vm390_vm0, %v4757_v7 }
 0x165   : > { %3709 = vmatpush3.bf16.xpose.msra.mxu0 %v4774_v22 }
 0x166   : > { %3727 = vmatpush3.bf16.xpose.msra.mxu1 %v4779_v24  ;;  %3994 = vmatprep.subr.msk.bf16.mxu0 %vm390_vm0, %v4776_v23 }
 0x167   : > { %4002 = vmatprep.subr.msk.bf16.mxu1 %vm390_vm0, %v4781_v25 }
 0x16d   : > { %3711 = vmatpush3.bf16.xpose.msra.mxu0 %v4798_v3 }
 0x16e   : > { %3729 = vmatpush3.bf16.xpose.msra.mxu1 %v4803_v5  ;;  %3995 = vmatprep.subr.msk.bf16.mxu0 %vm390_vm0, %v4800_v4 }
 0x16f   : > { %4003 = vmatprep.subr.msk.bf16.mxu1 %vm390_vm0, %v4805_v6 }
 0x175   : > { %3713 = vmatpush3.bf16.xpose.msra.mxu0 %v1727_v56 }
 0x176   : > { %3731 = vmatpush3.bf16.xpose.msra.mxu1 %v1775_v50  ;;  %3996 = vmatprep.subr.msk.bf16.mxu0 %vm390_vm0, %v1688_v44 }
 0x177   : > { %4004 = vmatprep.subr.msk.bf16.mxu1 %vm390_vm0, %v1704_v51 }
 0x17d   : > { %3715 = vmatpush3.bf16.xpose.msra.mxu0 %v1730_v10 }
 0x17e   : > { %3733 = vmatpush3.bf16.xpose.msra.mxu1 %v1778_v13  ;;  %3997 = vmatprep.subr.msk.bf16.mxu0 %vm390_vm0, %v1689_v12 }
 0x17f   : > { %4005 = vmatprep.subr.msk.bf16.mxu1 %vm390_vm0, %v1705_v14 }
 0x185   : > { %3717 = vmatpush3.bf16.xpose.msra.mxu0 %v1733_v28 }
 0x186   : > { %3735 = vmatpush3.bf16.xpose.msra.mxu1 %v1781_v29  ;;  %4006 = vmatprep.subr.msk.bf16.mxu0 %vm390_vm0, %v4694_v18  ;;  %v3375_v18 = vld [vmem:[%s4125_s25 + $0x214] sm:$0xff] }
 0x187   : > { %4014 = vmatprep.subr.msk.bf16.mxu1 %vm390_vm0, %v4698_v20  ;;  %v3376_v20 = vld [vmem:[%s4125_s25 + $0x21c] sm:$0xff] }
 0x18c   : > { %3719 = vmatmul.mubr.msk.bf16.vlgmr.msra.gmra.mrb[0].mxu0 %vm390_vm0, %v4709_v39 }
 0x18d   : > { %3737 = vmatmul.mubr.msk.bf16.vlgmr.msra.gmra.mrb[0].mxu1 %vm390_vm0, %v4709_v39  ;;  %3739 = vmatpush3.bf16.xpose.msra.mxu0 %v4726_v45  ;;  %v1990_v39 = vpack.c.bf16 %v3376_v20, %v3375_v18  ;;  %v3397_v45 = vld [vmem:[%s4125_s25 + $0xa5] sm:$0xff] }
 0x18e   : > { %3757 = vmatpush3.bf16.xpose.msra.mxu1 %v4731_v48  ;;  %4007 = vmatprep.subr.msk.bf16.mxu0 %vm390_vm0, %v4728_v46  ;;  %v3398_v46 = vld [vmem:[%s4125_s25 + $0xad] sm:$0xff]  ;;  %v3429_v48 = vld [vmem:[%s4125_s25 + $0x1a5] sm:$0xff] }
 0x18f   : > { %4015 = vmatprep.subr.msk.bf16.mxu1 %vm390_vm0, %v4733_v49  ;;  %3754 = vmatprep.mubr.msk.bf16.mxu0 %vm390_vm0, %v4852_v35  ;;  %v3430_v49 = vld [vmem:[%s4125_s25 + $0x1ad] sm:$0xff] }
 0x190   : > { %3772 = vmatprep.mubr.msk.bf16.mxu1 %vm390_vm0, %v4852_v35 }
 0x195   : > { %3741 = vmatpush3.bf16.xpose.msra.mxu0 %v4750_v1  ;;  %v2018_v1 = vsel %vm390_vm0, %v4674_v30, 0 }
 0x196   : > { %3759 = vmatpush3.bf16.xpose.msra.mxu1 %v4755_v2  ;;  %4008 = vmatprep.subr.msk.bf16.mxu0 %vm390_vm0, %v4752_v11  ;;  %v2252_v11 = vpack.c.bf16 %v3398_v46, %v3397_v45  ;;  %v2066_v2 = vsel %vm390_vm0, %v4677_v36, 0  ;;  %v3431_v36 = vld [vmem:[%s4125_s25 + $0x1b5] sm:$0xff]  ;;  %v3389_v46 = vld [vmem:[%s4125_s25 + $0x65] sm:$0xff] }
 0x197   : > { %4016 = vmatprep.subr.msk.bf16.mxu1 %vm390_vm0, %v4757_v7  ;;  %v2268_v7 = vpack.c.bf16 %v3430_v49, %v3429_v48  ;;  %v3390_v48 = vld [vmem:[%s4125_s25 + $0x6d] sm:$0xff]  ;;  %v3421_v49 = vld [vmem:[%s4125_s25 + $0x165] sm:$0xff] }
 0x19d   : > { %3743 = vmatpush3.bf16.xpose.msra.mxu0 %v4774_v22  ;;  %v3381_v22 = vld [vmem:[%s4125_s25 + $0x25] sm:$0xff] }
 0x19e   : > { %3761 = vmatpush3.bf16.xpose.msra.mxu1 %v4779_v24  ;;  %4009 = vmatprep.subr.msk.bf16.mxu0 %vm390_vm0, %v4776_v23  ;;  %v3413_v23 = vld [vmem:[%s4125_s25 + $0x125] sm:$0xff]  ;;  %v3414_v24 = vld [vmem:[%s4125_s25 + $0x12d] sm:$0xff] }
 0x19f   : > { %4017 = vmatprep.subr.msk.bf16.mxu1 %vm390_vm0, %v4781_v25  ;;  %v2260_v25 = vpack.c.bf16 %v3414_v24, %v3413_v23  ;;  %v3440_v23 = vld [vmem:[%s4125_s25 + $0x1fd] sm:$0xff] }
 0x1a5   : > { %3745 = vmatpush3.bf16.xpose.msra.mxu0 %v4798_v3  ;;  %v2330_v3 = vsel %vm390_vm0, %v2260_v25, 0 }
 0x1a6   : > { %3763 = vmatpush3.bf16.xpose.msra.mxu1 %v4803_v5  ;;  %4010 = vmatprep.subr.msk.bf16.mxu0 %vm390_vm0, %v4800_v4  ;;  %v2269_v4 = vpack.c.bf16 %v3432_v40, %v3431_v36  ;;  %v3383_v5 = vld [vmem:[%s4125_s25 + $0x35] sm:$0xff]  ;;  %v3392_v36 = vld [vmem:[%s4125_s25 + $0x7d] sm:$0xff] }
 0x1a7   : > { %4018 = vmatprep.subr.msk.bf16.mxu1 %vm390_vm0, %v4805_v6  ;;  %v3384_v6 = vld [vmem:[%s4125_s25 + $0x3d] sm:$0xff]  ;;  %v3423_v40 = vld [vmem:[%s4125_s25 + $0x175] sm:$0xff] }
 0x1a8   : > { %v2245_v47 = vpack.c.bf16 %v3384_v6, %v3383_v5  ;;  %v3410_v5 = vld [vmem:[%s4125_s25 + $0x10d] sm:$0xff]  ;;  %v3441_v6 = vld [vmem:[%s4125_s25 + $0x205] sm:$0xff] }
 0x1aa   : > { %v2285_v41 = vsel %vm390_vm0, %v2245_v47, 0 }
 0x1ad   : > { %3747 = vmatpush3.bf16.xpose.msra.mxu0 %v1727_v56  ;;  %v2254_v56 = vpack.c.bf16 %v3402_v34, %v3401_v33  ;;  %v2274_v33 = vpack.c.bf16 %v3442_v0, %v3441_v6  ;;  %v3393_v34 = vld [vmem:[%s4125_s25 + $0x85] sm:$0xff]  ;;  %v3454_v6 = vld [vmem:[%s4125_s25 + $0x4e] sm:$0xff] }
 0x1ae   : > { %3765 = vmatpush3.bf16.xpose.msra.mxu1 %v1775_v50  ;;  %4011 = vmatprep.subr.msk.bf16.mxu0 %vm390_vm0, %v1688_v44  ;;  %v2333_v44 = vsel %vm390_vm0, %v2261_v32, 0  ;;  %v2270_v50 = vpack.c.bf16 %v3434_v43, %v3433_v42  ;;  %v3394_v42 = vld [vmem:[%s4125_s25 + $0x8d] sm:$0xff]  ;;  %v3425_v43 = vld [vmem:[%s4125_s25 + $0x185] sm:$0xff] }
 0x1af   : > { %4019 = vmatprep.subr.msk.bf16.mxu1 %vm390_vm0, %v1704_v51  ;;  %v3385_v51 = vld [vmem:[%s4125_s25 + $0x45] sm:$0xff] }
 0x1b0   : > { %v2246_v58 = vpack.c.bf16 %v3386_v52, %v3385_v51  ;;  %v3412_v51 = vld [vmem:[%s4125_s25 + $0x11d] sm:$0xff]  ;;  %v3443_v52 = vld [vmem:[%s4125_s25 + $0x215] sm:$0xff]  ;;  %v3485_v0 = vld [vmem:[%s4125_s25 + $0x146] sm:$0xff] }
 0x1b2   : > { %v2288_v9 = vsel %vm390_vm0, %v2246_v58, 0 }
 0x1b5   : > { %3749 = vmatpush3.bf16.xpose.msra.mxu0 %v1730_v10  ;;  %v2255_v10 = vpack.c.bf16 %v3404_v62, %v3403_v61  ;;  %v2275_v61 = vpack.c.bf16 %v3444_v54, %v3443_v52  ;;  %v3395_v62 = vld [vmem:[%s4125_s25 + $0x95] sm:$0xff]  ;;  %v3456_v52 = vld [vmem:[%s4125_s25 + $0x5e] sm:$0xff] }
 0x1b6   : > { %3767 = vmatpush3.bf16.xpose.msra.mxu1 %v1778_v13  ;;  %4012 = vmatprep.subr.msk.bf16.mxu0 %vm390_vm0, %v1689_v12  ;;  %v2336_v12 = vsel %vm390_vm0, %v2262_v59, 0  ;;  %v2271_v13 = vpack.c.bf16 %v3436_v8, %v3435_v63  ;;  %v3396_v63 = vld [vmem:[%s4125_s25 + $0x9d] sm:$0xff]  ;;  %v3427_v8 = vld [vmem:[%s4125_s25 + $0x195] sm:$0xff] }
 0x1b7   : > { %4020 = vmatprep.subr.msk.bf16.mxu1 %vm390_vm0, %v1705_v14  ;;  %v3387_v14 = vld [vmem:[%s4125_s25 + $0x55] sm:$0xff] }
 0x1b8   : > { %v2247_v21 = vpack.c.bf16 %v3388_v15, %v3387_v14  ;;  %v3466_v14 = vld [vmem:[%s4125_s25 + $0xae] sm:$0xff]  ;;  %v3497_v15 = vld [vmem:[%s4125_s25 + $0x1a6] sm:$0xff]  ;;  %v3487_v54 = vld [vmem:[%s4125_s25 + $0x156] sm:$0xff] }
 0x1ba   : > { %v2291_v18 = vsel %vm390_vm0, %v2247_v21, 0 }
 0x1bd   : > { %3751 = vmatpush3.bf16.xpose.msra.mxu0 %v1733_v28  ;;  %v3406_v28 = vld [vmem:[%s4125_s25 + $0xed] sm:$0xff] }
 0x1be   : > { %3769 = vmatpush3.bf16.xpose.msra.mxu1 %v1781_v29  ;;  %4013 = vmatprep.subr.msk.bf16.mxu0 %vm390_vm0, %v4687_v60  ;;  %v3382_v60 = vld [vmem:[%s4125_s25 + $0x2d] sm:$0xff]  ;;  %v3437_v29 = vld [vmem:[%s4125_s25 + $0x1e5] sm:$0xff]  ;;  %v2256_v20 = vpack.c.bf16 %v3406_v28, %v3405_v27  ;;  %v2553_v27 = vpack.c.bf16 %v3498_v16, %v3497_v15 }
 0x1bf   : > { %4021 = vmatprep.subr.msk.bf16.mxu1 %vm390_vm0, %v1990_v39  ;;  %v2244_v30 = vpack.c.bf16 %v3382_v60, %v3381_v22  ;;  %v2339_v39 = vsel %vm390_vm0, %v2263_v26, 0  ;;  %v3408_v22 = vld [vmem:[%s4125_s25 + $0xfd] sm:$0xff]  ;;  %v3439_v60 = vld [vmem:[%s4125_s25 + $0x1f5] sm:$0xff]  ;;  %v3449_v28 = vld [vmem:[%s4125_s25 + $0x26] sm:$0xff] }
 0x1c0   : > { %v2273_v37 = vpack.c.bf16 %v3440_v23, %v3439_v60  ;;  %v3452_v60 = vld [vmem:[%s4125_s25 + $0x3e] sm:$0xff]  ;;  %v3483_v23 = vld [vmem:[%s4125_s25 + $0x136] sm:$0xff]  ;;  %v3458_v15 = vld [vmem:[%s4125_s25 + $0x6e] sm:$0xff] }
 0x1c1   : > { %v2282_v53 = vsel %vm390_vm0, %v2244_v30, 0  ;;  %v3489_v16 = vld [vmem:[%s4125_s25 + $0x166] sm:$0xff] }
 0x1c5   : > { %3753 = vmatpush3.bf16.xpose.msra.mxu0 %v2018_v1  ;;  %v3422_v1 = vld [vmem:[%s4125_s25 + $0x16d] sm:$0xff] }
 0x1c6   : > { %3771 = vmatpush3.bf16.xpose.msra.mxu1 %v2066_v2  ;;  %4022 = vmatprep.subr.msk.bf16.mxu0 %vm390_vm0, %v2252_v11  ;;  %v2248_v11 = vpack.c.bf16 %v3390_v48, %v3389_v46  ;;  %v2264_v2 = vpack.c.bf16 %v3422_v1, %v3421_v49  ;;  %v3468_v46 = vld [vmem:[%s4125_s25 + $0xbe] sm:$0xff]  ;;  %v3499_v48 = vld [vmem:[%s4125_s25 + $0x1b6] sm:$0xff] }
 0x1c7   : > { %4030 = vmatprep.subr.msk.bf16.mxu1 %vm390_vm0, %v2268_v7  ;;  %v3407_v7 = vld [vmem:[%s4125_s25 + $0xf5] sm:$0xff]  ;;  %v3500_v49 = vld [vmem:[%s4125_s25 + $0x1be] sm:$0xff] }
 0x1c8   : > { %v2294_v24 = vsel %vm390_vm0, %v2248_v11, 0  ;;  %v2257_v30 = vpack.c.bf16 %v3408_v22, %v3407_v7  ;;  %v2342_v25 = vsel %vm390_vm0, %v2264_v2, 0  ;;  %v2554_v7 = vpack.c.bf16 %v3500_v49, %v3499_v48  ;;  %v3451_v22 = vld [vmem:[%s4125_s25 + $0x36] sm:$0xff]  ;;  %v3460_v48 = vld [vmem:[%s4125_s25 + $0x7e] sm:$0xff] }
 0x1c9   : > { %v3491_v49 = vld [vmem:[%s4125_s25 + $0x176] sm:$0xff] }
 0x1cc   : > { %3755 = vmatmul.mubr.msk.bf16.vlgmr.msra.gmra.mrb[0].mxu0 %vm390_vm0, %v4852_v35 }
 0x1cd   : > { %3773 = vmatmul.mubr.msk.bf16.vlgmr.msra.gmra.mrb[0].mxu1 %vm390_vm0, %v4852_v35  ;;  %3775 = vmatpush3.bf16.xpose.msra.mxu0 %v2282_v53  ;;  %v3438_v35 = vld [vmem:[%s4125_s25 + $0x1ed] sm:$0xff]  ;;  %v3424_v53 = vld [vmem:[%s4125_s25 + $0x17d] sm:$0xff] }
 0x1ce   : > { %3793 = vmatpush3.bf16.xpose.msra.mxu1 %v2330_v3  ;;  %4023 = vmatprep.subr.msk.bf16.mxu0 %vm390_vm0, %v2253_v55  ;;  %v2272_v45 = vpack.c.bf16 %v3438_v35, %v3437_v29  ;;  %v2249_v55 = vpack.c.bf16 %v3392_v36, %v3391_v38  ;;  %v2265_v3 = vpack.c.bf16 %v3424_v53, %v3423_v40  ;;  %v3450_v29 = vld [vmem:[%s4125_s25 + $0x2e] sm:$0xff]  ;;  %v3481_v35 = vld [vmem:[%s4125_s25 + $0x126] sm:$0xff] }
 0x1cf   : > { %4031 = vmatprep.subr.msk.bf16.mxu1 %vm390_vm0, %v2269_v4  ;;  %3790 = vmatprep.mubr.msk.bf16.mxu0 %vm390_vm0, %v4922_v31  ;;  %v3409_v4 = vld [vmem:[%s4125_s25 + $0x105] sm:$0xff]  ;;  %v3470_v36 = vld [vmem:[%s4125_s25 + $0xce] sm:$0xff] }
 0x1d0   : > { %3808 = vmatprep.mubr.msk.bf16.mxu1 %vm390_vm0, %v4922_v31  ;;  %v2297_v19 = vsel %vm390_vm0, %v2249_v55, 0  ;;  %v2258_v47 = vpack.c.bf16 %v3410_v5, %v3409_v4  ;;  %v2345_v32 = vsel %vm390_vm0, %v2265_v3, 0  ;;  %v3469_v38 = vld [vmem:[%s4125_s25 + $0xc6] sm:$0xff]  ;;  %v3502_v53 = vld [vmem:[%s4125_s25 + $0x1ce] sm:$0xff] }
 0x1d1   : > { %v3501_v40 = vld [vmem:[%s4125_s25 + $0x1c6] sm:$0xff]  ;;  %v2539_v55 = vpack.c.bf16 %v3470_v36, %v3469_v38 }
 0x1d2   : > { %v2555_v4 = vpack.c.bf16 %v3502_v53, %v3501_v40  ;;  %v3453_v5 = vld [vmem:[%s4125_s25 + $0x46] sm:$0xff]  ;;  %v3462_v40 = vld [vmem:[%s4125_s25 + $0x8e] sm:$0xff] }
 0x1d3   : > { %v3461_v36 = vld [vmem:[%s4125_s25 + $0x86] sm:$0xff] }
 0x1d4   : > { %v3493_v53 = vld [vmem:[%s4125_s25 + $0x186] sm:$0xff] }
 0x1d5   : > { %3777 = vmatpush3.bf16.xpose.msra.mxu0 %v2285_v41  ;;  %v3426_v41 = vld [vmem:[%s4125_s25 + $0x18d] sm:$0xff] }
 0x1d6   : > { %3795 = vmatpush3.bf16.xpose.msra.mxu1 %v2333_v44  ;;  %4024 = vmatprep.subr.msk.bf16.mxu0 %vm390_vm0, %v2254_v56  ;;  %v2250_v56 = vpack.c.bf16 %v3394_v42, %v3393_v34  ;;  %v2266_v44 = vpack.c.bf16 %v3426_v41, %v3425_v43  ;;  %v3472_v34 = vld [vmem:[%s4125_s25 + $0xde] sm:$0xff]  ;;  %v3503_v42 = vld [vmem:[%s4125_s25 + $0x1d6] sm:$0xff] }
 0x1d7   : > { %4032 = vmatprep.subr.msk.bf16.mxu1 %vm390_vm0, %v2270_v50  ;;  %v3411_v50 = vld [vmem:[%s4125_s25 + $0x115] sm:$0xff]  ;;  %v3504_v43 = vld [vmem:[%s4125_s25 + $0x1de] sm:$0xff] }
 0x1d8   : > { %v2300_v57 = vsel %vm390_vm0, %v2250_v56, 0  ;;  %v2259_v58 = vpack.c.bf16 %v3412_v51, %v3411_v50  ;;  %v2348_v59 = vsel %vm390_vm0, %v2266_v44, 0  ;;  %v2556_v50 = vpack.c.bf16 %v3504_v43, %v3503_v42  ;;  %v3455_v51 = vld [vmem:[%s4125_s25 + $0x56] sm:$0xff]  ;;  %v3464_v42 = vld [vmem:[%s4125_s25 + $0x9e] sm:$0xff] }
 0x1d9   : > { %v3495_v43 = vld [vmem:[%s4125_s25 + $0x196] sm:$0xff] }
 0x1dd   : > { %3779 = vmatpush3.bf16.xpose.msra.mxu0 %v2288_v9  ;;  %v3428_v9 = vld [vmem:[%s4125_s25 + $0x19d] sm:$0xff] }
 0x1de   : > { %3797 = vmatpush3.bf16.xpose.msra.mxu1 %v2336_v12  ;;  %4025 = vmatprep.subr.msk.bf16.mxu0 %vm390_vm0, %v2255_v10  ;;  %v2251_v10 = vpack.c.bf16 %v3396_v63, %v3395_v62  ;;  %v2267_v12 = vpack.c.bf16 %v3428_v9, %v3427_v8  ;;  %v3474_v62 = vld [vmem:[%s4125_s25 + $0xee] sm:$0xff]  ;;  %v3505_v63 = vld [vmem:[%s4125_s25 + $0x1e6] sm:$0xff] }
 0x1df   : > { %4033 = vmatprep.subr.msk.bf16.mxu1 %vm390_vm0, %v2271_v13  ;;  %v3465_v13 = vld [vmem:[%s4125_s25 + $0xa6] sm:$0xff]  ;;  %v3506_v8 = vld [vmem:[%s4125_s25 + $0x1ee] sm:$0xff] }
 0x1e0   : > { %v2303_v17 = vsel %vm390_vm0, %v2251_v10, 0  ;;  %v2537_v21 = vpack.c.bf16 %v3466_v14, %v3465_v13  ;;  %v2351_v26 = vsel %vm390_vm0, %v2267_v12, 0  ;;  %v2557_v13 = vpack.c.bf16 %v3506_v8, %v3505_v63  ;;  %v3457_v14 = vld [vmem:[%s4125_s25 + $0x66] sm:$0xff] }
 0x1e5   : > { %3781 = vmatpush3.bf16.xpose.msra.mxu0 %v2291_v18  ;;  %v3482_v18 = vld [vmem:[%s4125_s25 + $0x12e] sm:$0xff] }
 0x1e6   : > { %3799 = vmatpush3.bf16.xpose.msra.mxu1 %v2339_v39  ;;  %4026 = vmatprep.subr.msk.bf16.mxu0 %vm390_vm0, %v2256_v20  ;;  %v2529_v20 = vpack.c.bf16 %v3450_v29, %v3449_v28  ;;  %v2545_v39 = vpack.c.bf16 %v3482_v18, %v3481_v35  ;;  %v3476_v28 = vld [vmem:[%s4125_s25 + $0xfe] sm:$0xff]  ;;  %v3507_v29 = vld [vmem:[%s4125_s25 + $0x1f6] sm:$0xff] }
 0x1e7   : > { %4034 = vmatprep.subr.msk.bf16.mxu1 %vm390_vm0, %v2272_v45  ;;  %v3467_v45 = vld [vmem:[%s4125_s25 + $0xb6] sm:$0xff]  ;;  %v3508_v35 = vld [vmem:[%s4125_s25 + $0x1fe] sm:$0xff] }
 0x1e8   : > { %v2567_v1 = vsel %vm390_vm0, %v2529_v20, 0  ;;  %v2538_v11 = vpack.c.bf16 %v3468_v46, %v3467_v45  ;;  %v2615_v2 = vsel %vm390_vm0, %v2545_v39, 0  ;;  %v2558_v45 = vpack.c.bf16 %v3508_v35, %v3507_v29  ;;  %v3459_v46 = vld [vmem:[%s4125_s25 + $0x76] sm:$0xff] }
 0x1ed   : > { %3783 = vmatpush3.bf16.xpose.msra.mxu0 %v2294_v24  ;;  %v3484_v24 = vld [vmem:[%s4125_s25 + $0x13e] sm:$0xff] }
 0x1ee   : > { %3801 = vmatpush3.bf16.xpose.msra.mxu1 %v2342_v25  ;;  %4027 = vmatprep.subr.msk.bf16.mxu0 %vm390_vm0, %v2257_v30  ;;  %v5031_v30 = vld [vmem:[%s5188_s1 + $0x20] sm:$0xf]  ;;  %v2530_v25 = vpack.c.bf16 %v3452_v60, %v3451_v22  ;;  %v3478_v22 = vld [vmem:[%s4125_s25 + $0x10e] sm:$0xff]  ;;  %v3509_v60 = vld [vmem:[%s4125_s25 + $0x206] sm:$0xff] }
 0x1ef   : > { %4035 = vmatprep.subr.msk.bf16.mxu1 %vm390_vm0, %v2273_v37  ;;  %v2546_v37 = vpack.c.bf16 %v3484_v24, %v3483_v23  ;;  %v3510_v23 = vld [vmem:[%s4125_s25 + $0x20e] sm:$0xff] }
 0x1f0   : > { %v2559_v38 = vpack.c.bf16 %v3510_v23, %v3509_v60 }
 0x1f1   : > { %v2618_v3 = vsel %vm390_vm0, %v2546_v37, 0 }
 0x1f5   : > { %3785 = vmatpush3.bf16.xpose.msra.mxu0 %v2297_v19  ;;  %v3486_v19 = vld [vmem:[%s4125_s25 + $0x14e] sm:$0xff] }
 0x1f6   : > { %3803 = vmatpush3.bf16.xpose.msra.mxu1 %v2345_v32  ;;  %4028 = vmatprep.subr.msk.bf16.mxu0 %vm390_vm0, %v2258_v47  ;;  %v2531_v47 = vpack.c.bf16 %v3454_v6, %v3453_v5  ;;  %v2547_v32 = vpack.c.bf16 %v3486_v19, %v3485_v0  ;;  %v3480_v5 = vld [vmem:[%s4125_s25 + $0x11e] sm:$0xff]  ;;  %v3511_v6 = vld [vmem:[%s4125_s25 + $0x216] sm:$0xff] }
 0x1f7   : > { %4036 = vmatprep.subr.msk.bf16.mxu1 %vm390_vm0, %v2274_v33  ;;  %v3471_v33 = vld [vmem:[%s4125_s25 + $0xd6] sm:$0xff]  ;;  %v3512_v0 = vld [vmem:[%s4125_s25 + $0x21e] sm:$0xff] }
 0x1f8   : > { %v2573_v41 = vsel %vm390_vm0, %v2531_v47, 0  ;;  %v2540_v56 = vpack.c.bf16 %v3472_v34, %v3471_v33  ;;  %v2621_v44 = vsel %vm390_vm0, %v2547_v32, 0  ;;  %v2560_v33 = vpack.c.bf16 %v3512_v0, %v3511_v6  ;;  %v3463_v34 = vld [vmem:[%s4125_s25 + $0x96] sm:$0xff] }
 0x1fd   : > { %3787 = vmatpush3.bf16.xpose.msra.mxu0 %v2300_v57  ;;  %v3488_v57 = vld [vmem:[%s4125_s25 + $0x15e] sm:$0xff] }
 0x1fe   : > { %3805 = vmatpush3.bf16.xpose.msra.mxu1 %v2348_v59  ;;  %4029 = vmatprep.subr.msk.bf16.mxu0 %vm390_vm0, %v2259_v58  ;;  %v2532_v58 = vpack.c.bf16 %v3456_v52, %v3455_v51  ;;  %v2548_v59 = vpack.c.bf16 %v3488_v57, %v3487_v54 }
 0x1ff   : > { %4037 = vmatprep.subr.msk.bf16.mxu1 %vm390_vm0, %v2275_v61  ;;  %v3473_v61 = vld [vmem:[%s4125_s25 + $0xe6] sm:$0xff] }
 0x200   : > { %v2576_v9 = vsel %vm390_vm0, %v2532_v58, 0  ;;  %v2541_v10 = vpack.c.bf16 %v3474_v62, %v3473_v61  ;;  %v2624_v12 = vsel %vm390_vm0, %v2548_v59, 0 }
 0x205   : > { %3789 = vmatpush3.bf16.xpose.msra.mxu0 %v2303_v17  ;;  %v3490_v17 = vld [vmem:[%s4125_s25 + $0x16e] sm:$0xff] }
 0x206   : > { %3807 = vmatpush3.bf16.xpose.msra.mxu1 %v2351_v26  ;;  %4038 = vmatprep.subr.msk.bf16.mxu0 %vm390_vm0, %v2537_v21  ;;  %v2533_v21 = vpack.c.bf16 %v3458_v15, %v3457_v14  ;;  %v2549_v26 = vpack.c.bf16 %v3490_v17, %v3489_v16  ;;  %v2768_v15 = vld [vmem:[%s5191_s4 + $0x4] sm:$0xf] (!%p3518_p3) }
 0x207   : > { %4046 = vmatprep.subr.msk.bf16.mxu1 %vm390_vm0, %v2553_v27  ;;  %v3475_v27 = vld [vmem:[%s4125_s25 + $0xf6] sm:$0xff] }
 0x208   : > { %v2579_v18 = vsel %vm390_vm0, %v2533_v21, 0  ;;  %v2542_v20 = vpack.c.bf16 %v3476_v28, %v3475_v27  ;;  %v2627_v39 = vsel %vm390_vm0, %v2549_v26, 0 }
 0x20c   : > { %3791 = vmatmul.mubr.msk.bf16.vlgmr.msra.gmra.mrb[0].mxu0 %vm390_vm0, %v4922_v31 }
 0x20d   : > { %3809 = vmatmul.mubr.msk.bf16.vlgmr.msra.gmra.mrb[0].mxu1 %vm390_vm0, %v4922_v31  ;;  %3811 = vmatpush3.bf16.xpose.msra.mxu0 %v2567_v1  ;;  %v2570_v31 = vsel %vm390_vm0, %v2530_v25, 0  ;;  %v3492_v1 = vld [vmem:[%s4125_s25 + $0x17e] sm:$0xff] }
 0x20e   : > { %3829 = vmatpush3.bf16.xpose.msra.mxu1 %v2615_v2  ;;  %4039 = vmatprep.subr.msk.bf16.mxu0 %vm390_vm0, %v2538_v11  ;;  %v2534_v11 = vpack.c.bf16 %v3460_v48, %v3459_v46  ;;  %v2550_v2 = vpack.c.bf16 %v3492_v1, %v3491_v49 }
 0x20f   : > { %4047 = vmatprep.subr.msk.bf16.mxu1 %vm390_vm0, %v2554_v7  ;;  %3826 = vmatprep.mubr.msk.bf16.mxu0 %vm390_vm0, %v5031_v30  ;;  %v3477_v7 = vld [vmem:[%s4125_s25 + $0x106] sm:$0xff] }
 0x210   : > { %3844 = vmatprep.mubr.msk.bf16.mxu1 %vm390_vm0, %v5031_v30  ;;  %v2582_v24 = vsel %vm390_vm0, %v2534_v11, 0  ;;  %v2543_v25 = vpack.c.bf16 %v3478_v22, %v3477_v7  ;;  %v2630_v37 = vsel %vm390_vm0, %v2550_v2, 0 }
 0x215   : > { %3813 = vmatpush3.bf16.xpose.msra.mxu0 %v2570_v31  ;;  %v3494_v31 = vld [vmem:[%s4125_s25 + $0x18e] sm:$0xff] }
 0x216   : > { %3831 = vmatpush3.bf16.xpose.msra.mxu1 %v2618_v3  ;;  %4040 = vmatprep.subr.msk.bf16.mxu0 %vm390_vm0, %v2539_v55  ;;  %v2535_v55 = vpack.c.bf16 %v3462_v40, %v3461_v36  ;;  %v2551_v3 = vpack.c.bf16 %v3494_v31, %v3493_v53 }
 0x217   : > { %4048 = vmatprep.subr.msk.bf16.mxu1 %vm390_vm0, %v2555_v4  ;;  %v3479_v4 = vld [vmem:[%s4125_s25 + $0x116] sm:$0xff] }
 0x218   : > { %v2585_v19 = vsel %vm390_vm0, %v2535_v55, 0  ;;  %v2544_v47 = vpack.c.bf16 %v3480_v5, %v3479_v4  ;;  %v2633_v32 = vsel %vm390_vm0, %v2551_v3, 0  ;;  %v2878_v55 = vld [vmem:[%s5189_s2] sm:$0xff] (!%p3518_p3)  ;;  %v4075_v3 = vmov (!%p3518_p3), 0  }
 0x219   : > { %4063 = vset.pattern.permute.xlu0 (!%p3518_p3), %v4075_v3  ;;  %4064 = vset.pattern.permute.xlu1 (!%p3518_p3), %v4075_v3 }
 0x21d   : > { %3815 = vmatpush3.bf16.xpose.msra.mxu0 %v2573_v41  ;;  %v3496_v41 = vld [vmem:[%s4125_s25 + $0x19e] sm:$0xff] }
 0x21e   : > { %3833 = vmatpush3.bf16.xpose.msra.mxu1 %v2621_v44  ;;  %4041 = vmatprep.subr.msk.bf16.mxu0 %vm390_vm0, %v2540_v56  ;;  %v2536_v56 = vpack.c.bf16 %v3464_v42, %v3463_v34  ;;  %v2552_v44 = vpack.c.bf16 %v3496_v41, %v3495_v43 }
 0x21f   : > { %4049 = vmatprep.subr.msk.bf16.mxu1 %vm390_vm0, %v2556_v50 }
 0x220   : > { %v2588_v50 = vsel %vm390_vm0, %v2536_v56, 0  ;;  %v2636_v51 = vsel %vm390_vm0, %v2552_v44, 0 }
 0x225   : > { %3817 = vmatpush3.bf16.xpose.msra.mxu0 %v2576_v9  ;;  %v2767_v9 = vld [vmem:[%s5191_s4] sm:$0xf] (!%p3518_p3) }
 0x226   : > { %3835 = vmatpush3.bf16.xpose.msra.mxu1 %v2624_v12  ;;  %4042 = vmatprep.subr.msk.bf16.mxu0 %vm390_vm0, %v2541_v10 }
 0x227   : > { %4050 = vmatprep.subr.msk.bf16.mxu1 %vm390_vm0, %v2557_v13 }
 0x22d   : > { %3819 = vmatpush3.bf16.xpose.msra.mxu0 %v2579_v18 }
 0x22e   : > { %3837 = vmatpush3.bf16.xpose.msra.mxu1 %v2627_v39  ;;  %4043 = vmatprep.subr.msk.bf16.mxu0 %vm390_vm0, %v2542_v20 }
 0x22f   : > { %4051 = vmatprep.subr.msk.bf16.mxu1 %vm390_vm0, %v2558_v45 }
 0x235   : > { %3821 = vmatpush3.bf16.xpose.msra.mxu0 %v2582_v24 }
 0x236   : > { %3839 = vmatpush3.bf16.xpose.msra.mxu1 %v2630_v37  ;;  %4044 = vmatprep.subr.msk.bf16.mxu0 %vm390_vm0, %v2543_v25 }
 0x237   : > { %4052 = vmatprep.subr.msk.bf16.mxu1 %vm390_vm0, %v2559_v38 }
 0x23d   : > { %3823 = vmatpush3.bf16.xpose.msra.mxu0 %v2585_v19 }
 0x23e   : > { %3841 = vmatpush3.bf16.xpose.msra.mxu1 %v2633_v32  ;;  %4045 = vmatprep.subr.msk.bf16.mxu0 %vm390_vm0, %v2544_v47 }
 0x23f   : > { %4053 = vmatprep.subr.msk.bf16.mxu1 %vm390_vm0, %v2560_v33 }
 0x245   : > { %3825 = vmatpush3.bf16.xpose.msra.mxu0 %v2588_v50 }
 0x246   : > { %3843 = vmatpush3.bf16.xpose.msra.mxu1 %v2636_v51 }
 0x24c   : > { %3827 = vmatmul.mubr.msk.bf16.vlgmr.msra.gmra.mrb[0].mxu0 %vm390_vm0, %v5031_v30 }
 0x24d   : > { %3845 = vmatmul.mubr.msk.bf16.vlgmr.msra.gmra.mrb[0].mxu1 %vm390_vm0, %v5031_v30  ;;  %v2771_v30 = vlaneseq (!%p3518_p3) }
 0x24f   : > { %v2772_v8 = vshrl.u32 (!%p3518_p3), %v2771_v30, 7 }
 0x251   : > { %v2773_v10 = vsub.s32 (!%p3518_p3), 0, %v2772_v8  ;;  %v2777_v12 = vsub.s32 (!%p3518_p3), 1, %v2772_v8  ;;  %v2781_v13 = vsub.s32 (!%p3518_p3), 2, %v2772_v8  ;;  %v2785_v14 = vsub.s32 (!%p3518_p3), 3, %v2772_v8 }
 0x253   : > { %v2774_v26 = vrot.slane (!%p3518_p3), %v2767_v9, %v2773_v10  ;;  %v2778_v27 = vrot.slane (!%p3518_p3), %v2767_v9, %v2777_v12  ;;  %v2782_v28 = vrot.slane (!%p3518_p3), %v2767_v9, %v2781_v13  ;;  %v2786_v29 = vrot.slane (!%p3518_p3), %v2767_v9, %v2785_v14 }
 0x254   : > { %v2790_v45 = vrot.slane (!%p3518_p3), %v2768_v15, %v2773_v10  ;;  %v2794_v46 = vrot.slane (!%p3518_p3), %v2768_v15, %v2777_v12  ;;  %v2798_v48 = vrot.slane (!%p3518_p3), %v2768_v15, %v2781_v13  ;;  %v2802_v2 = vrot.slane (!%p3518_p3), %v2768_v15, %v2785_v14 }
 0x31d   : > { %2758 = sbr.rel (%p3518_p3) target bundleno = 1155 (0x483), region = 44 }
 0x31f   : > { %v2696_v52 = vpop.f32.mrb[0].mxu0 }
 0x320   : > { %2751 = vst [vmem:[%s2750_s22] sm:$0xff] %v2696_v52  ;;  %v2737_v54 = vpop.f32.mrb[0].mxu1  ;;  %v2698_v57 = vpop.f32.mrb[1].mxu0 }
 0x321   : > { %2753 = vst [vmem:[%s2750_s22 + $0x10] sm:$0xff] %v2737_v54  ;;  %2752 = vst [vmem:[%s2750_s22 + $0x8] sm:$0xff] %v2698_v57  ;;  %v2739_v58 = vpop.f32.mrb[1].mxu1  ;;  %v2700_v59 = vpop.f32.mrb[2].mxu0 }
 0x322   : > { %2754 = vst [vmem:[%s2750_s22 + $0x18] sm:$0xff] %v2739_v58  ;;  %v2741_v61 = vpop.f32.mrb[2].mxu1  ;;  %v2701_v62 = vpop.f32.mrb[3].mxu0 }
 0x323   : > { %v2742_v63 = vpop.f32.mrb[3].mxu1 }
 0x329   : > { %v2759_v16 = vld [vmem:[%s5192_s5] sm:$0xff]  ;;  %v2760_v17 = vld [vmem:[%s5192_s5 + $0x8] sm:$0xff]  ;;  %v2761_v21 = vld [vmem:[%s5192_s5 + $0x10] sm:$0xff] }
 0x32a   : > { %v2763_v35 = vld [vmem:[%s5192_s5 + $0x20] sm:$0xff]  ;;  %v2764_v18 = vld [vmem:[%s5192_s5 + $0x28] sm:$0xff]  ;;  %v2765_v20 = vld [vmem:[%s5192_s5 + $0x30] sm:$0xff]  ;;  %v2811_v49 = vmul.f32 %v2774_v26, %v2759_v16  ;;  %v2812_v1 = vmul.f32 %v2778_v27, %v2760_v17  ;;  %v2813_v11 = vmul.f32 %v2782_v28, %v2761_v21 }
 0x32b   : > { %v2762_v39 = vld [vmem:[%s5192_s5 + $0x18] sm:$0xff]  ;;  %v2815_v22 = vmul.f32 %v2790_v45, %v2763_v35  ;;  %v2816_v60 = vmul.f32 %v2794_v46, %v2764_v18  ;;  %v2817_v23 = vmul.f32 %v2798_v48, %v2765_v20 }
 0x32c   : > { %v2766_v7 = vld [vmem:[%s5192_s5 + $0x38] sm:$0xff]  ;;  %v2814_v24 = vmul.f32 %v2786_v29, %v2762_v39  ;;  %v2819_v25 = vadd.f32 %v2812_v1, %v2811_v49 }
 0x32d   : > { %v2824_v37 = vadd.f32 %v2816_v60, %v2815_v22  ;;  %v2818_v36 = vmul.f32 %v2802_v2, %v2766_v7 }
 0x32e   : > { %v2820_v38 = vadd.f32 %v2819_v25, %v2813_v11 }
 0x32f   : > { %v2825_v40 = vadd.f32 %v2824_v37, %v2817_v23 }
 0x330   : > { %v2821_v53 = vadd.f32 %v2820_v38, %v2814_v24 }
 0x331   : > { %v2826_v31 = vadd.f32 %v2825_v40, %v2818_v36 }
 0x332   : > { %2822 = vadd.xlane.f32.xlu0 %v2821_v53 }
 0x336   : > { %2827 = vadd.xlane.f32.xlu0 %v2826_v31 }
 0x34c   : > { %2881 = vperm.xlu0 %4063, %v2878_v55  }
 0x3bf   : > { %v2823_v4 = vpop.xlane.xlu0 %2822 }
 0x3c3   : > { %v2828_v5 = vpop.xlane.xlu0 %2827 }
 0x3c4   : > { %v2829_v6 = vadd.f32 %v2828_v5, %v2823_v4 }
 0x3c6   : > { %v2831_v0 = vmul.f32 0.0078125, %v2829_v6 }
 0x3c8   : > { %v2832_v19 = vsub.f32 %v2759_v16, %v2831_v0  ;;  %v2833_v47 = vsub.f32 %v2760_v17, %v2831_v0  ;;  %v2834_v32 = vsub.f32 %v2761_v21, %v2831_v0  ;;  %v2835_v33 = vsub.f32 %v2762_v39, %v2831_v0  ;;  %v2892_v21 = vld [vmem:[%s5190_s3] sm:$0xff] }
 0x3c9   : > { %v2836_v34 = vsub.f32 %v2763_v35, %v2831_v0  ;;  %v2837_v42 = vsub.f32 %v2764_v18, %v2831_v0  ;;  %v2838_v43 = vsub.f32 %v2765_v20, %v2831_v0  ;;  %v2839_v50 = vsub.f32 %v2766_v7, %v2831_v0 }
 0x3ca   : > { %v2840_v41 = vmul.f32 %v2832_v19, %v2774_v26  ;;  %v2841_v56 = vmul.f32 %v2833_v47, %v2778_v27  ;;  %v2842_v44 = vmul.f32 %v2834_v32, %v2782_v28  ;;  %v2843_v54 = vmul.f32 %v2835_v33, %v2786_v29 }
 0x3cb   : > { %v2844_v51 = vmul.f32 %v2836_v34, %v2790_v45  ;;  %v2845_v52 = vmul.f32 %v2837_v42, %v2794_v46  ;;  %v2846_v59 = vmul.f32 %v2838_v43, %v2798_v48  ;;  %v2847_v12 = vmul.f32 %v2839_v50, %v2802_v2  ;;  %v2882_v20 = vpop.permute.xlu0 %2881 }
 0x3cc   : > { %v2848_v57 = vmul.f32 %v2840_v41, %v2840_v41  ;;  %v2849_v58 = vmul.f32 %v2841_v56, %v2841_v56  ;;  %v2850_v63 = vmul.f32 %v2842_v44, %v2842_v44  ;;  %v2851_v9 = vmul.f32 %v2843_v54, %v2843_v54 }
 0x3cd   : > { %v2852_v61 = vmul.f32 %v2844_v51, %v2844_v51  ;;  %v2853_v62 = vmul.f32 %v2845_v52, %v2845_v52  ;;  %v2854_v13 = vmul.f32 %v2846_v59, %v2846_v59  ;;  %v2855_v16 = vmul.f32 %v2847_v12, %v2847_v12 }
 0x3ce   : > { %v2856_v30 = vadd.f32 %v2849_v58, %v2848_v57 }
 0x3cf   : > { %v2861_v8 = vadd.f32 %v2853_v62, %v2852_v61 }
 0x3d0   : > { %v2857_v10 = vadd.f32 %v2856_v30, %v2850_v63 }
 0x3d1   : > { %v2862_v15 = vadd.f32 %v2861_v8, %v2854_v13 }
 0x3d2   : > { %v2858_v14 = vadd.f32 %v2857_v10, %v2851_v9 }
 0x3d3   : > { %v2863_v17 = vadd.f32 %v2862_v15, %v2855_v16 }
 0x3d4   : > { %2859 = vadd.xlane.f32.xlu1 %v2858_v14 }
 0x3d8   : > { %2864 = vadd.xlane.f32.xlu1 %v2863_v17 }
 0x3e9   : > { %2895 = vperm.xlu1 %4064, %v2892_v21  }
 0x461   : > { %v2860_v26 = vpop.xlane.xlu1 %2859 }
 0x465   : > { %v2865_v27 = vpop.xlane.xlu1 %2864 }
 0x466   : > { %v2866_v28 = vadd.f32 %v2865_v27, %v2860_v26 }
 0x468   : > { %v2867_v29 = vmul.f32 0.0078125, %v2866_v28 }
 0x469   : > { %v2896_v7 = vpop.permute.xlu1 %2895 }
 0x46a   : > { %v2868_v35 = vadd.f32 1e-05, %v2867_v29 }
 0x46c   : > { %4065 = vrsqrt.f32 %v2868_v35 }
 0x476   : > { %v4066_v18 = vpop.eup %4065 }
 0x477   : > { %v2870_v39 = vmul.f32 %v4066_v18, %v2832_v19  ;;  %v2871_v45 = vmul.f32 %v4066_v18, %v2833_v47  ;;  %v2872_v46 = vmul.f32 %v4066_v18, %v2834_v32  ;;  %v2873_v48 = vmul.f32 %v4066_v18, %v2835_v33 }
 0x478   : > { %v2874_v49 = vmul.f32 %v4066_v18, %v2836_v34  ;;  %v2875_v1 = vmul.f32 %v4066_v18, %v2837_v42  ;;  %v2876_v11 = vmul.f32 %v4066_v18, %v2838_v43  ;;  %v2877_v2 = vmul.f32 %v4066_v18, %v2839_v50 }
 0x479   : > { %v2884_v22 = vmul.f32 %v2882_v20, %v2870_v39  ;;  %v2885_v60 = vmul.f32 %v2882_v20, %v2871_v45  ;;  %v2886_v23 = vmul.f32 %v2882_v20, %v2872_v46  ;;  %v2887_v24 = vmul.f32 %v2882_v20, %v2873_v48 }
 0x47a   : > { %v2888_v25 = vmul.f32 %v2882_v20, %v2874_v49  ;;  %v2889_v37 = vmul.f32 %v2882_v20, %v2875_v1  ;;  %v2890_v38 = vmul.f32 %v2882_v20, %v2876_v11  ;;  %v2891_v36 = vmul.f32 %v2882_v20, %v2877_v2 }
 0x47b   : > { %v2898_v40 = vadd.f32 %v2896_v7, %v2884_v22  ;;  %v2899_v53 = vadd.f32 %v2896_v7, %v2885_v60  ;;  %v2900_v31 = vadd.f32 %v2896_v7, %v2886_v23  ;;  %v2901_v55 = vadd.f32 %v2896_v7, %v2887_v24 }
 0x47c   : > { %v2902_v3 = vadd.f32 %v2896_v7, %v2888_v25  ;;  %v2903_v4 = vadd.f32 %v2896_v7, %v2889_v37  ;;  %v2904_v5 = vadd.f32 %v2896_v7, %v2890_v38  ;;  %v2905_v6 = vadd.f32 %v2896_v7, %v2891_v36 }
 0x47d   : > { %v2906_v0 = vmax.f32 %v2898_v40, 0.0  ;;  %v2907_v19 = vmax.f32 %v2899_v53, 0.0  ;;  %v2908_v47 = vmax.f32 %v2900_v31, 0.0  ;;  %v2909_v32 = vmax.f32 %v2901_v55, 0.0 }
 0x47e   : > { %v2910_v33 = vmax.f32 %v2902_v3, 0.0  ;;  %v2911_v34 = vmax.f32 %v2903_v4, 0.0  ;;  %v2912_v42 = vmax.f32 %v2904_v5, 0.0  ;;  %v2913_v43 = vmax.f32 %v2905_v6, 0.0 }
 0x47f   : > { %2914 = vst [vmem:[%s5192_s5] sm:$0xff] %v2906_v0  ;;  %2915 = vst [vmem:[%s5192_s5 + $0x8] sm:$0xff] %v2907_v19 }
 0x480   : > { %2916 = vst [vmem:[%s5192_s5 + $0x10] sm:$0xff] %v2908_v47  ;;  %2917 = vst [vmem:[%s5192_s5 + $0x18] sm:$0xff] %v2909_v32 }
 0x481   : > { %2918 = vst [vmem:[%s5192_s5 + $0x20] sm:$0xff] %v2910_v33  ;;  %2919 = vst [vmem:[%s5192_s5 + $0x28] sm:$0xff] %v2911_v34 }
 0x482   : > { %2920 = vst [vmem:[%s5192_s5 + $0x30] sm:$0xff] %v2912_v42  ;;  %2921 = vst [vmem:[%s5192_s5 + $0x38] sm:$0xff] %v2913_v43 }
 0x483 PF: > { %s15_s18 = sadd.s32 1, %s4073_s18  }
 0x484   : > { %p12_p4 = scmp.ge.s32.totalorder %s15_s18, 4  }
 0x486   :  { %14 = sbr.rel (!%p12_p4) target bundleno = 1 (0x1), region = 85 }

</bundles_post_ra>
